<compile_context>
chip_gen: v7x
topology: tpu7x:2x2x1
jax: 0.10.0
libtpu: 0.0.40
codegen_flags: <defaults>
</compile_context>

<pallas_src>
import functools

import jax
import jax.numpy as jnp
import numpy as np
from jax.experimental import pallas as pl
from jax.experimental.pallas import tpu as pltpu

HEAD_HIDDEN = 128   # head: Linear(16F -> 128) -> ReLU -> Linear(128 -> 2)
HEAD_PAD = 128      # 2-wide output padded to a lane-dense 128 lanes in-kernel
OUT_DIM = 2


def _gru_gates(gi_t, gh_t, h_prev, b_hn_b, H):
    """PyTorch gate order (r, z, n); n = tanh(i_n + r * (h_n + b_hn)). All f32."""
    r = jax.nn.sigmoid(gi_t[:, :H] + gh_t[:, :H])
    z = jax.nn.sigmoid(gi_t[:, H:2 * H] + gh_t[:, H:2 * H])
    n = jnp.tanh(gi_t[:, 2 * H:] + r * (gh_t[:, 2 * H:] + b_hn_b))
    return (1.0 - z) * n + z * h_prev


# ----------------------------------------------------------------------------
# Fused kernel: stacked GRU + head MLP, everything VMEM-resident, no grid loop.
# ----------------------------------------------------------------------------
def fused_gru_head_kernel(*refs, S, B, H, num_layers):
    x_ref = refs[0]
    layer_refs = refs[1: 1 + 4 * num_layers]          # per layer: wih_t, whh_t, b_comb, b_hn
    hw1_ref, hb1_ref, hw2_ref, hb2_ref = refs[1 + 4 * num_layers: 5 + 4 * num_layers]
    out_ref = refs[5 + 4 * num_layers]
    gi0_ref = refs[6 + 4 * num_layers]                 # VMEM scratch (S*B, 3H) f32

    f32 = jnp.float32
    bf16 = jnp.bfloat16

    # ---- Layer-0 input projection hoisted: one MXU matmul, stored straight to
    # VMEM scratch so the (S*B, 3H) result never stays live in vregs across the
    # unrolled time loop (spill avoidance).
    gi0 = jnp.dot(x_ref[...].astype(bf16), layer_refs[0][...],
                  preferred_element_type=f32)
    gi0_ref[...] = gi0 + layer_refs[2][...]            # + b_comb0 (broadcast once)

    # ---- Small per-layer constants hoisted out of the unrolled loop ---------
    b_hn_b = [jnp.broadcast_to(layer_refs[4 * l + 3][...], (B, H))
              for l in range(num_layers)]
    b_comb_b = [None] + [jnp.broadcast_to(layer_refs[4 * l + 2][...], (B, 3 * H))
                         for l in range(1, num_layers)]
    hb1_b = jnp.broadcast_to(hb1_ref[...], (B, HEAD_HIDDEN))
    hb2_b = jnp.broadcast_to(hb2_ref[...], (B, HEAD_PAD))

    h = [jnp.zeros((B, H), f32) for _ in range(num_layers)]

    # ---- Wavefront over time: all layers + head advance per step.  The loop
    # is Python-unrolled (S small & static) so the LLO scheduler can overlap
    # layer 1 / head work of step t with layer 0's step t+1 MXU pushes.
    for t in range(S):
        # Layer 0: gi slice from VMEM scratch, recurrent weight read at dot site.
        gi_t = gi0_ref[pl.ds(t * B, B), :]
        gh_t = jnp.dot(h[0].astype(bf16), layer_refs[1][...],
                       preferred_element_type=f32)
        h[0] = _gru_gates(gi_t, gh_t, h[0], b_hn_b[0], H)

        # Layers >= 1: per-step input projection from the layer below (wavefront).
        for l in range(1, num_layers):
            wih_ref = layer_refs[4 * l]
            whh_ref = layer_refs[4 * l + 1]
            gi_t = jnp.dot(h[l - 1].astype(bf16), wih_ref[...],
                           preferred_element_type=f32) + b_comb_b[l]
            gh_t = jnp.dot(h[l].astype(bf16), whh_ref[...],
                           preferred_element_type=f32)
            h[l] = _gru_gates(gi_t, gh_t, h[l], b_hn_b[l], H)

        # Head MLP for this step (off the recurrent dependency chain).
        hh = jnp.dot(h[-1].astype(bf16), hw1_ref[...],
                     preferred_element_type=f32) + hb1_b
        hh = jnp.maximum(hh, 0.0)
        o = jnp.dot(hh.astype(bf16), hw2_ref[...],
                    preferred_element_type=f32) + hb2_b
        out_ref[pl.ds(t * B, B), :] = o.astype(out_ref.dtype)


# ----------------------------------------------------------------------------
# One-time host-side parameter prep: pre-transpose, fold r/z biases, bf16 cast.
# ----------------------------------------------------------------------------
def prepare_kernel_params(params):
    layers = []
    for layer in params["gru_layers"]:
        H = layer["w_hh"].shape[1]
        b_comb = layer["b_ih"] + jnp.concatenate(
            [layer["b_hh"][:2 * H], jnp.zeros((H,), jnp.float32)])
        layers.append(dict(
            wih_t=jnp.asarray(layer["w_ih"].T, jnp.bfloat16),   # (F_in, 3H)
            whh_t=jnp.asarray(layer["w_hh"].T, jnp.bfloat16),   # (H, 3H)
            b_comb=b_comb.reshape(1, 3 * H).astype(jnp.float32),
            b_hn=layer["b_hh"][2 * H:].reshape(1, H).astype(jnp.float32),
        ))
    hw2_pad = jnp.zeros((HEAD_HIDDEN, HEAD_PAD), jnp.float32)
    hw2_pad = hw2_pad.at[:, :OUT_DIM].set(params["head_w2"].T)
    hb2_pad = jnp.zeros((1, HEAD_PAD), jnp.float32)
    hb2_pad = hb2_pad.at[0, :OUT_DIM].set(params["head_b2"])
    return dict(
        layers=layers,
        hw1_t=jnp.asarray(params["head_w1"].T, jnp.bfloat16),   # (H, 128)
        hb1=params["head_b1"].reshape(1, HEAD_HIDDEN).astype(jnp.float32),
        hw2_pad=hw2_pad.astype(jnp.bfloat16),
        hb2_pad=hb2_pad,
    )


# ----------------------------------------------------------------------------
# Full module forward (head1 branch is dead code in the reference -> omitted).
# ----------------------------------------------------------------------------
@jax.jit
def gru_model_forward(x, kparams):
    S, B, F = x.shape
    num_layers = len(kparams["layers"])
    H = kparams["layers"][0]["whh_t"].shape[0]

    B_pad = max(8, ((B + 7) // 8) * 8)                 # f32 sublane align
    x_pad = jnp.pad(x.astype(jnp.float32), ((0, 0), (0, B_pad - B), (0, 0)))
    x_flat = x_pad.reshape(S * B_pad, F)

    kernel_args = [x_flat]
    in_specs = [pl.BlockSpec((S * B_pad, F), lambda i: (0, 0))]
    for layer in kparams["layers"]:
        for name in ("wih_t", "whh_t", "b_comb", "b_hn"):
            arr = layer[name]
            kernel_args.append(arr)
            in_specs.append(pl.BlockSpec(arr.shape, lambda i: (0, 0)))
    for name in ("hw1_t", "hb1", "hw2_pad", "hb2_pad"):
        arr = kparams[name]
        kernel_args.append(arr)
        in_specs.append(pl.BlockSpec(arr.shape, lambda i: (0, 0)))

    out2d = pl.pallas_call(
        functools.partial(fused_gru_head_kernel,
                          S=S, B=B_pad, H=H, num_layers=num_layers),
        out_shape=jax.ShapeDtypeStruct((S * B_pad, HEAD_PAD), jnp.float32),
        grid=(1,),
        in_specs=in_specs,
        out_specs=pl.BlockSpec((S * B_pad, HEAD_PAD), lambda i: (0, 0)),
        scratch_shapes=[pltpu.VMEM((S * B_pad, 3 * H), jnp.float32)],
        compiler_params=pltpu.CompilerParams(
            dimension_semantics=("arbitrary",),
            vmem_limit_bytes=32 * 1024 * 1024),
    )(*kernel_args)

    out = out2d.reshape(S, B_pad, HEAD_PAD)[:, :B, :OUT_DIM]
    return jnp.squeeze(out)    # no-op for S, B > 1 (matches torch.squeeze)


# ----------------------------------------------------------------------------
# Pure-JAX reference (for correctness checking).  mxu_dtype=bfloat16 mimics the
# kernel's MXU operand dtype for a tight structural comparison.
# ----------------------------------------------------------------------------
def gru_model_ref(_x, params, mxu_dtype=None):
    def mdot(a, b):
        if mxu_dtype is not None:
            a = a.astype(mxu_dtype)
            b = b.astype(mxu_dtype)
        return jnp.dot(a, b, preferred_element_type=jnp.float32)

    h = _x
    for layer in params["gru_layers"]:
        S, B, _ = h.shape
        Hd = layer["w_hh"].shape[1]

        def step(hprev, x_t, lyr=layer, Hd=Hd):
            gi = mdot(x_t, lyr["w_ih"].T) + lyr["b_ih"]
            gh = mdot(hprev, lyr["w_hh"].T) + lyr["b_hh"]
            r = jax.nn.sigmoid(gi[:, :Hd] + gh[:, :Hd])
            z = jax.nn.sigmoid(gi[:, Hd:2 * Hd] + gh[:, Hd:2 * Hd])
            n = jnp.tanh(gi[:, 2 * Hd:] + r * gh[:, 2 * Hd:])
            hn = (1.0 - z) * n + z * hprev
            return hn, hn

        _, hs = jax.lax.scan(step, jnp.zeros((B, Hd), jnp.float32), h)
        h = hs
    o = jnp.maximum(mdot(h, params["head_w1"].T) + params["head_b1"], 0.0)
    o = mdot(o, params["head_w2"].T) + params["head_b2"]
    return jnp.squeeze(o)


def init_params(key, factors, num_layers):
    H = 16 * factors
    keys = jax.random.split(key, 4 * num_layers + 8)
    k = iter(keys)
    scale = 1.0 / np.sqrt(H)

    def u(kk, shape):
        return jax.random.uniform(kk, shape, jnp.float32, -scale, scale)

    gru_layers = []
    for layer in range(num_layers):
        in_dim = factors if layer == 0 else H
        gru_layers.append(dict(
            w_ih=u(next(k), (3 * H, in_dim)),
            w_hh=u(next(k), (3 * H, H)),
            b_ih=u(next(k), (3 * H,)),
            b_hh=u(next(k), (3 * H,)),
        ))

    params = dict(
        gru_layers=gru_layers,
        # head1 params exist in the module but its output is discarded in
        # forward(); kept here only for structural fidelity.
        head1_w1=u(next(k), (256, factors)),
        head1_b1=u(next(k), (256,)),
        head1_w2=u(next(k), (8, 256)),
        head1_b2=u(next(k), (8,)),
        head_w1=u(next(k), (128, H)),
        head_b1=u(next(k), (128,)),
        head_w2=u(next(k), (2, 128)),
        head_b2=u(next(k), (2,)),
    )
    return params


if __name__ == "__main__":
    S, B, factors = 8, 4, 8          # seq=8, batch=4, factors=8 -> hidden = 128
    num_layers = 2

    key = jax.random.PRNGKey(0)
    kx, kp = jax.random.split(key)
    _x = jax.random.normal(kx, (S, B, factors), jnp.float32)
    params = init_params(kp, factors, num_layers)

    kparams = prepare_kernel_params(params)      # one-time prep (transposes, bias folds, bf16)
    out = jax.block_until_ready(gru_model_forward(_x, kparams))

    # Tight check against a reference that uses the same bf16 MXU operand dtype.
    ref_bf16 = jax.block_until_ready(gru_model_ref(_x, params, mxu_dtype=jnp.bfloat16))
    np.testing.assert_allclose(np.asarray(out), np.asarray(ref_bf16), rtol=1e-2, atol=1e-2)

    # Loose check against the pure-f32 PyTorch-equivalent reference (bf16 MXU
    # inputs vs f32 reference -> relaxed tolerance per review).
    ref_f32 = jax.block_until_ready(gru_model_ref(_x, params))
    np.testing.assert_allclose(np.asarray(out), np.asarray(ref_f32), rtol=5e-2, atol=5e-2)

    assert out.shape == (S, B, 2), out.shape
    print("KERNEL_OK")
</pallas_src>

<mosaic_0001>
module attributes {stable_mosaic.version = 11 : i64} {
  func.func @fused_gru_head_kernel(%arg0: i32, %arg1: memref<64x8xf32, #tpu.memory_space<vmem>>, %arg2: memref<8x384xbf16, #tpu.memory_space<vmem>>, %arg3: memref<128x384xbf16, #tpu.memory_space<vmem>>, %arg4: memref<1x384xf32, #tpu.memory_space<vmem>>, %arg5: memref<1x128xf32, #tpu.memory_space<vmem>>, %arg6: memref<128x384xbf16, #tpu.memory_space<vmem>>, %arg7: memref<128x384xbf16, #tpu.memory_space<vmem>>, %arg8: memref<1x384xf32, #tpu.memory_space<vmem>>, %arg9: memref<1x128xf32, #tpu.memory_space<vmem>>, %arg10: memref<128x128xbf16, #tpu.memory_space<vmem>>, %arg11: memref<1x128xf32, #tpu.memory_space<vmem>>, %arg12: memref<128x128xbf16, #tpu.memory_space<vmem>>, %arg13: memref<1x128xf32, #tpu.memory_space<vmem>>, %arg14: memref<64x128xf32, #tpu.memory_space<vmem>>, %arg15: memref<64x384xf32, #tpu.memory_space<vmem>>) attributes {dimension_semantics = [#tpu.dimension_semantics<arbitrary>], iteration_bounds = array<i64: 1>, scalar_prefetch = 0 : i64, scratch_operands = 1 : i64, tpu.core_type = #tpu.core_type<tc>, window_params = [{pipeline_mode = #tpu.pipeline_mode<synchronous>, transform_indices = @transform_0, window_bounds = array<i64: 64, 8>}, {pipeline_mode = #tpu.pipeline_mode<synchronous>, transform_indices = @transform_1, window_bounds = array<i64: 8, 384>}, {pipeline_mode = #tpu.pipeline_mode<synchronous>, transform_indices = @transform_2, window_bounds = array<i64: 128, 384>}, {pipeline_mode = #tpu.pipeline_mode<synchronous>, transform_indices = @transform_3, window_bounds = array<i64: 1, 384>}, {pipeline_mode = #tpu.pipeline_mode<synchronous>, transform_indices = @transform_4, window_bounds = array<i64: 1, 128>}, {pipeline_mode = #tpu.pipeline_mode<synchronous>, transform_indices = @transform_5, window_bounds = array<i64: 128, 384>}, {pipeline_mode = #tpu.pipeline_mode<synchronous>, transform_indices = @transform_6, window_bounds = array<i64: 128, 384>}, {pipeline_mode = #tpu.pipeline_mode<synchronous>, transform_indices = @transform_7, window_bounds = array<i64: 1, 384>}, {pipeline_mode = #tpu.pipeline_mode<synchronous>, transform_indices = @transform_8, window_bounds = array<i64: 1, 128>}, {pipeline_mode = #tpu.pipeline_mode<synchronous>, transform_indices = @transform_9, window_bounds = array<i64: 128, 128>}, {pipeline_mode = #tpu.pipeline_mode<synchronous>, transform_indices = @transform_10, window_bounds = array<i64: 1, 128>}, {pipeline_mode = #tpu.pipeline_mode<synchronous>, transform_indices = @transform_11, window_bounds = array<i64: 128, 128>}, {pipeline_mode = #tpu.pipeline_mode<synchronous>, transform_indices = @transform_12, window_bounds = array<i64: 1, 128>}, {pipeline_mode = #tpu.pipeline_mode<synchronous>, transform_indices = @transform_13, window_bounds = array<i64: 64, 128>}]} {
    %c0 = arith.constant 0 : index
    %c0_0 = arith.constant 0 : index
    %0 = vector.load %arg1[%c0, %c0_0] : memref<64x8xf32, #tpu.memory_space<vmem>>, vector<64x8xf32>
    %1 = arith.truncf %0 : vector<64x8xf32> to vector<64x8xbf16>
    %c0_1 = arith.constant 0 : index
    %c0_2 = arith.constant 0 : index
    %2 = vector.load %arg2[%c0_1, %c0_2] : memref<8x384xbf16, #tpu.memory_space<vmem>>, vector<8x384xbf16>
    %cst = arith.constant dense<0.000000e+00> : vector<64x384xf32>
    %3 = tpu.matmul %1, %2, %cst {dimension_numbers = #tpu.dot_dimension_numbers<[1], [0], [0], [1], [0, 0, 1, 1], [], []>} : vector<64x8xbf16>, vector<8x384xbf16>, vector<64x384xf32> -> vector<64x384xf32>
    %c0_3 = arith.constant 0 : index
    %c0_4 = arith.constant 0 : index
    %4 = vector.load %arg4[%c0_3, %c0_4] : memref<1x384xf32, #tpu.memory_space<vmem>>, vector<1x384xf32>
    %5 = vector.broadcast %4 : vector<1x384xf32> to vector<64x384xf32>
    %6 = arith.addf %3, %5 : vector<64x384xf32>
    %c0_5 = arith.constant 0 : index
    %c0_6 = arith.constant 0 : index
    %7 = vector.load %arg15[%c0_5, %c0_6] : memref<64x384xf32, #tpu.memory_space<vmem>>, vector<64x384xf32>
    tpu.vector_store %arg15[%c0_5, %c0_6], %6 {strides = array<i32>} : memref<64x384xf32, #tpu.memory_space<vmem>>, vector<64x384xf32>,
    %c0_7 = arith.constant 0 : index
    %c0_8 = arith.constant 0 : index
    %8 = vector.load %arg5[%c0_7, %c0_8] : memref<1x128xf32, #tpu.memory_space<vmem>>, vector<1x128xf32>
    %9 = vector.shape_cast %8 : vector<1x128xf32> to vector<1x128xf32>
    %10 = vector.broadcast %9 : vector<1x128xf32> to vector<8x128xf32>
    %c0_9 = arith.constant 0 : index
    %c0_10 = arith.constant 0 : index
    %11 = vector.load %arg9[%c0_9, %c0_10] : memref<1x128xf32, #tpu.memory_space<vmem>>, vector<1x128xf32>
    %12 = vector.shape_cast %11 : vector<1x128xf32> to vector<1x128xf32>
    %13 = vector.broadcast %12 : vector<1x128xf32> to vector<8x128xf32>
    %c0_11 = arith.constant 0 : index
    %c0_12 = arith.constant 0 : index
    %14 = vector.load %arg8[%c0_11, %c0_12] : memref<1x384xf32, #tpu.memory_space<vmem>>, vector<1x384xf32>
    %15 = vector.shape_cast %14 : vector<1x384xf32> to vector<1x384xf32>
    %16 = vector.broadcast %15 : vector<1x384xf32> to vector<8x384xf32>
    %c0_13 = arith.constant 0 : index
    %c0_14 = arith.constant 0 : index
    %17 = vector.load %arg11[%c0_13, %c0_14] : memref<1x128xf32, #tpu.memory_space<vmem>>, vector<1x128xf32>
    %18 = vector.shape_cast %17 : vector<1x128xf32> to vector<1x128xf32>
    %19 = vector.broadcast %18 : vector<1x128xf32> to vector<8x128xf32>
    %c0_15 = arith.constant 0 : index
    %c0_16 = arith.constant 0 : index
    %20 = vector.load %arg13[%c0_15, %c0_16] : memref<1x128xf32, #tpu.memory_space<vmem>>, vector<1x128xf32>
    %21 = vector.shape_cast %20 : vector<1x128xf32> to vector<1x128xf32>
    %22 = vector.broadcast %21 : vector<1x128xf32> to vector<8x128xf32>
    %cst_17 = arith.constant 0.000000e+00 : f32
    %23 = vector.broadcast %cst_17 : f32 to vector<8x128xf32>
    %cst_18 = arith.constant 0.000000e+00 : f32
    %24 = vector.broadcast %cst_18 : f32 to vector<8x128xf32>
    %c0_19 = arith.constant 0 : index
    %c0_20 = arith.constant 0 : index
    %25 = vector.load %arg15[%c0_19, %c0_20] : memref<64x384xf32, #tpu.memory_space<vmem>>, vector<8x384xf32>
    %26 = arith.truncf %23 : vector<8x128xf32> to vector<8x128xbf16>
    %c0_21 = arith.constant 0 : index
    %c0_22 = arith.constant 0 : index
    %27 = vector.load %arg3[%c0_21, %c0_22] : memref<128x384xbf16, #tpu.memory_space<vmem>>, vector<128x384xbf16>
    %cst_23 = arith.constant dense<0.000000e+00> : vector<8x384xf32>
    %28 = tpu.matmul %26, %27, %cst_23 {dimension_numbers = #tpu.dot_dimension_numbers<[1], [0], [0], [1], [0, 0, 1, 1], [], []>} : vector<8x128xbf16>, vector<128x384xbf16>, vector<8x384xf32> -> vector<8x384xf32>
    %29 = vector.extract_strided_slice %25 {offsets = [0, 0], sizes = [8, 128], strides = [1, 1]} : vector<8x384xf32> to vector<8x128xf32>
    %30 = vector.extract_strided_slice %28 {offsets = [0, 0], sizes = [8, 128], strides = [1, 1]} : vector<8x384xf32> to vector<8x128xf32>
    %31 = arith.addf %29, %30 : vector<8x128xf32>
    %32 = arith.negf %31 : vector<8x128xf32>
    %33 = math.exp %32 : vector<8x128xf32>
    %cst_24 = arith.constant 1.000000e+00 : f32
    %34 = vector.broadcast %cst_24 : f32 to vector<8x128xf32>
    %35 = arith.addf %34, %33 : vector<8x128xf32>
    %36 = arith.divf %34, %35 : vector<8x128xf32>
    %37 = vector.extract_strided_slice %25 {offsets = [0, 128], sizes = [8, 128], strides = [1, 1]} : vector<8x384xf32> to vector<8x128xf32>
    %38 = vector.extract_strided_slice %28 {offsets = [0, 128], sizes = [8, 128], strides = [1, 1]} : vector<8x384xf32> to vector<8x128xf32>
    %39 = arith.addf %37, %38 : vector<8x128xf32>
    %40 = arith.negf %39 : vector<8x128xf32>
    %41 = math.exp %40 : vector<8x128xf32>
    %cst_25 = arith.constant 1.000000e+00 : f32
    %42 = vector.broadcast %cst_25 : f32 to vector<8x128xf32>
    %43 = arith.addf %42, %41 : vector<8x128xf32>
    %44 = arith.divf %42, %43 : vector<8x128xf32>
    %45 = vector.extract_strided_slice %25 {offsets = [0, 256], sizes = [8, 128], strides = [1, 1]} : vector<8x384xf32> to vector<8x128xf32>
    %46 = vector.extract_strided_slice %28 {offsets = [0, 256], sizes = [8, 128], strides = [1, 1]} : vector<8x384xf32> to vector<8x128xf32>
    %47 = arith.addf %46, %10 : vector<8x128xf32>
    %48 = arith.mulf %36, %47 : vector<8x128xf32>
    %49 = arith.addf %45, %48 : vector<8x128xf32>
    %50 = math.tanh %49 : vector<8x128xf32>
    %cst_26 = arith.constant 1.000000e+00 : f32
    %51 = vector.broadcast %cst_26 : f32 to vector<8x128xf32>
    %52 = arith.subf %51, %44 : vector<8x128xf32>
    %53 = arith.mulf %52, %50 : vector<8x128xf32>
    %54 = arith.mulf %44, %23 : vector<8x128xf32>
    %55 = arith.addf %53, %54 : vector<8x128xf32>
    %56 = arith.truncf %55 : vector<8x128xf32> to vector<8x128xbf16>
    %c0_27 = arith.constant 0 : index
    %c0_28 = arith.constant 0 : index
    %57 = vector.load %arg6[%c0_27, %c0_28] : memref<128x384xbf16, #tpu.memory_space<vmem>>, vector<128x384xbf16>
    %cst_29 = arith.constant dense<0.000000e+00> : vector<8x384xf32>
    %58 = tpu.matmul %56, %57, %cst_29 {dimension_numbers = #tpu.dot_dimension_numbers<[1], [0], [0], [1], [0, 0, 1, 1], [], []>} : vector<8x128xbf16>, vector<128x384xbf16>, vector<8x384xf32> -> vector<8x384xf32>
    %59 = arith.addf %58, %16 : vector<8x384xf32>
    %60 = arith.truncf %24 : vector<8x128xf32> to vector<8x128xbf16>
    %c0_30 = arith.constant 0 : index
    %c0_31 = arith.constant 0 : index
    %61 = vector.load %arg7[%c0_30, %c0_31] : memref<128x384xbf16, #tpu.memory_space<vmem>>, vector<128x384xbf16>
    %cst_32 = arith.constant dense<0.000000e+00> : vector<8x384xf32>
    %62 = tpu.matmul %60, %61, %cst_32 {dimension_numbers = #tpu.dot_dimension_numbers<[1], [0], [0], [1], [0, 0, 1, 1], [], []>} : vector<8x128xbf16>, vector<128x384xbf16>, vector<8x384xf32> -> vector<8x384xf32>
    %63 = vector.extract_strided_slice %59 {offsets = [0, 0], sizes = [8, 128], strides = [1, 1]} : vector<8x384xf32> to vector<8x128xf32>
    %64 = vector.extract_strided_slice %62 {offsets = [0, 0], sizes = [8, 128], strides = [1, 1]} : vector<8x384xf32> to vector<8x128xf32>
    %65 = arith.addf %63, %64 : vector<8x128xf32>
    %66 = arith.negf %65 : vector<8x128xf32>
    %67 = math.exp %66 : vector<8x128xf32>
    %cst_33 = arith.constant 1.000000e+00 : f32
    %68 = vector.broadcast %cst_33 : f32 to vector<8x128xf32>
    %69 = arith.addf %68, %67 : vector<8x128xf32>
    %70 = arith.divf %68, %69 : vector<8x128xf32>
    %71 = vector.extract_strided_slice %59 {offsets = [0, 128], sizes = [8, 128], strides = [1, 1]} : vector<8x384xf32> to vector<8x128xf32>
    %72 = vector.extract_strided_slice %62 {offsets = [0, 128], sizes = [8, 128], strides = [1, 1]} : vector<8x384xf32> to vector<8x128xf32>
    %73 = arith.addf %71, %72 : vector<8x128xf32>
    %74 = arith.negf %73 : vector<8x128xf32>
    %75 = math.exp %74 : vector<8x128xf32>
    %cst_34 = arith.constant 1.000000e+00 : f32
    %76 = vector.broadcast %cst_34 : f32 to vector<8x128xf32>
    %77 = arith.addf %76, %75 : vector<8x128xf32>
    %78 = arith.divf %76, %77 : vector<8x128xf32>
    %79 = vector.extract_strided_slice %59 {offsets = [0, 256], sizes = [8, 128], strides = [1, 1]} : vector<8x384xf32> to vector<8x128xf32>
    %80 = vector.extract_strided_slice %62 {offsets = [0, 256], sizes = [8, 128], strides = [1, 1]} : vector<8x384xf32> to vector<8x128xf32>
    %81 = arith.addf %80, %13 : vector<8x128xf32>
    %82 = arith.mulf %70, %81 : vector<8x128xf32>
    %83 = arith.addf %79, %82 : vector<8x128xf32>
    %84 = math.tanh %83 : vector<8x128xf32>
    %cst_35 = arith.constant 1.000000e+00 : f32
    %85 = vector.broadcast %cst_35 : f32 to vector<8x128xf32>
    %86 = arith.subf %85, %78 : vector<8x128xf32>
    %87 = arith.mulf %86, %84 : vector<8x128xf32>
    %88 = arith.mulf %78, %24 : vector<8x128xf32>
    %89 = arith.addf %87, %88 : vector<8x128xf32>
    %90 = arith.truncf %89 : vector<8x128xf32> to vector<8x128xbf16>
    %c0_36 = arith.constant 0 : index
    %c0_37 = arith.constant 0 : index
    %91 = vector.load %arg10[%c0_36, %c0_37] : memref<128x128xbf16, #tpu.memory_space<vmem>>, vector<128x128xbf16>
    %cst_38 = arith.constant dense<0.000000e+00> : vector<8x128xf32>
    %92 = tpu.matmul %90, %91, %cst_38 {dimension_numbers = #tpu.dot_dimension_numbers<[1], [0], [0], [1], [0, 0, 1, 1], [], []>} : vector<8x128xbf16>, vector<128x128xbf16>, vector<8x128xf32> -> vector<8x128xf32>
    %93 = arith.addf %92, %19 : vector<8x128xf32>
    %cst_39 = arith.constant 0.000000e+00 : f32
    %94 = vector.broadcast %cst_39 : f32 to vector<8x128xf32>
    %95 = arith.maximumf %93, %94 : vector<8x128xf32>
    %96 = arith.truncf %95 : vector<8x128xf32> to vector<8x128xbf16>
    %c0_40 = arith.constant 0 : index
    %c0_41 = arith.constant 0 : index
    %97 = vector.load %arg12[%c0_40, %c0_41] : memref<128x128xbf16, #tpu.memory_space<vmem>>, vector<128x128xbf16>
    %cst_42 = arith.constant dense<0.000000e+00> : vector<8x128xf32>
    %98 = tpu.matmul %96, %97, %cst_42 {dimension_numbers = #tpu.dot_dimension_numbers<[1], [0], [0], [1], [0, 0, 1, 1], [], []>} : vector<8x128xbf16>, vector<128x128xbf16>, vector<8x128xf32> -> vector<8x128xf32>
    %99 = arith.addf %98, %22 : vector<8x128xf32>
    %c0_43 = arith.constant 0 : index
    %c0_44 = arith.constant 0 : index
    %100 = vector.load %arg14[%c0_43, %c0_44] : memref<64x128xf32, #tpu.memory_space<vmem>>, vector<8x128xf32>
    tpu.vector_store %arg14[%c0_43, %c0_44], %99 {strides = array<i32>} : memref<64x128xf32, #tpu.memory_space<vmem>>, vector<8x128xf32>,
    %c8 = arith.constant 8 : index
    %c0_45 = arith.constant 0 : index
    %101 = vector.load %arg15[%c8, %c0_45] : memref<64x384xf32, #tpu.memory_space<vmem>>, vector<8x384xf32>
    %102 = arith.truncf %55 : vector<8x128xf32> to vector<8x128xbf16>
    %c0_46 = arith.constant 0 : index
    %c0_47 = arith.constant 0 : index
    %103 = vector.load %arg3[%c0_46, %c0_47] : memref<128x384xbf16, #tpu.memory_space<vmem>>, vector<128x384xbf16>
    %cst_48 = arith.constant dense<0.000000e+00> : vector<8x384xf32>
    %104 = tpu.matmul %102, %103, %cst_48 {dimension_numbers = #tpu.dot_dimension_numbers<[1], [0], [0], [1], [0, 0, 1, 1], [], []>} : vector<8x128xbf16>, vector<128x384xbf16>, vector<8x384xf32> -> vector<8x384xf32>
    %105 = vector.extract_strided_slice %101 {offsets = [0, 0], sizes = [8, 128], strides = [1, 1]} : vector<8x384xf32> to vector<8x128xf32>
    %106 = vector.extract_strided_slice %104 {offsets = [0, 0], sizes = [8, 128], strides = [1, 1]} : vector<8x384xf32> to vector<8x128xf32>
    %107 = arith.addf %105, %106 : vector<8x128xf32>
    %108 = arith.negf %107 : vector<8x128xf32>
    %109 = math.exp %108 : vector<8x128xf32>
    %cst_49 = arith.constant 1.000000e+00 : f32
    %110 = vector.broadcast %cst_49 : f32 to vector<8x128xf32>
    %111 = arith.addf %110, %109 : vector<8x128xf32>
    %112 = arith.divf %110, %111 : vector<8x128xf32>
    %113 = vector.extract_strided_slice %101 {offsets = [0, 128], sizes = [8, 128], strides = [1, 1]} : vector<8x384xf32> to vector<8x128xf32>
    %114 = vector.extract_strided_slice %104 {offsets = [0, 128], sizes = [8, 128], strides = [1, 1]} : vector<8x384xf32> to vector<8x128xf32>
    %115 = arith.addf %113, %114 : vector<8x128xf32>
    %116 = arith.negf %115 : vector<8x128xf32>
    %117 = math.exp %116 : vector<8x128xf32>
    %cst_50 = arith.constant 1.000000e+00 : f32
    %118 = vector.broadcast %cst_50 : f32 to vector<8x128xf32>
    %119 = arith.addf %118, %117 : vector<8x128xf32>
    %120 = arith.divf %118, %119 : vector<8x128xf32>
    %121 = vector.extract_strided_slice %101 {offsets = [0, 256], sizes = [8, 128], strides = [1, 1]} : vector<8x384xf32> to vector<8x128xf32>
    %122 = vector.extract_strided_slice %104 {offsets = [0, 256], sizes = [8, 128], strides = [1, 1]} : vector<8x384xf32> to vector<8x128xf32>
    %123 = arith.addf %122, %10 : vector<8x128xf32>
    %124 = arith.mulf %112, %123 : vector<8x128xf32>
    %125 = arith.addf %121, %124 : vector<8x128xf32>
    %126 = math.tanh %125 : vector<8x128xf32>
    %cst_51 = arith.constant 1.000000e+00 : f32
    %127 = vector.broadcast %cst_51 : f32 to vector<8x128xf32>
    %128 = arith.subf %127, %120 : vector<8x128xf32>
    %129 = arith.mulf %128, %126 : vector<8x128xf32>
    %130 = arith.mulf %120, %55 : vector<8x128xf32>
    %131 = arith.addf %129, %130 : vector<8x128xf32>
    %132 = arith.truncf %131 : vector<8x128xf32> to vector<8x128xbf16>
    %c0_52 = arith.constant 0 : index
    %c0_53 = arith.constant 0 : index
    %133 = vector.load %arg6[%c0_52, %c0_53] : memref<128x384xbf16, #tpu.memory_space<vmem>>, vector<128x384xbf16>
    %cst_54 = arith.constant dense<0.000000e+00> : vector<8x384xf32>
    %134 = tpu.matmul %132, %133, %cst_54 {dimension_numbers = #tpu.dot_dimension_numbers<[1], [0], [0], [1], [0, 0, 1, 1], [], []>} : vector<8x128xbf16>, vector<128x384xbf16>, vector<8x384xf32> -> vector<8x384xf32>
    %135 = arith.addf %134, %16 : vector<8x384xf32>
    %136 = arith.truncf %89 : vector<8x128xf32> to vector<8x128xbf16>
    %c0_55 = arith.constant 0 : index
    %c0_56 = arith.constant 0 : index
    %137 = vector.load %arg7[%c0_55, %c0_56] : memref<128x384xbf16, #tpu.memory_space<vmem>>, vector<128x384xbf16>
    %cst_57 = arith.constant dense<0.000000e+00> : vector<8x384xf32>
    %138 = tpu.matmul %136, %137, %cst_57 {dimension_numbers = #tpu.dot_dimension_numbers<[1], [0], [0], [1], [0, 0, 1, 1], [], []>} : vector<8x128xbf16>, vector<128x384xbf16>, vector<8x384xf32> -> vector<8x384xf32>
    %139 = vector.extract_strided_slice %135 {offsets = [0, 0], sizes = [8, 128], strides = [1, 1]} : vector<8x384xf32> to vector<8x128xf32>
    %140 = vector.extract_strided_slice %138 {offsets = [0, 0], sizes = [8, 128], strides = [1, 1]} : vector<8x384xf32> to vector<8x128xf32>
    %141 = arith.addf %139, %140 : vector<8x128xf32>
    %142 = arith.negf %141 : vector<8x128xf32>
    %143 = math.exp %142 : vector<8x128xf32>
    %cst_58 = arith.constant 1.000000e+00 : f32
    %144 = vector.broadcast %cst_58 : f32 to vector<8x128xf32>
    %145 = arith.addf %144, %143 : vector<8x128xf32>
    %146 = arith.divf %144, %145 : vector<8x128xf32>
    %147 = vector.extract_strided_slice %135 {offsets = [0, 128], sizes = [8, 128], strides = [1, 1]} : vector<8x384xf32> to vector<8x128xf32>
    %148 = vector.extract_strided_slice %138 {offsets = [0, 128], sizes = [8, 128], strides = [1, 1]} : vector<8x384xf32> to vector<8x128xf32>
    %149 = arith.addf %147, %148 : vector<8x128xf32>
    %150 = arith.negf %149 : vector<8x128xf32>
    %151 = math.exp %150 : vector<8x128xf32>
    %cst_59 = arith.constant 1.000000e+00 : f32
    %152 = vector.broadcast %cst_59 : f32 to vector<8x128xf32>
    %153 = arith.addf %152, %151 : vector<8x128xf32>
    %154 = arith.divf %152, %153 : vector<8x128xf32>
    %155 = vector.extract_strided_slice %135 {offsets = [0, 256], sizes = [8, 128], strides = [1, 1]} : vector<8x384xf32> to vector<8x128xf32>
    %156 = vector.extract_strided_slice %138 {offsets = [0, 256], sizes = [8, 128], strides = [1, 1]} : vector<8x384xf32> to vector<8x128xf32>
    %157 = arith.addf %156, %13 : vector<8x128xf32>
    %158 = arith.mulf %146, %157 : vector<8x128xf32>
    %159 = arith.addf %155, %158 : vector<8x128xf32>
    %160 = math.tanh %159 : vector<8x128xf32>
    %cst_60 = arith.constant 1.000000e+00 : f32
    %161 = vector.broadcast %cst_60 : f32 to vector<8x128xf32>
    %162 = arith.subf %161, %154 : vector<8x128xf32>
    %163 = arith.mulf %162, %160 : vector<8x128xf32>
    %164 = arith.mulf %154, %89 : vector<8x128xf32>
    %165 = arith.addf %163, %164 : vector<8x128xf32>
    %166 = arith.truncf %165 : vector<8x128xf32> to vector<8x128xbf16>
    %c0_61 = arith.constant 0 : index
    %c0_62 = arith.constant 0 : index
    %167 = vector.load %arg10[%c0_61, %c0_62] : memref<128x128xbf16, #tpu.memory_space<vmem>>, vector<128x128xbf16>
    %cst_63 = arith.constant dense<0.000000e+00> : vector<8x128xf32>
    %168 = tpu.matmul %166, %167, %cst_63 {dimension_numbers = #tpu.dot_dimension_numbers<[1], [0], [0], [1], [0, 0, 1, 1], [], []>} : vector<8x128xbf16>, vector<128x128xbf16>, vector<8x128xf32> -> vector<8x128xf32>
    %169 = arith.addf %168, %19 : vector<8x128xf32>
    %cst_64 = arith.constant 0.000000e+00 : f32
    %170 = vector.broadcast %cst_64 : f32 to vector<8x128xf32>
    %171 = arith.maximumf %169, %170 : vector<8x128xf32>
    %172 = arith.truncf %171 : vector<8x128xf32> to vector<8x128xbf16>
    %c0_65 = arith.constant 0 : index
    %c0_66 = arith.constant 0 : index
    %173 = vector.load %arg12[%c0_65, %c0_66] : memref<128x128xbf16, #tpu.memory_space<vmem>>, vector<128x128xbf16>
    %cst_67 = arith.constant dense<0.000000e+00> : vector<8x128xf32>
    %174 = tpu.matmul %172, %173, %cst_67 {dimension_numbers = #tpu.dot_dimension_numbers<[1], [0], [0], [1], [0, 0, 1, 1], [], []>} : vector<8x128xbf16>, vector<128x128xbf16>, vector<8x128xf32> -> vector<8x128xf32>
    %175 = arith.addf %174, %22 : vector<8x128xf32>
    %c8_68 = arith.constant 8 : index
    %c0_69 = arith.constant 0 : index
    %176 = vector.load %arg14[%c8_68, %c0_69] : memref<64x128xf32, #tpu.memory_space<vmem>>, vector<8x128xf32>
    tpu.vector_store %arg14[%c8_68, %c0_69], %175 {strides = array<i32>} : memref<64x128xf32, #tpu.memory_space<vmem>>, vector<8x128xf32>,
    %c16 = arith.constant 16 : index
    %c0_70 = arith.constant 0 : index
    %177 = vector.load %arg15[%c16, %c0_70] : memref<64x384xf32, #tpu.memory_space<vmem>>, vector<8x384xf32>
    %178 = arith.truncf %131 : vector<8x128xf32> to vector<8x128xbf16>
    %c0_71 = arith.constant 0 : index
    %c0_72 = arith.constant 0 : index
    %179 = vector.load %arg3[%c0_71, %c0_72] : memref<128x384xbf16, #tpu.memory_space<vmem>>, vector<128x384xbf16>
    %cst_73 = arith.constant dense<0.000000e+00> : vector<8x384xf32>
    %180 = tpu.matmul %178, %179, %cst_73 {dimension_numbers = #tpu.dot_dimension_numbers<[1], [0], [0], [1], [0, 0, 1, 1], [], []>} : vector<8x128xbf16>, vector<128x384xbf16>, vector<8x384xf32> -> vector<8x384xf32>
    %181 = vector.extract_strided_slice %177 {offsets = [0, 0], sizes = [8, 128], strides = [1, 1]} : vector<8x384xf32> to vector<8x128xf32>
    %182 = vector.extract_strided_slice %180 {offsets = [0, 0], sizes = [8, 128], strides = [1, 1]} : vector<8x384xf32> to vector<8x128xf32>
    %183 = arith.addf %181, %182 : vector<8x128xf32>
    %184 = arith.negf %183 : vector<8x128xf32>
    %185 = math.exp %184 : vector<8x128xf32>
    %cst_74 = arith.constant 1.000000e+00 : f32
    %186 = vector.broadcast %cst_74 : f32 to vector<8x128xf32>
    %187 = arith.addf %186, %185 : vector<8x128xf32>
    %188 = arith.divf %186, %187 : vector<8x128xf32>
    %189 = vector.extract_strided_slice %177 {offsets = [0, 128], sizes = [8, 128], strides = [1, 1]} : vector<8x384xf32> to vector<8x128xf32>
    %190 = vector.extract_strided_slice %180 {offsets = [0, 128], sizes = [8, 128], strides = [1, 1]} : vector<8x384xf32> to vector<8x128xf32>
    %191 = arith.addf %189, %190 : vector<8x128xf32>
    %192 = arith.negf %191 : vector<8x128xf32>
    %193 = math.exp %192 : vector<8x128xf32>
    %cst_75 = arith.constant 1.000000e+00 : f32
    %194 = vector.broadcast %cst_75 : f32 to vector<8x128xf32>
    %195 = arith.addf %194, %193 : vector<8x128xf32>
    %196 = arith.divf %194, %195 : vector<8x128xf32>
    %197 = vector.extract_strided_slice %177 {offsets = [0, 256], sizes = [8, 128], strides = [1, 1]} : vector<8x384xf32> to vector<8x128xf32>
    %198 = vector.extract_strided_slice %180 {offsets = [0, 256], sizes = [8, 128], strides = [1, 1]} : vector<8x384xf32> to vector<8x128xf32>
    %199 = arith.addf %198, %10 : vector<8x128xf32>
    %200 = arith.mulf %188, %199 : vector<8x128xf32>
    %201 = arith.addf %197, %200 : vector<8x128xf32>
    %202 = math.tanh %201 : vector<8x128xf32>
    %cst_76 = arith.constant 1.000000e+00 : f32
    %203 = vector.broadcast %cst_76 : f32 to vector<8x128xf32>
    %204 = arith.subf %203, %196 : vector<8x128xf32>
    %205 = arith.mulf %204, %202 : vector<8x128xf32>
    %206 = arith.mulf %196, %131 : vector<8x128xf32>
    %207 = arith.addf %205, %206 : vector<8x128xf32>
    %208 = arith.truncf %207 : vector<8x128xf32> to vector<8x128xbf16>
    %c0_77 = arith.constant 0 : index
    %c0_78 = arith.constant 0 : index
    %209 = vector.load %arg6[%c0_77, %c0_78] : memref<128x384xbf16, #tpu.memory_space<vmem>>, vector<128x384xbf16>
    %cst_79 = arith.constant dense<0.000000e+00> : vector<8x384xf32>
    %210 = tpu.matmul %208, %209, %cst_79 {dimension_numbers = #tpu.dot_dimension_numbers<[1], [0], [0], [1], [0, 0, 1, 1], [], []>} : vector<8x128xbf16>, vector<128x384xbf16>, vector<8x384xf32> -> vector<8x384xf32>
    %211 = arith.addf %210, %16 : vector<8x384xf32>
    %212 = arith.truncf %165 : vector<8x128xf32> to vector<8x128xbf16>
    %c0_80 = arith.constant 0 : index
    %c0_81 = arith.constant 0 : index
    %213 = vector.load %arg7[%c0_80, %c0_81] : memref<128x384xbf16, #tpu.memory_space<vmem>>, vector<128x384xbf16>
    %cst_82 = arith.constant dense<0.000000e+00> : vector<8x384xf32>
    %214 = tpu.matmul %212, %213, %cst_82 {dimension_numbers = #tpu.dot_dimension_numbers<[1], [0], [0], [1], [0, 0, 1, 1], [], []>} : vector<8x128xbf16>, vector<128x384xbf16>, vector<8x384xf32> -> vector<8x384xf32>
    %215 = vector.extract_strided_slice %211 {offsets = [0, 0], sizes = [8, 128], strides = [1, 1]} : vector<8x384xf32> to vector<8x128xf32>
    %216 = vector.extract_strided_slice %214 {offsets = [0, 0], sizes = [8, 128], strides = [1, 1]} : vector<8x384xf32> to vector<8x128xf32>
    %217 = arith.addf %215, %216 : vector<8x128xf32>
    %218 = arith.negf %217 : vector<8x128xf32>
    %219 = math.exp %218 : vector<8x128xf32>
    %cst_83 = arith.constant 1.000000e+00 : f32
    %220 = vector.broadcast %cst_83 : f32 to vector<8x128xf32>
    %221 = arith.addf %220, %219 : vector<8x128xf32>
    %222 = arith.divf %220, %221 : vector<8x128xf32>
    %223 = vector.extract_strided_slice %211 {offsets = [0, 128], sizes = [8, 128], strides = [1, 1]} : vector<8x384xf32> to vector<8x128xf32>
    %224 = vector.extract_strided_slice %214 {offsets = [0, 128], sizes = [8, 128], strides = [1, 1]} : vector<8x384xf32> to vector<8x128xf32>
    %225 = arith.addf %223, %224 : vector<8x128xf32>
    %226 = arith.negf %225 : vector<8x128xf32>
    %227 = math.exp %226 : vector<8x128xf32>
    %cst_84 = arith.constant 1.000000e+00 : f32
    %228 = vector.broadcast %cst_84 : f32 to vector<8x128xf32>
    %229 = arith.addf %228, %227 : vector<8x128xf32>
    %230 = arith.divf %228, %229 : vector<8x128xf32>
    %231 = vector.extract_strided_slice %211 {offsets = [0, 256], sizes = [8, 128], strides = [1, 1]} : vector<8x384xf32> to vector<8x128xf32>
    %232 = vector.extract_strided_slice %214 {offsets = [0, 256], sizes = [8, 128], strides = [1, 1]} : vector<8x384xf32> to vector<8x128xf32>
    %233 = arith.addf %232, %13 : vector<8x128xf32>
    %234 = arith.mulf %222, %233 : vector<8x128xf32>
    %235 = arith.addf %231, %234 : vector<8x128xf32>
    %236 = math.tanh %235 : vector<8x128xf32>
    %cst_85 = arith.constant 1.000000e+00 : f32
    %237 = vector.broadcast %cst_85 : f32 to vector<8x128xf32>
    %238 = arith.subf %237, %230 : vector<8x128xf32>
    %239 = arith.mulf %238, %236 : vector<8x128xf32>
    %240 = arith.mulf %230, %165 : vector<8x128xf32>
    %241 = arith.addf %239, %240 : vector<8x128xf32>
    %242 = arith.truncf %241 : vector<8x128xf32> to vector<8x128xbf16>
    %c0_86 = arith.constant 0 : index
    %c0_87 = arith.constant 0 : index
    %243 = vector.load %arg10[%c0_86, %c0_87] : memref<128x128xbf16, #tpu.memory_space<vmem>>, vector<128x128xbf16>
    %cst_88 = arith.constant dense<0.000000e+00> : vector<8x128xf32>
    %244 = tpu.matmul %242, %243, %cst_88 {dimension_numbers = #tpu.dot_dimension_numbers<[1], [0], [0], [1], [0, 0, 1, 1], [], []>} : vector<8x128xbf16>, vector<128x128xbf16>, vector<8x128xf32> -> vector<8x128xf32>
    %245 = arith.addf %244, %19 : vector<8x128xf32>
    %cst_89 = arith.constant 0.000000e+00 : f32
    %246 = vector.broadcast %cst_89 : f32 to vector<8x128xf32>
    %247 = arith.maximumf %245, %246 : vector<8x128xf32>
    %248 = arith.truncf %247 : vector<8x128xf32> to vector<8x128xbf16>
    %c0_90 = arith.constant 0 : index
    %c0_91 = arith.constant 0 : index
    %249 = vector.load %arg12[%c0_90, %c0_91] : memref<128x128xbf16, #tpu.memory_space<vmem>>, vector<128x128xbf16>
    %cst_92 = arith.constant dense<0.000000e+00> : vector<8x128xf32>
    %250 = tpu.matmul %248, %249, %cst_92 {dimension_numbers = #tpu.dot_dimension_numbers<[1], [0], [0], [1], [0, 0, 1, 1], [], []>} : vector<8x128xbf16>, vector<128x128xbf16>, vector<8x128xf32> -> vector<8x128xf32>
    %251 = arith.addf %250, %22 : vector<8x128xf32>
    %c16_93 = arith.constant 16 : index
    %c0_94 = arith.constant 0 : index
    %252 = vector.load %arg14[%c16_93, %c0_94] : memref<64x128xf32, #tpu.memory_space<vmem>>, vector<8x128xf32>
    tpu.vector_store %arg14[%c16_93, %c0_94], %251 {strides = array<i32>} : memref<64x128xf32, #tpu.memory_space<vmem>>, vector<8x128xf32>,
    %c24 = arith.constant 24 : index
    %c0_95 = arith.constant 0 : index
    %253 = vector.load %arg15[%c24, %c0_95] : memref<64x384xf32, #tpu.memory_space<vmem>>, vector<8x384xf32>
    %254 = arith.truncf %207 : vector<8x128xf32> to vector<8x128xbf16>
    %c0_96 = arith.constant 0 : index
    %c0_97 = arith.constant 0 : index
    %255 = vector.load %arg3[%c0_96, %c0_97] : memref<128x384xbf16, #tpu.memory_space<vmem>>, vector<128x384xbf16>
    %cst_98 = arith.constant dense<0.000000e+00> : vector<8x384xf32>
    %256 = tpu.matmul %254, %255, %cst_98 {dimension_numbers = #tpu.dot_dimension_numbers<[1], [0], [0], [1], [0, 0, 1, 1], [], []>} : vector<8x128xbf16>, vector<128x384xbf16>, vector<8x384xf32> -> vector<8x384xf32>
    %257 = vector.extract_strided_slice %253 {offsets = [0, 0], sizes = [8, 128], strides = [1, 1]} : vector<8x384xf32> to vector<8x128xf32>
    %258 = vector.extract_strided_slice %256 {offsets = [0, 0], sizes = [8, 128], strides = [1, 1]} : vector<8x384xf32> to vector<8x128xf32>
    %259 = arith.addf %257, %258 : vector<8x128xf32>
    %260 = arith.negf %259 : vector<8x128xf32>
    %261 = math.exp %260 : vector<8x128xf32>
    %cst_99 = arith.constant 1.000000e+00 : f32
    %262 = vector.broadcast %cst_99 : f32 to vector<8x128xf32>
    %263 = arith.addf %262, %261 : vector<8x128xf32>
    %264 = arith.divf %262, %263 : vector<8x128xf32>
    %265 = vector.extract_strided_slice %253 {offsets = [0, 128], sizes = [8, 128], strides = [1, 1]} : vector<8x384xf32> to vector<8x128xf32>
    %266 = vector.extract_strided_slice %256 {offsets = [0, 128], sizes = [8, 128], strides = [1, 1]} : vector<8x384xf32> to vector<8x128xf32>
    %267 = arith.addf %265, %266 : vector<8x128xf32>
    %268 = arith.negf %267 : vector<8x128xf32>
    %269 = math.exp %268 : vector<8x128xf32>
    %cst_100 = arith.constant 1.000000e+00 : f32
    %270 = vector.broadcast %cst_100 : f32 to vector<8x128xf32>
    %271 = arith.addf %270, %269 : vector<8x128xf32>
    %272 = arith.divf %270, %271 : vector<8x128xf32>
    %273 = vector.extract_strided_slice %253 {offsets = [0, 256], sizes = [8, 128], strides = [1, 1]} : vector<8x384xf32> to vector<8x128xf32>
    %274 = vector.extract_strided_slice %256 {offsets = [0, 256], sizes = [8, 128], strides = [1, 1]} : vector<8x384xf32> to vector<8x128xf32>
    %275 = arith.addf %274, %10 : vector<8x128xf32>
    %276 = arith.mulf %264, %275 : vector<8x128xf32>
    %277 = arith.addf %273, %276 : vector<8x128xf32>
    %278 = math.tanh %277 : vector<8x128xf32>
    %cst_101 = arith.constant 1.000000e+00 : f32
    %279 = vector.broadcast %cst_101 : f32 to vector<8x128xf32>
    %280 = arith.subf %279, %272 : vector<8x128xf32>
    %281 = arith.mulf %280, %278 : vector<8x128xf32>
    %282 = arith.mulf %272, %207 : vector<8x128xf32>
    %283 = arith.addf %281, %282 : vector<8x128xf32>
    %284 = arith.truncf %283 : vector<8x128xf32> to vector<8x128xbf16>
    %c0_102 = arith.constant 0 : index
    %c0_103 = arith.constant 0 : index
    %285 = vector.load %arg6[%c0_102, %c0_103] : memref<128x384xbf16, #tpu.memory_space<vmem>>, vector<128x384xbf16>
    %cst_104 = arith.constant dense<0.000000e+00> : vector<8x384xf32>
    %286 = tpu.matmul %284, %285, %cst_104 {dimension_numbers = #tpu.dot_dimension_numbers<[1], [0], [0], [1], [0, 0, 1, 1], [], []>} : vector<8x128xbf16>, vector<128x384xbf16>, vector<8x384xf32> -> vector<8x384xf32>
    %287 = arith.addf %286, %16 : vector<8x384xf32>
    %288 = arith.truncf %241 : vector<8x128xf32> to vector<8x128xbf16>
    %c0_105 = arith.constant 0 : index
    %c0_106 = arith.constant 0 : index
    %289 = vector.load %arg7[%c0_105, %c0_106] : memref<128x384xbf16, #tpu.memory_space<vmem>>, vector<128x384xbf16>
    %cst_107 = arith.constant dense<0.000000e+00> : vector<8x384xf32>
    %290 = tpu.matmul %288, %289, %cst_107 {dimension_numbers = #tpu.dot_dimension_numbers<[1], [0], [0], [1], [0, 0, 1, 1], [], []>} : vector<8x128xbf16>, vector<128x384xbf16>, vector<8x384xf32> -> vector<8x384xf32>
    %291 = vector.extract_strided_slice %287 {offsets = [0, 0], sizes = [8, 128], strides = [1, 1]} : vector<8x384xf32> to vector<8x128xf32>
    %292 = vector.extract_strided_slice %290 {offsets = [0, 0], sizes = [8, 128], strides = [1, 1]} : vector<8x384xf32> to vector<8x128xf32>
    %293 = arith.addf %291, %292 : vector<8x128xf32>
    %294 = arith.negf %293 : vector<8x128xf32>
    %295 = math.exp %294 : vector<8x128xf32>
    %cst_108 = arith.constant 1.000000e+00 : f32
    %296 = vector.broadcast %cst_108 : f32 to vector<8x128xf32>
    %297 = arith.addf %296, %295 : vector<8x128xf32>
    %298 = arith.divf %296, %297 : vector<8x128xf32>
    %299 = vector.extract_strided_slice %287 {offsets = [0, 128], sizes = [8, 128], strides = [1, 1]} : vector<8x384xf32> to vector<8x128xf32>
    %300 = vector.extract_strided_slice %290 {offsets = [0, 128], sizes = [8, 128], strides = [1, 1]} : vector<8x384xf32> to vector<8x128xf32>
    %301 = arith.addf %299, %300 : vector<8x128xf32>
    %302 = arith.negf %301 : vector<8x128xf32>
    %303 = math.exp %302 : vector<8x128xf32>
    %cst_109 = arith.constant 1.000000e+00 : f32
    %304 = vector.broadcast %cst_109 : f32 to vector<8x128xf32>
    %305 = arith.addf %304, %303 : vector<8x128xf32>
    %306 = arith.divf %304, %305 : vector<8x128xf32>
    %307 = vector.extract_strided_slice %287 {offsets = [0, 256], sizes = [8, 128], strides = [1, 1]} : vector<8x384xf32> to vector<8x128xf32>
    %308 = vector.extract_strided_slice %290 {offsets = [0, 256], sizes = [8, 128], strides = [1, 1]} : vector<8x384xf32> to vector<8x128xf32>
    %309 = arith.addf %308, %13 : vector<8x128xf32>
    %310 = arith.mulf %298, %309 : vector<8x128xf32>
    %311 = arith.addf %307, %310 : vector<8x128xf32>
    %312 = math.tanh %311 : vector<8x128xf32>
    %cst_110 = arith.constant 1.000000e+00 : f32
    %313 = vector.broadcast %cst_110 : f32 to vector<8x128xf32>
    %314 = arith.subf %313, %306 : vector<8x128xf32>
    %315 = arith.mulf %314, %312 : vector<8x128xf32>
    %316 = arith.mulf %306, %241 : vector<8x128xf32>
    %317 = arith.addf %315, %316 : vector<8x128xf32>
    %318 = arith.truncf %317 : vector<8x128xf32> to vector<8x128xbf16>
    %c0_111 = arith.constant 0 : index
    %c0_112 = arith.constant 0 : index
    %319 = vector.load %arg10[%c0_111, %c0_112] : memref<128x128xbf16, #tpu.memory_space<vmem>>, vector<128x128xbf16>
    %cst_113 = arith.constant dense<0.000000e+00> : vector<8x128xf32>
    %320 = tpu.matmul %318, %319, %cst_113 {dimension_numbers = #tpu.dot_dimension_numbers<[1], [0], [0], [1], [0, 0, 1, 1], [], []>} : vector<8x128xbf16>, vector<128x128xbf16>, vector<8x128xf32> -> vector<8x128xf32>
    %321 = arith.addf %320, %19 : vector<8x128xf32>
    %cst_114 = arith.constant 0.000000e+00 : f32
    %322 = vector.broadcast %cst_114 : f32 to vector<8x128xf32>
    %323 = arith.maximumf %321, %322 : vector<8x128xf32>
    %324 = arith.truncf %323 : vector<8x128xf32> to vector<8x128xbf16>
    %c0_115 = arith.constant 0 : index
    %c0_116 = arith.constant 0 : index
    %325 = vector.load %arg12[%c0_115, %c0_116] : memref<128x128xbf16, #tpu.memory_space<vmem>>, vector<128x128xbf16>
    %cst_117 = arith.constant dense<0.000000e+00> : vector<8x128xf32>
    %326 = tpu.matmul %324, %325, %cst_117 {dimension_numbers = #tpu.dot_dimension_numbers<[1], [0], [0], [1], [0, 0, 1, 1], [], []>} : vector<8x128xbf16>, vector<128x128xbf16>, vector<8x128xf32> -> vector<8x128xf32>
    %327 = arith.addf %326, %22 : vector<8x128xf32>
    %c24_118 = arith.constant 24 : index
    %c0_119 = arith.constant 0 : index
    %328 = vector.load %arg14[%c24_118, %c0_119] : memref<64x128xf32, #tpu.memory_space<vmem>>, vector<8x128xf32>
    tpu.vector_store %arg14[%c24_118, %c0_119], %327 {strides = array<i32>} : memref<64x128xf32, #tpu.memory_space<vmem>>, vector<8x128xf32>,
    %c32 = arith.constant 32 : index
    %c0_120 = arith.constant 0 : index
    %329 = vector.load %arg15[%c32, %c0_120] : memref<64x384xf32, #tpu.memory_space<vmem>>, vector<8x384xf32>
    %330 = arith.truncf %283 : vector<8x128xf32> to vector<8x128xbf16>
    %c0_121 = arith.constant 0 : index
    %c0_122 = arith.constant 0 : index
    %331 = vector.load %arg3[%c0_121, %c0_122] : memref<128x384xbf16, #tpu.memory_space<vmem>>, vector<128x384xbf16>
    %cst_123 = arith.constant dense<0.000000e+00> : vector<8x384xf32>
    %332 = tpu.matmul %330, %331, %cst_123 {dimension_numbers = #tpu.dot_dimension_numbers<[1], [0], [0], [1], [0, 0, 1, 1], [], []>} : vector<8x128xbf16>, vector<128x384xbf16>, vector<8x384xf32> -> vector<8x384xf32>
    %333 = vector.extract_strided_slice %329 {offsets = [0, 0], sizes = [8, 128], strides = [1, 1]} : vector<8x384xf32> to vector<8x128xf32>
    %334 = vector.extract_strided_slice %332 {offsets = [0, 0], sizes = [8, 128], strides = [1, 1]} : vector<8x384xf32> to vector<8x128xf32>
    %335 = arith.addf %333, %334 : vector<8x128xf32>
    %336 = arith.negf %335 : vector<8x128xf32>
    %337 = math.exp %336 : vector<8x128xf32>
    %cst_124 = arith.constant 1.000000e+00 : f32
    %338 = vector.broadcast %cst_124 : f32 to vector<8x128xf32>
    %339 = arith.addf %338, %337 : vector<8x128xf32>
    %340 = arith.divf %338, %339 : vector<8x128xf32>
    %341 = vector.extract_strided_slice %329 {offsets = [0, 128], sizes = [8, 128], strides = [1, 1]} : vector<8x384xf32> to vector<8x128xf32>
    %342 = vector.extract_strided_slice %332 {offsets = [0, 128], sizes = [8, 128], strides = [1, 1]} : vector<8x384xf32> to vector<8x128xf32>
    %343 = arith.addf %341, %342 : vector<8x128xf32>
    %344 = arith.negf %343 : vector<8x128xf32>
    %345 = math.exp %344 : vector<8x128xf32>
    %cst_125 = arith.constant 1.000000e+00 : f32
    %346 = vector.broadcast %cst_125 : f32 to vector<8x128xf32>
    %347 = arith.addf %346, %345 : vector<8x128xf32>
    %348 = arith.divf %346, %347 : vector<8x128xf32>
    %349 = vector.extract_strided_slice %329 {offsets = [0, 256], sizes = [8, 128], strides = [1, 1]} : vector<8x384xf32> to vector<8x128xf32>
    %350 = vector.extract_strided_slice %332 {offsets = [0, 256], sizes = [8, 128], strides = [1, 1]} : vector<8x384xf32> to vector<8x128xf32>
    %351 = arith.addf %350, %10 : vector<8x128xf32>
    %352 = arith.mulf %340, %351 : vector<8x128xf32>
    %353 = arith.addf %349, %352 : vector<8x128xf32>
    %354 = math.tanh %353 : vector<8x128xf32>
    %cst_126 = arith.constant 1.000000e+00 : f32
    %355 = vector.broadcast %cst_126 : f32 to vector<8x128xf32>
    %356 = arith.subf %355, %348 : vector<8x128xf32>
    %357 = arith.mulf %356, %354 : vector<8x128xf32>
    %358 = arith.mulf %348, %283 : vector<8x128xf32>
    %359 = arith.addf %357, %358 : vector<8x128xf32>
    %360 = arith.truncf %359 : vector<8x128xf32> to vector<8x128xbf16>
    %c0_127 = arith.constant 0 : index
    %c0_128 = arith.constant 0 : index
    %361 = vector.load %arg6[%c0_127, %c0_128] : memref<128x384xbf16, #tpu.memory_space<vmem>>, vector<128x384xbf16>
    %cst_129 = arith.constant dense<0.000000e+00> : vector<8x384xf32>
    %362 = tpu.matmul %360, %361, %cst_129 {dimension_numbers = #tpu.dot_dimension_numbers<[1], [0], [0], [1], [0, 0, 1, 1], [], []>} : vector<8x128xbf16>, vector<128x384xbf16>, vector<8x384xf32> -> vector<8x384xf32>
    %363 = arith.addf %362, %16 : vector<8x384xf32>
    %364 = arith.truncf %317 : vector<8x128xf32> to vector<8x128xbf16>
    %c0_130 = arith.constant 0 : index
    %c0_131 = arith.constant 0 : index
    %365 = vector.load %arg7[%c0_130, %c0_131] : memref<128x384xbf16, #tpu.memory_space<vmem>>, vector<128x384xbf16>
    %cst_132 = arith.constant dense<0.000000e+00> : vector<8x384xf32>
    %366 = tpu.matmul %364, %365, %cst_132 {dimension_numbers = #tpu.dot_dimension_numbers<[1], [0], [0], [1], [0, 0, 1, 1], [], []>} : vector<8x128xbf16>, vector<128x384xbf16>, vector<8x384xf32> -> vector<8x384xf32>
    %367 = vector.extract_strided_slice %363 {offsets = [0, 0], sizes = [8, 128], strides = [1, 1]} : vector<8x384xf32> to vector<8x128xf32>
    %368 = vector.extract_strided_slice %366 {offsets = [0, 0], sizes = [8, 128], strides = [1, 1]} : vector<8x384xf32> to vector<8x128xf32>
    %369 = arith.addf %367, %368 : vector<8x128xf32>
    %370 = arith.negf %369 : vector<8x128xf32>
    %371 = math.exp %370 : vector<8x128xf32>
    %cst_133 = arith.constant 1.000000e+00 : f32
    %372 = vector.broadcast %cst_133 : f32 to vector<8x128xf32>
    %373 = arith.addf %372, %371 : vector<8x128xf32>
    %374 = arith.divf %372, %373 : vector<8x128xf32>
    %375 = vector.extract_strided_slice %363 {offsets = [0, 128], sizes = [8, 128], strides = [1, 1]} : vector<8x384xf32> to vector<8x128xf32>
    %376 = vector.extract_strided_slice %366 {offsets = [0, 128], sizes = [8, 128], strides = [1, 1]} : vector<8x384xf32> to vector<8x128xf32>
    %377 = arith.addf %375, %376 : vector<8x128xf32>
    %378 = arith.negf %377 : vector<8x128xf32>
    %379 = math.exp %378 : vector<8x128xf32>
    %cst_134 = arith.constant 1.000000e+00 : f32
    %380 = vector.broadcast %cst_134 : f32 to vector<8x128xf32>
    %381 = arith.addf %380, %379 : vector<8x128xf32>
    %382 = arith.divf %380, %381 : vector<8x128xf32>
    %383 = vector.extract_strided_slice %363 {offsets = [0, 256], sizes = [8, 128], strides = [1, 1]} : vector<8x384xf32> to vector<8x128xf32>
    %384 = vector.extract_strided_slice %366 {offsets = [0, 256], sizes = [8, 128], strides = [1, 1]} : vector<8x384xf32> to vector<8x128xf32>
    %385 = arith.addf %384, %13 : vector<8x128xf32>
    %386 = arith.mulf %374, %385 : vector<8x128xf32>
    %387 = arith.addf %383, %386 : vector<8x128xf32>
    %388 = math.tanh %387 : vector<8x128xf32>
    %cst_135 = arith.constant 1.000000e+00 : f32
    %389 = vector.broadcast %cst_135 : f32 to vector<8x128xf32>
    %390 = arith.subf %389, %382 : vector<8x128xf32>
    %391 = arith.mulf %390, %388 : vector<8x128xf32>
    %392 = arith.mulf %382, %317 : vector<8x128xf32>
    %393 = arith.addf %391, %392 : vector<8x128xf32>
    %394 = arith.truncf %393 : vector<8x128xf32> to vector<8x128xbf16>
    %c0_136 = arith.constant 0 : index
    %c0_137 = arith.constant 0 : index
    %395 = vector.load %arg10[%c0_136, %c0_137] : memref<128x128xbf16, #tpu.memory_space<vmem>>, vector<128x128xbf16>
    %cst_138 = arith.constant dense<0.000000e+00> : vector<8x128xf32>
    %396 = tpu.matmul %394, %395, %cst_138 {dimension_numbers = #tpu.dot_dimension_numbers<[1], [0], [0], [1], [0, 0, 1, 1], [], []>} : vector<8x128xbf16>, vector<128x128xbf16>, vector<8x128xf32> -> vector<8x128xf32>
    %397 = arith.addf %396, %19 : vector<8x128xf32>
    %cst_139 = arith.constant 0.000000e+00 : f32
    %398 = vector.broadcast %cst_139 : f32 to vector<8x128xf32>
    %399 = arith.maximumf %397, %398 : vector<8x128xf32>
    %400 = arith.truncf %399 : vector<8x128xf32> to vector<8x128xbf16>
    %c0_140 = arith.constant 0 : index
    %c0_141 = arith.constant 0 : index
    %401 = vector.load %arg12[%c0_140, %c0_141] : memref<128x128xbf16, #tpu.memory_space<vmem>>, vector<128x128xbf16>
    %cst_142 = arith.constant dense<0.000000e+00> : vector<8x128xf32>
    %402 = tpu.matmul %400, %401, %cst_142 {dimension_numbers = #tpu.dot_dimension_numbers<[1], [0], [0], [1], [0, 0, 1, 1], [], []>} : vector<8x128xbf16>, vector<128x128xbf16>, vector<8x128xf32> -> vector<8x128xf32>
    %403 = arith.addf %402, %22 : vector<8x128xf32>
    %c32_143 = arith.constant 32 : index
    %c0_144 = arith.constant 0 : index
    %404 = vector.load %arg14[%c32_143, %c0_144] : memref<64x128xf32, #tpu.memory_space<vmem>>, vector<8x128xf32>
    tpu.vector_store %arg14[%c32_143, %c0_144], %403 {strides = array<i32>} : memref<64x128xf32, #tpu.memory_space<vmem>>, vector<8x128xf32>,
    %c40 = arith.constant 40 : index
    %c0_145 = arith.constant 0 : index
    %405 = vector.load %arg15[%c40, %c0_145] : memref<64x384xf32, #tpu.memory_space<vmem>>, vector<8x384xf32>
    %406 = arith.truncf %359 : vector<8x128xf32> to vector<8x128xbf16>
    %c0_146 = arith.constant 0 : index
    %c0_147 = arith.constant 0 : index
    %407 = vector.load %arg3[%c0_146, %c0_147] : memref<128x384xbf16, #tpu.memory_space<vmem>>, vector<128x384xbf16>
    %cst_148 = arith.constant dense<0.000000e+00> : vector<8x384xf32>
    %408 = tpu.matmul %406, %407, %cst_148 {dimension_numbers = #tpu.dot_dimension_numbers<[1], [0], [0], [1], [0, 0, 1, 1], [], []>} : vector<8x128xbf16>, vector<128x384xbf16>, vector<8x384xf32> -> vector<8x384xf32>
    %409 = vector.extract_strided_slice %405 {offsets = [0, 0], sizes = [8, 128], strides = [1, 1]} : vector<8x384xf32> to vector<8x128xf32>
    %410 = vector.extract_strided_slice %408 {offsets = [0, 0], sizes = [8, 128], strides = [1, 1]} : vector<8x384xf32> to vector<8x128xf32>
    %411 = arith.addf %409, %410 : vector<8x128xf32>
    %412 = arith.negf %411 : vector<8x128xf32>
    %413 = math.exp %412 : vector<8x128xf32>
    %cst_149 = arith.constant 1.000000e+00 : f32
    %414 = vector.broadcast %cst_149 : f32 to vector<8x128xf32>
    %415 = arith.addf %414, %413 : vector<8x128xf32>
    %416 = arith.divf %414, %415 : vector<8x128xf32>
    %417 = vector.extract_strided_slice %405 {offsets = [0, 128], sizes = [8, 128], strides = [1, 1]} : vector<8x384xf32> to vector<8x128xf32>
    %418 = vector.extract_strided_slice %408 {offsets = [0, 128], sizes = [8, 128], strides = [1, 1]} : vector<8x384xf32> to vector<8x128xf32>
    %419 = arith.addf %417, %418 : vector<8x128xf32>
    %420 = arith.negf %419 : vector<8x128xf32>
    %421 = math.exp %420 : vector<8x128xf32>
    %cst_150 = arith.constant 1.000000e+00 : f32
    %422 = vector.broadcast %cst_150 : f32 to vector<8x128xf32>
    %423 = arith.addf %422, %421 : vector<8x128xf32>
    %424 = arith.divf %422, %423 : vector<8x128xf32>
    %425 = vector.extract_strided_slice %405 {offsets = [0, 256], sizes = [8, 128], strides = [1, 1]} : vector<8x384xf32> to vector<8x128xf32>
    %426 = vector.extract_strided_slice %408 {offsets = [0, 256], sizes = [8, 128], strides = [1, 1]} : vector<8x384xf32> to vector<8x128xf32>
    %427 = arith.addf %426, %10 : vector<8x128xf32>
    %428 = arith.mulf %416, %427 : vector<8x128xf32>
    %429 = arith.addf %425, %428 : vector<8x128xf32>
    %430 = math.tanh %429 : vector<8x128xf32>
    %cst_151 = arith.constant 1.000000e+00 : f32
    %431 = vector.broadcast %cst_151 : f32 to vector<8x128xf32>
    %432 = arith.subf %431, %424 : vector<8x128xf32>
    %433 = arith.mulf %432, %430 : vector<8x128xf32>
    %434 = arith.mulf %424, %359 : vector<8x128xf32>
    %435 = arith.addf %433, %434 : vector<8x128xf32>
    %436 = arith.truncf %435 : vector<8x128xf32> to vector<8x128xbf16>
    %c0_152 = arith.constant 0 : index
    %c0_153 = arith.constant 0 : index
    %437 = vector.load %arg6[%c0_152, %c0_153] : memref<128x384xbf16, #tpu.memory_space<vmem>>, vector<128x384xbf16>
    %cst_154 = arith.constant dense<0.000000e+00> : vector<8x384xf32>
    %438 = tpu.matmul %436, %437, %cst_154 {dimension_numbers = #tpu.dot_dimension_numbers<[1], [0], [0], [1], [0, 0, 1, 1], [], []>} : vector<8x128xbf16>, vector<128x384xbf16>, vector<8x384xf32> -> vector<8x384xf32>
    %439 = arith.addf %438, %16 : vector<8x384xf32>
    %440 = arith.truncf %393 : vector<8x128xf32> to vector<8x128xbf16>
    %c0_155 = arith.constant 0 : index
    %c0_156 = arith.constant 0 : index
    %441 = vector.load %arg7[%c0_155, %c0_156] : memref<128x384xbf16, #tpu.memory_space<vmem>>, vector<128x384xbf16>
    %cst_157 = arith.constant dense<0.000000e+00> : vector<8x384xf32>
    %442 = tpu.matmul %440, %441, %cst_157 {dimension_numbers = #tpu.dot_dimension_numbers<[1], [0], [0], [1], [0, 0, 1, 1], [], []>} : vector<8x128xbf16>, vector<128x384xbf16>, vector<8x384xf32> -> vector<8x384xf32>
    %443 = vector.extract_strided_slice %439 {offsets = [0, 0], sizes = [8, 128], strides = [1, 1]} : vector<8x384xf32> to vector<8x128xf32>
    %444 = vector.extract_strided_slice %442 {offsets = [0, 0], sizes = [8, 128], strides = [1, 1]} : vector<8x384xf32> to vector<8x128xf32>
    %445 = arith.addf %443, %444 : vector<8x128xf32>
    %446 = arith.negf %445 : vector<8x128xf32>
    %447 = math.exp %446 : vector<8x128xf32>
    %cst_158 = arith.constant 1.000000e+00 : f32
    %448 = vector.broadcast %cst_158 : f32 to vector<8x128xf32>
    %449 = arith.addf %448, %447 : vector<8x128xf32>
    %450 = arith.divf %448, %449 : vector<8x128xf32>
    %451 = vector.extract_strided_slice %439 {offsets = [0, 128], sizes = [8, 128], strides = [1, 1]} : vector<8x384xf32> to vector<8x128xf32>
    %452 = vector.extract_strided_slice %442 {offsets = [0, 128], sizes = [8, 128], strides = [1, 1]} : vector<8x384xf32> to vector<8x128xf32>
    %453 = arith.addf %451, %452 : vector<8x128xf32>
    %454 = arith.negf %453 : vector<8x128xf32>
    %455 = math.exp %454 : vector<8x128xf32>
    %cst_159 = arith.constant 1.000000e+00 : f32
    %456 = vector.broadcast %cst_159 : f32 to vector<8x128xf32>
    %457 = arith.addf %456, %455 : vector<8x128xf32>
    %458 = arith.divf %456, %457 : vector<8x128xf32>
    %459 = vector.extract_strided_slice %439 {offsets = [0, 256], sizes = [8, 128], strides = [1, 1]} : vector<8x384xf32> to vector<8x128xf32>
    %460 = vector.extract_strided_slice %442 {offsets = [0, 256], sizes = [8, 128], strides = [1, 1]} : vector<8x384xf32> to vector<8x128xf32>
    %461 = arith.addf %460, %13 : vector<8x128xf32>
    %462 = arith.mulf %450, %461 : vector<8x128xf32>
    %463 = arith.addf %459, %462 : vector<8x128xf32>
    %464 = math.tanh %463 : vector<8x128xf32>
    %cst_160 = arith.constant 1.000000e+00 : f32
    %465 = vector.broadcast %cst_160 : f32 to vector<8x128xf32>
    %466 = arith.subf %465, %458 : vector<8x128xf32>
    %467 = arith.mulf %466, %464 : vector<8x128xf32>
    %468 = arith.mulf %458, %393 : vector<8x128xf32>
    %469 = arith.addf %467, %468 : vector<8x128xf32>
    %470 = arith.truncf %469 : vector<8x128xf32> to vector<8x128xbf16>
    %c0_161 = arith.constant 0 : index
    %c0_162 = arith.constant 0 : index
    %471 = vector.load %arg10[%c0_161, %c0_162] : memref<128x128xbf16, #tpu.memory_space<vmem>>, vector<128x128xbf16>
    %cst_163 = arith.constant dense<0.000000e+00> : vector<8x128xf32>
    %472 = tpu.matmul %470, %471, %cst_163 {dimension_numbers = #tpu.dot_dimension_numbers<[1], [0], [0], [1], [0, 0, 1, 1], [], []>} : vector<8x128xbf16>, vector<128x128xbf16>, vector<8x128xf32> -> vector<8x128xf32>
    %473 = arith.addf %472, %19 : vector<8x128xf32>
    %cst_164 = arith.constant 0.000000e+00 : f32
    %474 = vector.broadcast %cst_164 : f32 to vector<8x128xf32>
    %475 = arith.maximumf %473, %474 : vector<8x128xf32>
    %476 = arith.truncf %475 : vector<8x128xf32> to vector<8x128xbf16>
    %c0_165 = arith.constant 0 : index
    %c0_166 = arith.constant 0 : index
    %477 = vector.load %arg12[%c0_165, %c0_166] : memref<128x128xbf16, #tpu.memory_space<vmem>>, vector<128x128xbf16>
    %cst_167 = arith.constant dense<0.000000e+00> : vector<8x128xf32>
    %478 = tpu.matmul %476, %477, %cst_167 {dimension_numbers = #tpu.dot_dimension_numbers<[1], [0], [0], [1], [0, 0, 1, 1], [], []>} : vector<8x128xbf16>, vector<128x128xbf16>, vector<8x128xf32> -> vector<8x128xf32>
    %479 = arith.addf %478, %22 : vector<8x128xf32>
    %c40_168 = arith.constant 40 : index
    %c0_169 = arith.constant 0 : index
    %480 = vector.load %arg14[%c40_168, %c0_169] : memref<64x128xf32, #tpu.memory_space<vmem>>, vector<8x128xf32>
    tpu.vector_store %arg14[%c40_168, %c0_169], %479 {strides = array<i32>} : memref<64x128xf32, #tpu.memory_space<vmem>>, vector<8x128xf32>,
    %c48 = arith.constant 48 : index
    %c0_170 = arith.constant 0 : index
    %481 = vector.load %arg15[%c48, %c0_170] : memref<64x384xf32, #tpu.memory_space<vmem>>, vector<8x384xf32>
    %482 = arith.truncf %435 : vector<8x128xf32> to vector<8x128xbf16>
    %c0_171 = arith.constant 0 : index
    %c0_172 = arith.constant 0 : index
    %483 = vector.load %arg3[%c0_171, %c0_172] : memref<128x384xbf16, #tpu.memory_space<vmem>>, vector<128x384xbf16>
    %cst_173 = arith.constant dense<0.000000e+00> : vector<8x384xf32>
    %484 = tpu.matmul %482, %483, %cst_173 {dimension_numbers = #tpu.dot_dimension_numbers<[1], [0], [0], [1], [0, 0, 1, 1], [], []>} : vector<8x128xbf16>, vector<128x384xbf16>, vector<8x384xf32> -> vector<8x384xf32>
    %485 = vector.extract_strided_slice %481 {offsets = [0, 0], sizes = [8, 128], strides = [1, 1]} : vector<8x384xf32> to vector<8x128xf32>
    %486 = vector.extract_strided_slice %484 {offsets = [0, 0], sizes = [8, 128], strides = [1, 1]} : vector<8x384xf32> to vector<8x128xf32>
    %487 = arith.addf %485, %486 : vector<8x128xf32>
    %488 = arith.negf %487 : vector<8x128xf32>
    %489 = math.exp %488 : vector<8x128xf32>
    %cst_174 = arith.constant 1.000000e+00 : f32
    %490 = vector.broadcast %cst_174 : f32 to vector<8x128xf32>
    %491 = arith.addf %490, %489 : vector<8x128xf32>
    %492 = arith.divf %490, %491 : vector<8x128xf32>
    %493 = vector.extract_strided_slice %481 {offsets = [0, 128], sizes = [8, 128], strides = [1, 1]} : vector<8x384xf32> to vector<8x128xf32>
    %494 = vector.extract_strided_slice %484 {offsets = [0, 128], sizes = [8, 128], strides = [1, 1]} : vector<8x384xf32> to vector<8x128xf32>
    %495 = arith.addf %493, %494 : vector<8x128xf32>
    %496 = arith.negf %495 : vector<8x128xf32>
    %497 = math.exp %496 : vector<8x128xf32>
    %cst_175 = arith.constant 1.000000e+00 : f32
    %498 = vector.broadcast %cst_175 : f32 to vector<8x128xf32>
    %499 = arith.addf %498, %497 : vector<8x128xf32>
    %500 = arith.divf %498, %499 : vector<8x128xf32>
    %501 = vector.extract_strided_slice %481 {offsets = [0, 256], sizes = [8, 128], strides = [1, 1]} : vector<8x384xf32> to vector<8x128xf32>
    %502 = vector.extract_strided_slice %484 {offsets = [0, 256], sizes = [8, 128], strides = [1, 1]} : vector<8x384xf32> to vector<8x128xf32>
    %503 = arith.addf %502, %10 : vector<8x128xf32>
    %504 = arith.mulf %492, %503 : vector<8x128xf32>
    %505 = arith.addf %501, %504 : vector<8x128xf32>
    %506 = math.tanh %505 : vector<8x128xf32>
    %cst_176 = arith.constant 1.000000e+00 : f32
    %507 = vector.broadcast %cst_176 : f32 to vector<8x128xf32>
    %508 = arith.subf %507, %500 : vector<8x128xf32>
    %509 = arith.mulf %508, %506 : vector<8x128xf32>
    %510 = arith.mulf %500, %435 : vector<8x128xf32>
    %511 = arith.addf %509, %510 : vector<8x128xf32>
    %512 = arith.truncf %511 : vector<8x128xf32> to vector<8x128xbf16>
    %c0_177 = arith.constant 0 : index
    %c0_178 = arith.constant 0 : index
    %513 = vector.load %arg6[%c0_177, %c0_178] : memref<128x384xbf16, #tpu.memory_space<vmem>>, vector<128x384xbf16>
    %cst_179 = arith.constant dense<0.000000e+00> : vector<8x384xf32>
    %514 = tpu.matmul %512, %513, %cst_179 {dimension_numbers = #tpu.dot_dimension_numbers<[1], [0], [0], [1], [0, 0, 1, 1], [], []>} : vector<8x128xbf16>, vector<128x384xbf16>, vector<8x384xf32> -> vector<8x384xf32>
    %515 = arith.addf %514, %16 : vector<8x384xf32>
    %516 = arith.truncf %469 : vector<8x128xf32> to vector<8x128xbf16>
    %c0_180 = arith.constant 0 : index
    %c0_181 = arith.constant 0 : index
    %517 = vector.load %arg7[%c0_180, %c0_181] : memref<128x384xbf16, #tpu.memory_space<vmem>>, vector<128x384xbf16>
    %cst_182 = arith.constant dense<0.000000e+00> : vector<8x384xf32>
    %518 = tpu.matmul %516, %517, %cst_182 {dimension_numbers = #tpu.dot_dimension_numbers<[1], [0], [0], [1], [0, 0, 1, 1], [], []>} : vector<8x128xbf16>, vector<128x384xbf16>, vector<8x384xf32> -> vector<8x384xf32>
    %519 = vector.extract_strided_slice %515 {offsets = [0, 0], sizes = [8, 128], strides = [1, 1]} : vector<8x384xf32> to vector<8x128xf32>
    %520 = vector.extract_strided_slice %518 {offsets = [0, 0], sizes = [8, 128], strides = [1, 1]} : vector<8x384xf32> to vector<8x128xf32>
    %521 = arith.addf %519, %520 : vector<8x128xf32>
    %522 = arith.negf %521 : vector<8x128xf32>
    %523 = math.exp %522 : vector<8x128xf32>
    %cst_183 = arith.constant 1.000000e+00 : f32
    %524 = vector.broadcast %cst_183 : f32 to vector<8x128xf32>
    %525 = arith.addf %524, %523 : vector<8x128xf32>
    %526 = arith.divf %524, %525 : vector<8x128xf32>
    %527 = vector.extract_strided_slice %515 {offsets = [0, 128], sizes = [8, 128], strides = [1, 1]} : vector<8x384xf32> to vector<8x128xf32>
    %528 = vector.extract_strided_slice %518 {offsets = [0, 128], sizes = [8, 128], strides = [1, 1]} : vector<8x384xf32> to vector<8x128xf32>
    %529 = arith.addf %527, %528 : vector<8x128xf32>
    %530 = arith.negf %529 : vector<8x128xf32>
    %531 = math.exp %530 : vector<8x128xf32>
    %cst_184 = arith.constant 1.000000e+00 : f32
    %532 = vector.broadcast %cst_184 : f32 to vector<8x128xf32>
    %533 = arith.addf %532, %531 : vector<8x128xf32>
    %534 = arith.divf %532, %533 : vector<8x128xf32>
    %535 = vector.extract_strided_slice %515 {offsets = [0, 256], sizes = [8, 128], strides = [1, 1]} : vector<8x384xf32> to vector<8x128xf32>
    %536 = vector.extract_strided_slice %518 {offsets = [0, 256], sizes = [8, 128], strides = [1, 1]} : vector<8x384xf32> to vector<8x128xf32>
    %537 = arith.addf %536, %13 : vector<8x128xf32>
    %538 = arith.mulf %526, %537 : vector<8x128xf32>
    %539 = arith.addf %535, %538 : vector<8x128xf32>
    %540 = math.tanh %539 : vector<8x128xf32>
    %cst_185 = arith.constant 1.000000e+00 : f32
    %541 = vector.broadcast %cst_185 : f32 to vector<8x128xf32>
    %542 = arith.subf %541, %534 : vector<8x128xf32>
    %543 = arith.mulf %542, %540 : vector<8x128xf32>
    %544 = arith.mulf %534, %469 : vector<8x128xf32>
    %545 = arith.addf %543, %544 : vector<8x128xf32>
    %546 = arith.truncf %545 : vector<8x128xf32> to vector<8x128xbf16>
    %c0_186 = arith.constant 0 : index
    %c0_187 = arith.constant 0 : index
    %547 = vector.load %arg10[%c0_186, %c0_187] : memref<128x128xbf16, #tpu.memory_space<vmem>>, vector<128x128xbf16>
    %cst_188 = arith.constant dense<0.000000e+00> : vector<8x128xf32>
    %548 = tpu.matmul %546, %547, %cst_188 {dimension_numbers = #tpu.dot_dimension_numbers<[1], [0], [0], [1], [0, 0, 1, 1], [], []>} : vector<8x128xbf16>, vector<128x128xbf16>, vector<8x128xf32> -> vector<8x128xf32>
    %549 = arith.addf %548, %19 : vector<8x128xf32>
    %cst_189 = arith.constant 0.000000e+00 : f32
    %550 = vector.broadcast %cst_189 : f32 to vector<8x128xf32>
    %551 = arith.maximumf %549, %550 : vector<8x128xf32>
    %552 = arith.truncf %551 : vector<8x128xf32> to vector<8x128xbf16>
    %c0_190 = arith.constant 0 : index
    %c0_191 = arith.constant 0 : index
    %553 = vector.load %arg12[%c0_190, %c0_191] : memref<128x128xbf16, #tpu.memory_space<vmem>>, vector<128x128xbf16>
    %cst_192 = arith.constant dense<0.000000e+00> : vector<8x128xf32>
    %554 = tpu.matmul %552, %553, %cst_192 {dimension_numbers = #tpu.dot_dimension_numbers<[1], [0], [0], [1], [0, 0, 1, 1], [], []>} : vector<8x128xbf16>, vector<128x128xbf16>, vector<8x128xf32> -> vector<8x128xf32>
    %555 = arith.addf %554, %22 : vector<8x128xf32>
    %c48_193 = arith.constant 48 : index
    %c0_194 = arith.constant 0 : index
    %556 = vector.load %arg14[%c48_193, %c0_194] : memref<64x128xf32, #tpu.memory_space<vmem>>, vector<8x128xf32>
    tpu.vector_store %arg14[%c48_193, %c0_194], %555 {strides = array<i32>} : memref<64x128xf32, #tpu.memory_space<vmem>>, vector<8x128xf32>,
    %c56 = arith.constant 56 : index
    %c0_195 = arith.constant 0 : index
    %557 = vector.load %arg15[%c56, %c0_195] : memref<64x384xf32, #tpu.memory_space<vmem>>, vector<8x384xf32>
    %558 = arith.truncf %511 : vector<8x128xf32> to vector<8x128xbf16>
    %c0_196 = arith.constant 0 : index
    %c0_197 = arith.constant 0 : index
    %559 = vector.load %arg3[%c0_196, %c0_197] : memref<128x384xbf16, #tpu.memory_space<vmem>>, vector<128x384xbf16>
    %cst_198 = arith.constant dense<0.000000e+00> : vector<8x384xf32>
    %560 = tpu.matmul %558, %559, %cst_198 {dimension_numbers = #tpu.dot_dimension_numbers<[1], [0], [0], [1], [0, 0, 1, 1], [], []>} : vector<8x128xbf16>, vector<128x384xbf16>, vector<8x384xf32> -> vector<8x384xf32>
    %561 = vector.extract_strided_slice %557 {offsets = [0, 0], sizes = [8, 128], strides = [1, 1]} : vector<8x384xf32> to vector<8x128xf32>
    %562 = vector.extract_strided_slice %560 {offsets = [0, 0], sizes = [8, 128], strides = [1, 1]} : vector<8x384xf32> to vector<8x128xf32>
    %563 = arith.addf %561, %562 : vector<8x128xf32>
    %564 = arith.negf %563 : vector<8x128xf32>
    %565 = math.exp %564 : vector<8x128xf32>
    %cst_199 = arith.constant 1.000000e+00 : f32
    %566 = vector.broadcast %cst_199 : f32 to vector<8x128xf32>
    %567 = arith.addf %566, %565 : vector<8x128xf32>
    %568 = arith.divf %566, %567 : vector<8x128xf32>
    %569 = vector.extract_strided_slice %557 {offsets = [0, 128], sizes = [8, 128], strides = [1, 1]} : vector<8x384xf32> to vector<8x128xf32>
    %570 = vector.extract_strided_slice %560 {offsets = [0, 128], sizes = [8, 128], strides = [1, 1]} : vector<8x384xf32> to vector<8x128xf32>
    %571 = arith.addf %569, %570 : vector<8x128xf32>
    %572 = arith.negf %571 : vector<8x128xf32>
    %573 = math.exp %572 : vector<8x128xf32>
    %cst_200 = arith.constant 1.000000e+00 : f32
    %574 = vector.broadcast %cst_200 : f32 to vector<8x128xf32>
    %575 = arith.addf %574, %573 : vector<8x128xf32>
    %576 = arith.divf %574, %575 : vector<8x128xf32>
    %577 = vector.extract_strided_slice %557 {offsets = [0, 256], sizes = [8, 128], strides = [1, 1]} : vector<8x384xf32> to vector<8x128xf32>
    %578 = vector.extract_strided_slice %560 {offsets = [0, 256], sizes = [8, 128], strides = [1, 1]} : vector<8x384xf32> to vector<8x128xf32>
    %579 = arith.addf %578, %10 : vector<8x128xf32>
    %580 = arith.mulf %568, %579 : vector<8x128xf32>
    %581 = arith.addf %577, %580 : vector<8x128xf32>
    %582 = math.tanh %581 : vector<8x128xf32>
    %cst_201 = arith.constant 1.000000e+00 : f32
    %583 = vector.broadcast %cst_201 : f32 to vector<8x128xf32>
    %584 = arith.subf %583, %576 : vector<8x128xf32>
    %585 = arith.mulf %584, %582 : vector<8x128xf32>
    %586 = arith.mulf %576, %511 : vector<8x128xf32>
    %587 = arith.addf %585, %586 : vector<8x128xf32>
    %588 = arith.truncf %587 : vector<8x128xf32> to vector<8x128xbf16>
    %c0_202 = arith.constant 0 : index
    %c0_203 = arith.constant 0 : index
    %589 = vector.load %arg6[%c0_202, %c0_203] : memref<128x384xbf16, #tpu.memory_space<vmem>>, vector<128x384xbf16>
    %cst_204 = arith.constant dense<0.000000e+00> : vector<8x384xf32>
    %590 = tpu.matmul %588, %589, %cst_204 {dimension_numbers = #tpu.dot_dimension_numbers<[1], [0], [0], [1], [0, 0, 1, 1], [], []>} : vector<8x128xbf16>, vector<128x384xbf16>, vector<8x384xf32> -> vector<8x384xf32>
    %591 = arith.addf %590, %16 : vector<8x384xf32>
    %592 = arith.truncf %545 : vector<8x128xf32> to vector<8x128xbf16>
    %c0_205 = arith.constant 0 : index
    %c0_206 = arith.constant 0 : index
    %593 = vector.load %arg7[%c0_205, %c0_206] : memref<128x384xbf16, #tpu.memory_space<vmem>>, vector<128x384xbf16>
    %cst_207 = arith.constant dense<0.000000e+00> : vector<8x384xf32>
    %594 = tpu.matmul %592, %593, %cst_207 {dimension_numbers = #tpu.dot_dimension_numbers<[1], [0], [0], [1], [0, 0, 1, 1], [], []>} : vector<8x128xbf16>, vector<128x384xbf16>, vector<8x384xf32> -> vector<8x384xf32>
    %595 = vector.extract_strided_slice %591 {offsets = [0, 0], sizes = [8, 128], strides = [1, 1]} : vector<8x384xf32> to vector<8x128xf32>
    %596 = vector.extract_strided_slice %594 {offsets = [0, 0], sizes = [8, 128], strides = [1, 1]} : vector<8x384xf32> to vector<8x128xf32>
    %597 = arith.addf %595, %596 : vector<8x128xf32>
    %598 = arith.negf %597 : vector<8x128xf32>
    %599 = math.exp %598 : vector<8x128xf32>
    %cst_208 = arith.constant 1.000000e+00 : f32
    %600 = vector.broadcast %cst_208 : f32 to vector<8x128xf32>
    %601 = arith.addf %600, %599 : vector<8x128xf32>
    %602 = arith.divf %600, %601 : vector<8x128xf32>
    %603 = vector.extract_strided_slice %591 {offsets = [0, 128], sizes = [8, 128], strides = [1, 1]} : vector<8x384xf32> to vector<8x128xf32>
    %604 = vector.extract_strided_slice %594 {offsets = [0, 128], sizes = [8, 128], strides = [1, 1]} : vector<8x384xf32> to vector<8x128xf32>
    %605 = arith.addf %603, %604 : vector<8x128xf32>
    %606 = arith.negf %605 : vector<8x128xf32>
    %607 = math.exp %606 : vector<8x128xf32>
    %cst_209 = arith.constant 1.000000e+00 : f32
    %608 = vector.broadcast %cst_209 : f32 to vector<8x128xf32>
    %609 = arith.addf %608, %607 : vector<8x128xf32>
    %610 = arith.divf %608, %609 : vector<8x128xf32>
    %611 = vector.extract_strided_slice %591 {offsets = [0, 256], sizes = [8, 128], strides = [1, 1]} : vector<8x384xf32> to vector<8x128xf32>
    %612 = vector.extract_strided_slice %594 {offsets = [0, 256], sizes = [8, 128], strides = [1, 1]} : vector<8x384xf32> to vector<8x128xf32>
    %613 = arith.addf %612, %13 : vector<8x128xf32>
    %614 = arith.mulf %602, %613 : vector<8x128xf32>
    %615 = arith.addf %611, %614 : vector<8x128xf32>
    %616 = math.tanh %615 : vector<8x128xf32>
    %cst_210 = arith.constant 1.000000e+00 : f32
    %617 = vector.broadcast %cst_210 : f32 to vector<8x128xf32>
    %618 = arith.subf %617, %610 : vector<8x128xf32>
    %619 = arith.mulf %618, %616 : vector<8x128xf32>
    %620 = arith.mulf %610, %545 : vector<8x128xf32>
    %621 = arith.addf %619, %620 : vector<8x128xf32>
    %622 = arith.truncf %621 : vector<8x128xf32> to vector<8x128xbf16>
    %c0_211 = arith.constant 0 : index
    %c0_212 = arith.constant 0 : index
    %623 = vector.load %arg10[%c0_211, %c0_212] : memref<128x128xbf16, #tpu.memory_space<vmem>>, vector<128x128xbf16>
    %cst_213 = arith.constant dense<0.000000e+00> : vector<8x128xf32>
    %624 = tpu.matmul %622, %623, %cst_213 {dimension_numbers = #tpu.dot_dimension_numbers<[1], [0], [0], [1], [0, 0, 1, 1], [], []>} : vector<8x128xbf16>, vector<128x128xbf16>, vector<8x128xf32> -> vector<8x128xf32>
    %625 = arith.addf %624, %19 : vector<8x128xf32>
    %cst_214 = arith.constant 0.000000e+00 : f32
    %626 = vector.broadcast %cst_214 : f32 to vector<8x128xf32>
    %627 = arith.maximumf %625, %626 : vector<8x128xf32>
    %628 = arith.truncf %627 : vector<8x128xf32> to vector<8x128xbf16>
    %c0_215 = arith.constant 0 : index
    %c0_216 = arith.constant 0 : index
    %629 = vector.load %arg12[%c0_215, %c0_216] : memref<128x128xbf16, #tpu.memory_space<vmem>>, vector<128x128xbf16>
    %cst_217 = arith.constant dense<0.000000e+00> : vector<8x128xf32>
    %630 = tpu.matmul %628, %629, %cst_217 {dimension_numbers = #tpu.dot_dimension_numbers<[1], [0], [0], [1], [0, 0, 1, 1], [], []>} : vector<8x128xbf16>, vector<128x128xbf16>, vector<8x128xf32> -> vector<8x128xf32>
    %631 = arith.addf %630, %22 : vector<8x128xf32>
    %c56_218 = arith.constant 56 : index
    %c0_219 = arith.constant 0 : index
    %632 = vector.load %arg14[%c56_218, %c0_219] : memref<64x128xf32, #tpu.memory_space<vmem>>, vector<8x128xf32>
    tpu.vector_store %arg14[%c56_218, %c0_219], %631 {strides = array<i32>} : memref<64x128xf32, #tpu.memory_space<vmem>>, vector<8x128xf32>,
    return
  }
  func.func @transform_0(%arg0: i32) -> (i32, i32) {
    %c0_i32 = arith.constant 0 : i32
    %c0_i32_0 = arith.constant 0 : i32
    %c0_i32_1 = arith.constant 0 : i32
    return %c0_i32, %c0_i32_0 : i32, i32
  }
  func.func @transform_1(%arg0: i32) -> (i32, i32) {
    %c0_i32 = arith.constant 0 : i32
    %c0_i32_0 = arith.constant 0 : i32
    %c0_i32_1 = arith.constant 0 : i32
    return %c0_i32, %c0_i32_0 : i32, i32
  }
  func.func @transform_2(%arg0: i32) -> (i32, i32) {
    %c0_i32 = arith.constant 0 : i32
    %c0_i32_0 = arith.constant 0 : i32
    %c0_i32_1 = arith.constant 0 : i32
    return %c0_i32, %c0_i32_0 : i32, i32
  }
  func.func @transform_3(%arg0: i32) -> (i32, i32) {
    %c0_i32 = arith.constant 0 : i32
    %c0_i32_0 = arith.constant 0 : i32
    %c0_i32_1 = arith.constant 0 : i32
    return %c0_i32, %c0_i32_0 : i32, i32
  }
  func.func @transform_4(%arg0: i32) -> (i32, i32) {
    %c0_i32 = arith.constant 0 : i32
    %c0_i32_0 = arith.constant 0 : i32
    %c0_i32_1 = arith.constant 0 : i32
    return %c0_i32, %c0_i32_0 : i32, i32
  }
  func.func @transform_5(%arg0: i32) -> (i32, i32) {
    %c0_i32 = arith.constant 0 : i32
    %c0_i32_0 = arith.constant 0 : i32
    %c0_i32_1 = arith.constant 0 : i32
    return %c0_i32, %c0_i32_0 : i32, i32
  }
  func.func @transform_6(%arg0: i32) -> (i32, i32) {
    %c0_i32 = arith.constant 0 : i32
    %c0_i32_0 = arith.constant 0 : i32
    %c0_i32_1 = arith.constant 0 : i32
    return %c0_i32, %c0_i32_0 : i32, i32
  }
  func.func @transform_7(%arg0: i32) -> (i32, i32) {
    %c0_i32 = arith.constant 0 : i32
    %c0_i32_0 = arith.constant 0 : i32
    %c0_i32_1 = arith.constant 0 : i32
    return %c0_i32, %c0_i32_0 : i32, i32
  }
  func.func @transform_8(%arg0: i32) -> (i32, i32) {
    %c0_i32 = arith.constant 0 : i32
    %c0_i32_0 = arith.constant 0 : i32
    %c0_i32_1 = arith.constant 0 : i32
    return %c0_i32, %c0_i32_0 : i32, i32
  }
  func.func @transform_9(%arg0: i32) -> (i32, i32) {
    %c0_i32 = arith.constant 0 : i32
    %c0_i32_0 = arith.constant 0 : i32
    %c0_i32_1 = arith.constant 0 : i32
    return %c0_i32, %c0_i32_0 : i32, i32
  }
  func.func @transform_10(%arg0: i32) -> (i32, i32) {
    %c0_i32 = arith.constant 0 : i32
    %c0_i32_0 = arith.constant 0 : i32
    %c0_i32_1 = arith.constant 0 : i32
    return %c0_i32, %c0_i32_0 : i32, i32
  }
  func.func @transform_11(%arg0: i32) -> (i32, i32) {
    %c0_i32 = arith.constant 0 : i32
    %c0_i32_0 = arith.constant 0 : i32
    %c0_i32_1 = arith.constant 0 : i32
    return %c0_i32, %c0_i32_0 : i32, i32
  }
  func.func @transform_12(%arg0: i32) -> (i32, i32) {
    %c0_i32 = arith.constant 0 : i32
    %c0_i32_0 = arith.constant 0 : i32
    %c0_i32_1 = arith.constant 0 : i32
    return %c0_i32, %c0_i32_0 : i32, i32
  }
  func.func @transform_13(%arg0: i32) -> (i32, i32) {
    %c0_i32 = arith.constant 0 : i32
    %c0_i32_0 = arith.constant 0 : i32
    %c0_i32_1 = arith.constant 0 : i32
    return %c0_i32, %c0_i32_0 : i32, i32
  }
}

</mosaic_0001>

<bundles_post_ra>
// kernel: gru_model_forward.1
= control target key start
LH: loop header
LB: loop body
LE: loop exit
PB: predicated region body
PF: predicated region fallthrough
CT: control target
= control target key end

     0   :  { %18 = vsyncpa [#allocation4], 0  ;;  %s13018_s0 = inlined_call_operand.vmem [shape: f32[64,8], index: 0, kind: input, shape index: {}]   ;;  %s13019_s1 = inlined_call_operand.vmem [shape: bf16[8,384], index: 1, kind: input, shape index: {}]   ;;  %s13020_s2 = inlined_call_operand.hbm [shape: bf16[128,384], index: 2, kind: input, shape index: {}]   ;;  %s13021_s3 = inlined_call_operand.vmem [shape: f32[1,384], index: 3, kind: input, shape index: {}]   ;;  %s13022_s4 = inlined_call_operand.vmem [shape: f32[1,128], index: 4, kind: input, shape index: {}]   ;;  %s13023_s5 = inlined_call_operand.hbm [shape: bf16[128,384], index: 5, kind: input, shape index: {}]   ;;  %s13024_s6 = inlined_call_operand.hbm [shape: bf16[128,384], index: 6, kind: input, shape index: {}]   ;;  %s13025_s7 = inlined_call_operand.vmem [shape: f32[1,384], index: 7, kind: input, shape index: {}]   ;;  %s13026_s8 = inlined_call_operand.vmem [shape: f32[1,128], index: 8, kind: input, shape index: {}]   ;;  %s13027_s9 = inlined_call_operand.vmem [shape: bf16[128,128], index: 9, kind: input, shape index: {}]   ;;  %s13028_s10 = inlined_call_operand.vmem [shape: f32[1,128], index: 10, kind: input, shape index: {}]   ;;  %s13029_s11 = inlined_call_operand.hbm [shape: bf16[128,128], index: 11, kind: input, shape index: {}]   ;;  %s13030_s12 = inlined_call_operand.vmem [shape: f32[1,128], index: 12, kind: input, shape index: {}]   ;;  %s13031_s13 = inlined_call_operand.vmem [shape: f32[64,128], index: 13, kind: output, shape index: {}]  }
   0x1   :  { %19 = vsyncpa [#allocation6], 0 }
   0x2   :  { %20 = vsyncpa [#allocation9], 0  ;;  %s11137_s25 = smov [#allocation5]   ;;  %s11138_s27 = smov [#allocation3]  }
   0x3   :  { %s46_s26 = sshll.u32 %s11137_s25, 4  ;;  %s30_s28 = sshll.u32 %s11138_s27, 4  ;;  %s47_s26 = int_to_ptr.vmem [resolvable:$true] %s46_s26  ;;  %s11218_s28 = int_to_ptr.vmem [resolvable:$true] %s30_s28 }
   0x4   :  { %s11043_s14 = scalar_lea.hbm %s13023_s5, 3072 }
   0x5   :  { %p11044_p0 = scmp.ne.s32.totalorder %s13023_s5, %s11043_s14  ;;  %p11047_p1 = scmp.lt.u32.totalorder %s11043_s14, %s13023_s5 }
   0x7   :  { %p11049_p2 = pnand %p11047_p1, %p11044_p0 }
   0x9   :  { %11052 = shalt.err (!%p11049_p2)
}
   0xa   :  { %s11053_s19 = scalar_lea.vmem %s47_s26, 3072  ;;  %p11058_p4 = scmp.lt.s32.totalorder %s47_s26, %s47_s26 }
   0xb   :  { %p11054_p3 = scmp.ne.s32.totalorder %s47_s26, %s11053_s19  ;;  %p11059_p5 = scmp.lt.s32.totalorder %s11053_s19, %s11053_s19 }
   0xd   :  { %p11060_p6 = por %p11059_p5, %p11058_p4 }
   0xf   :  { %p11061_p7 = pnand %p11060_p6, %p11054_p3 }
  0x11   :  { %11064 = shalt.err (!%p11061_p7)
}
  0x12   :  { %s11139_s20 = smov 192   ;;  %s11140_s21 = smov 12  }
  0x13   :  { %52 = dma.hbm_to_vmem [thread:$0]  %s13023_s5, 3072, %s47_s26, [#allocation6], %s11139_s20, %s11139_s20, %s11140_s21  }
  0x14   :  { %s11065_s27 = scalar_lea.hbm %s13020_s2, 3072 }
  0x15   :  { %p11066_p8 = scmp.ne.s32.totalorder %s13020_s2, %s11065_s27  ;;  %p11069_p9 = scmp.lt.u32.totalorder %s11065_s27, %s13020_s2 }
  0x17   :  { %p11071_p10 = pnand %p11069_p9, %p11066_p8 }
  0x19   :  { %11074 = shalt.err (!%p11071_p10)
}
  0x1a   :  { %s11075_s16 = scalar_lea.vmem %s11218_s28, 3072  ;;  %p11080_p12 = scmp.lt.s32.totalorder %s11218_s28, %s11218_s28 }
  0x1b   :  { %p11076_p11 = scmp.ne.s32.totalorder %s11218_s28, %s11075_s16  ;;  %p11081_p13 = scmp.lt.s32.totalorder %s11075_s16, %s11075_s16 }
  0x1d   :  { %p11082_p0 = por %p11081_p13, %p11080_p12 }
  0x1f   :  { %p11083_p1 = pnand %p11082_p0, %p11076_p11 }
  0x21   :  { %11086 = shalt.err (!%p11083_p1)
}
  0x22   :  { %36 = dma.hbm_to_vmem [thread:$0]  %s13020_s2, 3072, %s11218_s28, [#allocation4], %s11139_s20, %s11139_s20, %s11140_s21  }
  0x23   :  { %s11141_s17 = smov [#allocation7]   ;;  %s11142_s19 = smov [#allocation8]  }
  0x24   :  { %s58_s18 = sshll.u32 %s11141_s17, 4  ;;  %s78_s22 = sshll.u32 %s11142_s19, 4  ;;  %s59_s18 = int_to_ptr.vmem [resolvable:$true] %s58_s18  ;;  %s11255_s22 = int_to_ptr.vmem [resolvable:$true] %s78_s22 }
  0x25   :  { %s11087_s25 = scalar_lea.hbm %s13024_s6, 3072 }
  0x26   :  { %p11088_p2 = scmp.ne.s32.totalorder %s13024_s6, %s11087_s25  ;;  %p11091_p3 = scmp.lt.u32.totalorder %s11087_s25, %s13024_s6 }
  0x28   :  { %p11093_p4 = pnand %p11091_p3, %p11088_p2 }
  0x2a   :  { %11096 = shalt.err (!%p11093_p4)
}
  0x2b   :  { %s11097_s2 = scalar_lea.vmem %s59_s18, 3072  ;;  %p11102_p6 = scmp.lt.s32.totalorder %s59_s18, %s59_s18 }
  0x2c   :  { %p11098_p5 = scmp.ne.s32.totalorder %s59_s18, %s11097_s2  ;;  %p11103_p7 = scmp.lt.s32.totalorder %s11097_s2, %s11097_s2 }
  0x2e   :  { %p11104_p8 = por %p11103_p7, %p11102_p6 }
  0x30   :  { %p11105_p9 = pnand %p11104_p8, %p11098_p5 }
  0x32   :  { %11108 = shalt.err (!%p11105_p9)
}
  0x33   :  { %64 = dma.hbm_to_vmem [thread:$0]  %s13024_s6, 3072, %s59_s18, [#allocation6], %s11139_s20, %s11139_s20, %s11140_s21  }
  0x34   :  { %s11109_s26 = scalar_lea.hbm %s13029_s11, 1024 }
  0x35   :  { %p11110_p10 = scmp.ne.s32.totalorder %s13029_s11, %s11109_s26  ;;  %p11113_p11 = scmp.lt.u32.totalorder %s11109_s26, %s13029_s11 }
  0x37   :  { %p11115_p12 = pnand %p11113_p11, %p11110_p10 }
  0x39   :  { %11118 = shalt.err (!%p11115_p12)
}
  0x3a   :  { %s11119_s25 = scalar_lea.vmem %s11255_s22, 1024  ;;  %p11124_p0 = scmp.lt.s32.totalorder %s11255_s22, %s11255_s22 }
  0x3b   :  { %p11120_p13 = scmp.ne.s32.totalorder %s11255_s22, %s11119_s25  ;;  %p11125_p1 = scmp.lt.s32.totalorder %s11119_s25, %s11119_s25 }
  0x3d   :  { %p11126_p2 = por %p11125_p1, %p11124_p0 }
  0x3f   :  { %p11127_p3 = pnand %p11126_p2, %p11120_p13 }
  0x41   :  { %11130 = shalt.err (!%p11127_p3)
}
  0x42   :  { %s11143_s6 = smov 64   ;;  %s11144_s20 = smov 4  }
  0x43   :  { %84 = dma.hbm_to_vmem [thread:$0]  %s13029_s11, 1024, %s11255_s22, [#allocation9], %s11143_s6, %s11143_s6, %s11144_s20  }
  0x44   :  { %11131 = dma.done.wait [#allocation4], 3072  }
  0x45   :  { %11132 = vsyncadd [#allocation4], 4294964224 }
  0x46   :  { %11133 = dma.done.wait [#allocation6], 6144  }
  0x47   :  { %11134 = vsyncadd [#allocation6], 4294961152 }
  0x48   :  { %11135 = dma.done.wait [#allocation9], 1024  }
  0x49   :  { %11136 = vsyncadd [#allocation9], 4294966272  ;;  %v13032_v0 = vmov 0   ;;  %v112_v1 = vld [vmem:[%s13019_s1] sm:$0xff]  ;;  %vm152_vm0 = vcmask 1043456   ;;  %v101_v3 = vld [vmem:[%s13018_s0 + $0x8] sm:$0xff] }
  0x4a   :  { %194 = vmatprep.mubr.bf16.mxu0 %v13032_v0  ;;  %v100_v2 = vld [vmem:[%s13018_s0] sm:$0xff]  ;;  %v8241_v4 = vcombine.high %v112_v1, %v112_v1  ;;  %v8240_v5 = vcombine.low %v112_v1, %v112_v1  ;;  %vm139_vm1 = vcmask 64512   ;;  %v10234_v10 = vld [vmem:[#allocation3 + $0x1c] ss:$12 sps:$4 sm:$0xff]   ;;  %v102_v12 = vld [vmem:[%s13018_s0 + $0x10] sm:$0xff]  ;;  %v13034_v22 = vmov 0.0  }
  0x4b   :  { %v108_v6 = vpack.c.bf16 %v101_v3, %v100_v2  ;;  %v10231_v7 = vld [vmem:[#allocation3 + $0x4] ss:$12 sps:$4 sm:$0xff]   ;;  %v10229_v9 = vld [vmem:[#allocation3] ss:$12 sps:$4 sm:$0xff]   ;;  %v103_v13 = vld [vmem:[%s13018_s0 + $0x18] sm:$0xff]  ;;  %vm11147_vm2 = vmmov 0  }
  0x4c   :  { %8243 = vmatprep.subr.msk.bf16.mxu0 %vm152_vm0, %v8241_v4  ;;  %v154_v8 = vsel %vm152_vm0, %v8240_v5, 0  ;;  %v10232_v11 = vld [vmem:[#allocation3 + $0x18] ss:$12 sps:$4 sm:$0xff]   ;;  %v10237_v14 = vld [vmem:[#allocation3 + $0x34] ss:$12 sps:$4 sm:$0xff]   ;;  %v109_v16 = vpack.c.bf16 %v103_v13, %v102_v12  ;;  %v105_v21 = vld [vmem:[%s13018_s0 + $0x28] sm:$0xff] }
  0x4d   :  { %9359 = vmatprep.mubr.msk.bf16.mxu1 %vm139_vm1, %v108_v6  ;;  %163 = vmatpush1.bf16.msra.mxu0 %v154_v8  ;;  %v10244_v15 = vld [vmem:[%s13019_s1 + $0x8] ss:$0 sps:$4 sm:$0xff]   ;;  %v10235_v17 = vld [vmem:[#allocation3 + $0x30] ss:$12 sps:$4 sm:$0xff]   ;;  %v10240_v18 = vld [vmem:[#allocation3 + $0x4c] ss:$12 sps:$4 sm:$0xff]  }
  0x4e   :  { %532 = vmatprep.subr.bf16.mxu0 %v10231_v7  ;;  %10215 = vmatprep.subr.msk.bf16.mxu1 %vm152_vm0, %v10244_v15  ;;  %v160_v19 = vsel %vm152_vm0, %v10244_v15, 0  ;;  %v104_v20 = vld [vmem:[%s13018_s0 + $0x20] sm:$0xff]  ;;  %v10251_v23 = vld [vmem:[#allocation3 + $0x8] ss:$12 sps:$4 sm:$0xff]   ;;  %v107_v29 = vld [vmem:[%s13018_s0 + $0x38] sm:$0xff] }
  0x4f   :  { %9358 = vmatpush3.bf16.msra.mxu1 %v160_v19  ;;  %v10238_v24 = vld [vmem:[#allocation3 + $0x48] ss:$12 sps:$4 sm:$0xff]   ;;  %v10243_v25 = vld [vmem:[#allocation3 + $0x64] ss:$12 sps:$4 sm:$0xff]   ;;  %v110_v26 = vpack.c.bf16 %v105_v21, %v104_v20  ;;  %v10255_v28 = vld [vmem:[#allocation3 + $0x20] ss:$12 sps:$4 sm:$0xff]  }
  0x50   :  { %8244 = vmatmul.mubr.msk.bf16.vlgmr.msra.gmra.mrb[0].mxu0 %vm139_vm1, %v108_v6  ;;  %9367 = vmatprep.subr.bf16.mxu1 %v13034_v22  ;;  %v106_v27 = vld [vmem:[%s13018_s0 + $0x30] sm:$0xff]  ;;  %v10241_v30 = vld [vmem:[#allocation3 + $0x60] ss:$12 sps:$4 sm:$0xff]   ;;  %v10247_v31 = vld [vmem:[#allocation3 + $0x7c] ss:$12 sps:$4 sm:$0xff]   ;;  %v116_v6 = vlaneseq }
  0x51   :  { %533 = vmatpush1.bf16.msra.mxu0 %v10229_v9  ;;  %204 = vmatprep.mubr.bf16.mxu0 %v13032_v0  ;;  %v111_v32 = vpack.c.bf16 %v107_v29, %v106_v27  ;;  %v10256_v33 = vld [vmem:[#allocation3 + $0x38] ss:$12 sps:$4 sm:$0xff]   ;;  %v10250_v35 = vld [vmem:[#allocation3 + $0x94] ss:$12 sps:$4 sm:$0xff]   ;;  %v10257_v36 = vld [vmem:[#allocation3 + $0x50] ss:$12 sps:$4 sm:$0xff]  }
  0x52   :  { %534 = vmatprep.subr.bf16.mxu0 %v10234_v10  ;;  %9360 = vmatmul.mubr.msk.bf16.vlgmr.msra.gmra.mrb[0].mxu1 %vm139_vm1, %v109_v16  ;;  %v10245_v34 = vld [vmem:[#allocation3 + $0x78] ss:$12 sps:$4 sm:$0xff]   ;;  %v10248_v37 = vld [vmem:[#allocation3 + $0x90] ss:$12 sps:$4 sm:$0xff]   ;;  %v10258_v39 = vld [vmem:[#allocation3 + $0x68] ss:$12 sps:$4 sm:$0xff]  }
  0x53   :  { %9368 = vmatpush3.bf16.msra.mxu1 %v10251_v23  ;;  %9363 = vmatprep.mubr.msk.bf16.mxu1 %vm139_vm1, %v110_v26  ;;  %v10254_v38 = vld [vmem:[#allocation3 + $0xac] ss:$12 sps:$4 sm:$0xff]   ;;  %v10252_v40 = vld [vmem:[#allocation3 + $0xa8] ss:$12 sps:$4 sm:$0xff]   ;;  %v10261_v43 = vld [vmem:[#allocation3 + $0xb0] ss:$12 sps:$4 sm:$0xff]  }
  0x54   :  { %9369 = vmatprep.subr.bf16.mxu1 %v13034_v22  ;;  %v10259_v41 = vld [vmem:[#allocation3 + $0x80] ss:$12 sps:$4 sm:$0xff]   ;;  %v10260_v42 = vld [vmem:[#allocation3 + $0x98] ss:$12 sps:$4 sm:$0xff]   ;;  %v10265_v46 = vld [vmem:[#allocation5 + $0x8] ss:$12 sps:$4 sm:$0xff]  }
  0x55   :  { %535 = vmatpush1.bf16.msra.mxu0 %v10232_v11  ;;  %v10264_v44 = vld [vmem:[#allocation5 + $0x4] ss:$12 sps:$4 sm:$0xff]   ;;  %v10262_v45 = vld [vmem:[#allocation5] ss:$12 sps:$4 sm:$0xff]   ;;  %v10268_v48 = vld [vmem:[#allocation5 + $0x1c] ss:$12 sps:$4 sm:$0xff]  }
  0x56   :  { %536 = vmatprep.subr.bf16.mxu0 %v10237_v14  ;;  %v10266_v47 = vld [vmem:[#allocation5 + $0x18] ss:$12 sps:$4 sm:$0xff]   ;;  %v10269_v49 = vld [vmem:[#allocation5 + $0x20] ss:$12 sps:$4 sm:$0xff]   ;;  %v10270_v51 = vld [vmem:[#allocation5 + $0x30] ss:$12 sps:$4 sm:$0xff]  }
  0x57   :  { %9370 = vmatpush3.bf16.msra.mxu1 %v10255_v28  ;;  %v10272_v50 = vld [vmem:[#allocation5 + $0x34] ss:$12 sps:$4 sm:$0xff]   ;;  %v10273_v52 = vld [vmem:[#allocation5 + $0x38] ss:$12 sps:$4 sm:$0xff]   ;;  %v10277_v55 = vld [vmem:[#allocation5 + $0x50] ss:$12 sps:$4 sm:$0xff]  }
  0x58   :  { %8245 = vmatmul.mubr.msk.bf16.gmra.mrb[4].mxu0 %vm139_vm1, %v109_v16  ;;  %9371 = vmatprep.subr.bf16.mxu1 %v13034_v22  ;;  %v10276_v53 = vld [vmem:[#allocation5 + $0x4c] ss:$12 sps:$4 sm:$0xff]   ;;  %v10274_v54 = vld [vmem:[#allocation5 + $0x48] ss:$12 sps:$4 sm:$0xff]   ;;  %v10280_v56 = vld [vmem:[#allocation5 + $0x64] ss:$12 sps:$4 sm:$0xff]  }
  0x59   :  { %537 = vmatpush1.bf16.msra.mxu0 %v10235_v17  ;;  %214 = vmatprep.mubr.bf16.mxu0 %v13032_v0  ;;  %v10278_v57 = vld [vmem:[#allocation5 + $0x60] ss:$12 sps:$4 sm:$0xff]   ;;  %v10281_v58 = vld [vmem:[#allocation5 + $0x68] ss:$12 sps:$4 sm:$0xff]   ;;  %v10282_v60 = vld [vmem:[#allocation5 + $0x78] ss:$12 sps:$4 sm:$0xff]  }
  0x5a   :  { %538 = vmatprep.subr.bf16.mxu0 %v10240_v18  ;;  %9364 = vmatmul.mubr.msk.bf16.gmra.mrb[4].mxu1 %vm139_vm1, %v111_v32  ;;  %v10284_v59 = vld [vmem:[#allocation5 + $0x7c] ss:$12 sps:$4 sm:$0xff]   ;;  %v10285_v61 = vld [vmem:[#allocation5 + $0x80] ss:$12 sps:$4 sm:$0xff]   ;;  %v10289_v1 = vld [vmem:[#allocation5 + $0x98] ss:$12 sps:$4 sm:$0xff]  }
  0x5b   :  { %9372 = vmatpush3.bf16.msra.mxu1 %v10256_v33  ;;  %9383 = vmatprep.mubr.msk.bf16.mxu1 %vm11147_vm2, %v13034_v22  ;;  %v10288_v62 = vld [vmem:[#allocation5 + $0x94] ss:$12 sps:$4 sm:$0xff]   ;;  %v10286_v63 = vld [vmem:[#allocation5 + $0x90] ss:$12 sps:$4 sm:$0xff]   ;;  %v10292_v2 = vld [vmem:[#allocation5 + $0xac] ss:$12 sps:$4 sm:$0xff]  }
  0x5c   :  { %9373 = vmatprep.subr.bf16.mxu1 %v13034_v22  ;;  %v10290_v3 = vld [vmem:[#allocation5 + $0xa8] ss:$12 sps:$4 sm:$0xff]   ;;  %v10293_v4 = vld [vmem:[#allocation5 + $0xb0] ss:$12 sps:$4 sm:$0xff]   ;;  %v11360_v7 = vshrl.u32 %v116_v6, 7 }
  0x5d   :  { %539 = vmatpush1.bf16.msra.mxu0 %v10238_v24  ;;  %v10296_v5 = vld [vmem:[#allocation7 + $0x4] ss:$12 sps:$4 sm:$0xff]   ;;  %v114_v11 = vld [vmem:[%s13021_s3] sm:$0x7] }
  0x5e   :  { %540 = vmatprep.subr.bf16.mxu0 %v10243_v25  ;;  %v118_v8 = vsub.s32 0, %v11360_v7  ;;  %v122_v9 = vsub.s32 1, %v11360_v7  ;;  %v126_v10 = vsub.s32 2, %v11360_v7 }
  0x5f   :  { %9374 = vmatpush3.bf16.msra.mxu1 %v10257_v36 }
  0x60   :  { %8246 = vmatmul.mubr.msk.bf16.gmra.mrb[8].mxu0 %vm139_vm1, %v110_v26  ;;  %9375 = vmatprep.subr.bf16.mxu1 %v13034_v22  ;;  %v119_v13 = vrot.slane %v114_v11, %v118_v8  ;;  %v123_v15 = vrot.slane %v114_v11, %v122_v9  ;;  %v11378_v20 = vrot.slane %v114_v11, %v126_v10 }
  0x61   :  { %541 = vmatpush1.bf16.msra.mxu0 %v10241_v30  ;;  %224 = vmatprep.mubr.bf16.mxu0 %v13032_v0 }
  0x62   :  { %542 = vmatprep.subr.bf16.mxu0 %v10247_v31 }
  0x63   :  { %9376 = vmatpush3.bf16.msra.mxu1 %v10258_v39 }
  0x64   :  { %9377 = vmatprep.subr.bf16.mxu1 %v13034_v22 }
  0x65   :  { %543 = vmatpush1.bf16.msra.mxu0 %v10245_v34 }
  0x66   :  { %544 = vmatprep.subr.bf16.mxu0 %v10250_v35 }
  0x67   :  { %9378 = vmatpush3.bf16.msra.mxu1 %v10259_v41 }
  0x68   :  { %8247 = vmatmul.mubr.msk.bf16.gmra.mrb[12].mxu0 %vm139_vm1, %v111_v32  ;;  %9379 = vmatprep.subr.bf16.mxu1 %v13034_v22 }
  0x69   :  { %545 = vmatpush1.bf16.msra.mxu0 %v10248_v37  ;;  %564 = vmatprep.mubr.bf16.mxu0 %v13032_v0 }
  0x6a   :  { %546 = vmatprep.subr.bf16.mxu0 %v10254_v38 }
  0x6b   :  { %9380 = vmatpush3.bf16.msra.mxu1 %v10260_v42 }
  0x6c   :  { %9381 = vmatprep.subr.bf16.mxu1 %v13034_v22 }
  0x6d   :  { %547 = vmatpush1.bf16.msra.mxu0 %v10252_v40 }
  0x6e   :  { %796 = vmatprep.subr.bf16.mxu0 %v10264_v44 }
  0x6f   :  { %9382 = vmatpush3.bf16.msra.mxu1 %v10261_v43 }
  0x70   :  { %565 = vmatmul.mubr.bf16.vlgmr.msra.gmra.mrb[16].mxu0 %v13032_v0  ;;  %9387 = vmatprep.subr.bf16.mxu1 %v13034_v22 }
  0x71   :  { %828 = vmatprep.mubr.bf16.mxu0 %v13032_v0  ;;  %797 = vmatpush1.bf16.msra.mxu0 %v10262_v45 }
  0x72   :  { %9384 = vmatmul.mubr.bf16.vlgmr.msra.gmra.mrb[8].mxu1 %v13032_v0  ;;  %798 = vmatprep.subr.bf16.mxu0 %v10268_v48 }
  0x73   :  { %9403 = vmatprep.mubr.msk.bf16.mxu1 %vm11147_vm2, %v13034_v22  ;;  %9388 = vmatpush3.bf16.msra.mxu1 %v10265_v46 }
  0x74   :  { %9389 = vmatprep.subr.bf16.mxu1 %v13034_v22 }
  0x75   :  { %799 = vmatpush1.bf16.msra.mxu0 %v10266_v47 }
  0x76   :  { %800 = vmatprep.subr.bf16.mxu0 %v10272_v50 }
  0x77   :  { %9390 = vmatpush3.bf16.msra.mxu1 %v10269_v49 }
  0x78   :  { %9391 = vmatprep.subr.bf16.mxu1 %v13034_v22 }
  0x79   :  { %801 = vmatpush1.bf16.msra.mxu0 %v10270_v51 }
  0x7a   :  { %802 = vmatprep.subr.bf16.mxu0 %v10276_v53 }
  0x7b   :  { %9392 = vmatpush3.bf16.msra.mxu1 %v10273_v52 }
  0x7c   :  { %9393 = vmatprep.subr.bf16.mxu1 %v13034_v22 }
  0x7d   :  { %803 = vmatpush1.bf16.msra.mxu0 %v10274_v54 }
  0x7e   :  { %804 = vmatprep.subr.bf16.mxu0 %v10280_v56 }
  0x7f   :  { %9394 = vmatpush3.bf16.msra.mxu1 %v10277_v55 }
  0x80   :  { %9395 = vmatprep.subr.bf16.mxu1 %v13034_v22 }
  0x81   :  { %805 = vmatpush1.bf16.msra.mxu0 %v10278_v57 }
  0x82   :  { %806 = vmatprep.subr.bf16.mxu0 %v10284_v59 }
  0x83   :  { %9396 = vmatpush3.bf16.msra.mxu1 %v10281_v58 }
  0x84   :  { %9397 = vmatprep.subr.bf16.mxu1 %v13034_v22 }
  0x85   :  { %807 = vmatpush1.bf16.msra.mxu0 %v10282_v60 }
  0x86   :  { %808 = vmatprep.subr.bf16.mxu0 %v10288_v62 }
  0x87   :  { %9398 = vmatpush3.bf16.msra.mxu1 %v10285_v61 }
  0x88   :  { %9399 = vmatprep.subr.bf16.mxu1 %v13034_v22 }
  0x89   :  { %809 = vmatpush1.bf16.msra.mxu0 %v10286_v63 }
  0x8a   :  { %810 = vmatprep.subr.bf16.mxu0 %v10292_v2 }
  0x8b   :  { %9400 = vmatpush3.bf16.msra.mxu1 %v10289_v1 }
  0x8c   :  { %9401 = vmatprep.subr.bf16.mxu1 %v13034_v22 }
  0x8d   :  { %811 = vmatpush1.bf16.msra.mxu0 %v10290_v3 }
  0x8e   :  { %1037 = vmatprep.subr.bf16.mxu0 %v10296_v5 }
  0x8f   :  { %9402 = vmatpush3.bf16.msra.mxu1 %v10293_v4 }
  0x90   :  { %9407 = vmatprep.subr.bf16.mxu1 %v13034_v22 }
 0x123   :  { %v196_v12 = vpop.f32.mrb[0].mxu0 }
 0x124   :  { %v198_v14 = vpop.f32.mrb[1].mxu0  ;;  %v197_v61 = vadd.f32 %v196_v12, %v119_v13  ;;  %v11428_v12 = vld [vmem:[%s13022_s4] ss:$0 sm:$0xff] }
 0x125   :  { %v200_v16 = vpop.f32.mrb[2].mxu0  ;;  %v9361_v23 = vpop.f32.mrb[0].mxu1  ;;  %v199_v62 = vadd.f32 %v198_v14, %v123_v15 }
 0x126   :  { %v11372_v17 = vadd.f32 %v200_v16, %v119_v13  ;;  %v202_v18 = vpop.f32.mrb[3].mxu0  ;;  %v11383_v26 = vadd.f32 %v9361_v23, %v11378_v20  ;;  %v269_v27 = vpop.f32.mrb[1].mxu1 }
 0x127   :  { %v11374_v19 = vadd.f32 %v202_v18, %v123_v15  ;;  %v9362_v30 = vpop.f32.mrb[2].mxu1 }
 0x128   :  { %v11390_v33 = vadd.f32 %v9362_v30, %v11378_v20  ;;  %v272_v34 = vpop.f32.mrb[3].mxu1 }
 0x129   :  { %v11395_v36 = vadd.f32 %v272_v34, %v11378_v20  ;;  %v270_v34 = vadd.f32 %v269_v27, %v11378_v20  ;;  %v11446_v27 = vld [vmem:[#allocation7 + $0x34] ss:$12 sps:$4 sm:$0xff]  }
 0x12b   :  { %v206_v21 = vpop.f32.mrb[4].mxu0 }
 0x12c   :  { %v11380_v24 = vadd.f32 %v206_v21, %v119_v13  ;;  %v208_v25 = vpop.f32.mrb[5].mxu0 }
 0x12d   :  { %v11385_v28 = vadd.f32 %v208_v25, %v123_v15  ;;  %v210_v29 = vpop.f32.mrb[6].mxu0  ;;  %v9365_v38 = vpop.f32.mrb[4].mxu1 }
 0x12e   :  { %v11387_v31 = vadd.f32 %v210_v29, %v119_v13  ;;  %v212_v32 = vpop.f32.mrb[7].mxu0  ;;  %v11400_v41 = vadd.f32 %v9365_v38, %v11378_v20  ;;  %v285_v42 = vpop.f32.mrb[5].mxu1 }
 0x12f   :  { %v11392_v35 = vadd.f32 %v212_v32, %v123_v15  ;;  %v11405_v45 = vadd.f32 %v285_v42, %v11378_v20  ;;  %v9366_v46 = vpop.f32.mrb[6].mxu1 }
 0x130   :  { %13067 = vst [vmem:[#allocation14_spill] sm:$0xff] %v11400_v41  ;;  %v11410_v49 = vadd.f32 %v9366_v46, %v11378_v20  ;;  %v288_v50 = vpop.f32.mrb[7].mxu1 }
 0x131   :  { %13069 = vst [vmem:[#allocation16_spill] sm:$0xff] %v11405_v45  ;;  %v11415_v52 = vadd.f32 %v288_v50, %v11378_v20  ;;  %v10315_v50 = vld [vmem:[#allocation7 + $0x8] ss:$12 sps:$4 sm:$0xff]   ;;  %v10319_v20 = vld [vmem:[#allocation7 + $0x20] ss:$12 sps:$4 sm:$0xff]  }
 0x132   :  { %13071 = vst [vmem:[#allocation18_spill] sm:$0xff] %v11410_v49  ;;  %v10473_v45 = vld [vmem:[#allocation7 + $0x98] ss:$12 sps:$4 sm:$0xff]  }
 0x133   :  { %v216_v37 = vpop.f32.mrb[8].mxu0  ;;  %13073 = vst [vmem:[#allocation20_spill] sm:$0xff] %v11415_v52 }
 0x134   :  { %v11397_v39 = vadd.f32 %v216_v37, %v119_v13  ;;  %v218_v40 = vpop.f32.mrb[9].mxu0 }
 0x135   :  { %v11402_v43 = vadd.f32 %v218_v40, %v123_v15  ;;  %v220_v44 = vpop.f32.mrb[10].mxu0 }
 0x136   :  { %13066 = vst [vmem:[#allocation13_spill] sm:$0xff] %v11397_v39  ;;  %v11407_v47 = vadd.f32 %v220_v44, %v119_v13  ;;  %v222_v48 = vpop.f32.mrb[11].mxu0  ;;  %v10477_v39 = vld [vmem:[#allocation7 + $0xb0] ss:$12 sps:$4 sm:$0xff]  }
 0x137   :  { %13068 = vst [vmem:[#allocation15_spill] sm:$0xff] %v11402_v43  ;;  %v11412_v51 = vadd.f32 %v222_v48, %v123_v15  ;;  %v11432_v48 = vld [vmem:[#allocation7] ss:$12 sps:$4 sm:$0xff]   ;;  %v11911_v43 = vld [vmem:[#allocation7 + $0xa8] ss:$12 sps:$4 sm:$0xff]  }
 0x138   :  { %13070 = vst [vmem:[#allocation17_spill] sm:$0xff] %v11407_v47  ;;  %v11904_v47 = vld [vmem:[#allocation7 + $0x90] ss:$12 sps:$4 sm:$0xff]   ;;  %13091 = vst [vmem:[#allocation36_spill] sm:$0xff] %v11911_v43 }
 0x139   :  { %13072 = vst [vmem:[#allocation19_spill] sm:$0xff] %v11412_v51  ;;  %v11855_v51 = vld [vmem:[#allocation7] ss:$12 sps:$4 sm:$0xff]   ;;  %13089 = vst [vmem:[#allocation34_spill] sm:$0xff] %v11904_v47 }
 0x13b   :  { %v226_v53 = vpop.f32.mrb[12].mxu0 }
 0x13c   :  { %v11417_v54 = vadd.f32 %v226_v53, %v119_v13  ;;  %v228_v55 = vpop.f32.mrb[13].mxu0 }
 0x13d   :  { %v11419_v56 = vadd.f32 %v228_v55, %v123_v15  ;;  %v230_v57 = vpop.f32.mrb[14].mxu0  ;;  %v11436_v55 = vld [vmem:[#allocation7 + $0x1c] ss:$12 sps:$4 sm:$0xff]  }
 0x13e   :  { %13074 = vst [vmem:[#allocation21_spill] sm:$0xff] %v11417_v54  ;;  %v11421_v58 = vadd.f32 %v230_v57, %v119_v13  ;;  %v232_v59 = vpop.f32.mrb[15].mxu0 }
 0x13f   :  { %13075 = vst [vmem:[#allocation22_spill] sm:$0xff] %v11419_v56  ;;  %v11423_v60 = vadd.f32 %v232_v59, %v123_v15  ;;  %v11442_v59 = vld [vmem:[#allocation7 + $0x18] ss:$12 sps:$4 sm:$0xff]  }
 0x140   :  { %13076 = vst [vmem:[#allocation23_spill] sm:$0xff] %v11421_v58 }
 0x141   :  { %13077 = vst [vmem:[#allocation24_spill] sm:$0xff] %v11423_v60 }
 0x143   :  { %v566_v63 = vpop.f32.mrb[16].mxu0 }
 0x144   :  { %v613_v1 = vadd.f32 %v566_v63, %v197_v61  ;;  %v568_v2 = vpop.f32.mrb[17].mxu0  ;;  %v11451_v61 = vld [vmem:[#allocation7 + $0x30] ss:$12 sps:$4 sm:$0xff]   ;;  %v11456_v63 = vld [vmem:[#allocation7 + $0x4c] ss:$12 sps:$4 sm:$0xff]  }
 0x145   :  { %v620_v3 = vadd.f32 %v568_v2, %v199_v62  ;;  %v570_v4 = vpop.f32.mrb[18].mxu0  ;;  %v607_v16 = vpop.f32.mrb[8].mxu1  ;;  %v10320_v62 = vld [vmem:[#allocation7 + $0x38] ss:$12 sps:$4 sm:$0xff]   ;;  %v10321_v2 = vld [vmem:[#allocation7 + $0x50] ss:$12 sps:$4 sm:$0xff]  }
 0x146   :  { %v8280_v5 = vmul.f32 -1.442695, %v613_v1  ;;  %v571_v6 = vpop.f32.mrb[19].mxu0  ;;  %v9385_v18 = vpop.f32.mrb[9].mxu1  ;;  %v627_v13 = vadd.f32 %v11428_v12, %v607_v16  ;;  %v11462_v1 = vld [vmem:[#allocation7 + $0x48] ss:$12 sps:$4 sm:$0xff]  }
 0x147   :  { %v8281_v11 = vmul.f32 -1.442695, %v620_v3  ;;  %v610_v21 = vpop.f32.mrb[10].mxu1  ;;  %v11465_v3 = vld [vmem:[#allocation7 + $0x64] ss:$12 sps:$4 sm:$0xff]  }
 0x148   :  { %10838 = vpow2.f32 %v8280_v5  ;;  %v9386_v23 = vpop.f32.mrb[11].mxu1  ;;  %v11469_v4 = vld [vmem:[#allocation7 + $0x60] ss:$12 sps:$4 sm:$0xff]   ;;  %v10322_v5 = vld [vmem:[#allocation7 + $0x68] ss:$12 sps:$4 sm:$0xff]  }
 0x149   :  { %10840 = vpow2.f32 %v8281_v11  ;;  %v11472_v6 = vld [vmem:[#allocation7 + $0x7c] ss:$12 sps:$4 sm:$0xff]   ;;  %v11476_v11 = vld [vmem:[#allocation7 + $0x78] ss:$12 sps:$4 sm:$0xff]   ;;  %v10323_v16 = vld [vmem:[#allocation7 + $0x80] ss:$12 sps:$4 sm:$0xff]  }
 0x14a   :  { %v11479_v18 = vld [vmem:[#allocation7 + $0x94] ss:$12 sps:$4 sm:$0xff]   ;;  %v11483_v21 = vld [vmem:[#allocation7 + $0x90] ss:$12 sps:$4 sm:$0xff]   ;;  %v10324_v23 = vld [vmem:[#allocation7 + $0x98] ss:$12 sps:$4 sm:$0xff]  }
 0x152   :  { %v10839_v25 = vpop.eup %10838 }
 0x153   :  { %v10841_v29 = vpop.eup %10840  ;;  %v617_v30 = vadd.f32 1.0, %v10839_v25  ;;  %v11486_v25 = vld [vmem:[#allocation7 + $0xac] ss:$12 sps:$4 sm:$0xff]  }
 0x154   :  { %v624_v32 = vadd.f32 1.0, %v10841_v29  ;;  %v11490_v29 = vld [vmem:[#allocation7 + $0xa8] ss:$12 sps:$4 sm:$0xff]  }
 0x155   :  { %10842 = vrcp.f32 %v617_v30  ;;  %v10325_v30 = vld [vmem:[#allocation7 + $0xb0] ss:$12 sps:$4 sm:$0xff]  }
 0x156   :  { %10844 = vrcp.f32 %v624_v32  ;;  %v10326_v32 = vld [vmem:[%s13027_s9] sm:$0xff]  }
 0x15f   :  { %v10843_v14 = vpop.eup %10842 }
 0x160   :  { %v10845_v15 = vpop.eup %10844  ;;  %v628_v37 = vmul.f32 %v10843_v14, %v627_v13  ;;  %v10327_v13 = vld [vmem:[%s13027_s9 + $0x8] sm:$0xff]   ;;  %v10328_v14 = vld [vmem:[%s13027_s9 + $0x10] sm:$0xff]  }
 0x161   :  { %v631_v38 = vsub.f32 1.0, %v10845_v15  ;;  %v633_v40 = vmul.f32 0.0, %v10845_v15  ;;  %v10329_v15 = vld [vmem:[%s13027_s9 + $0x18] sm:$0xff]  }
 0x162   :  { %v629_v42 = vadd.f32 %v628_v37, %v270_v34  ;;  %v10330_v34 = vld [vmem:[%s13027_s9 + $0x20] sm:$0xff]   ;;  %v10331_v37 = vld [vmem:[%s13027_s9 + $0x28] sm:$0xff]  }
 0x164   :  { %10846 = vtanh.f32 %v629_v42  ;;  %v10998_v42 = vld [vmem:[#allocation3 + $0x4] ss:$12 sps:$4 sm:$0xff]  }
 0x16e   :  { %v10847_v44 = vpop.eup %10846 }
 0x16f   :  { %v632_v46 = vmul.f32 %v10847_v44, %v631_v38  ;;  %v10332_v38 = vld [vmem:[%s13027_s9 + $0x30] sm:$0xff]   ;;  %v10334_v44 = vld [vmem:[#allocation8] sm:$0xff]  }
 0x171   :  { %v11434_v53 = vadd.f32 %v633_v40, %v632_v46  ;;  %v10333_v40 = vld [vmem:[%s13027_s9 + $0x38] sm:$0xff]   ;;  %v10335_v46 = vld [vmem:[#allocation8 + $0x8] sm:$0xff]  }
 0x173   :  { %v11440_v57 = vpack.c.bf16 %v11434_v53, %v11434_v53 }
 0x175   :  { %829 = vmatmul.mubr.bf16.vlgmr.msra.gmra.mrb[20].mxu0 %v11440_v57  ;;  %9404 = vmatmul.mubr.bf16.vlgmr.msra.gmra.mrb[12].mxu1 %v11440_v57 }
 0x176   :  { %1038 = vmatpush1.bf16.msra.mxu0 %v11432_v48  ;;  %9408 = vmatpush3.bf16.msra.mxu1 %v10315_v50  ;;  %v10336_v50 = vld [vmem:[#allocation8 + $0x10] sm:$0xff]  }
 0x177   :  { %1039 = vmatprep.subr.bf16.mxu0 %v11436_v55  ;;  %9409 = vmatprep.subr.bf16.mxu1 %v13034_v22 }
 0x178   :  { %1069 = vmatprep.mubr.bf16.mxu0 %v13032_v0  ;;  %9423 = vmatprep.mubr.msk.bf16.mxu1 %vm11147_vm2, %v13034_v22 }
 0x17a   :  { %1040 = vmatpush1.bf16.msra.mxu0 %v11442_v59  ;;  %9410 = vmatpush3.bf16.msra.mxu1 %v10319_v20  ;;  %v10337_v20 = vld [vmem:[#allocation8 + $0x18] sm:$0xff]  }
 0x17b   :  { %1041 = vmatprep.subr.bf16.mxu0 %v11446_v27  ;;  %9411 = vmatprep.subr.bf16.mxu1 %v13034_v22 }
 0x17e   :  { %1042 = vmatpush1.bf16.msra.mxu0 %v11451_v61  ;;  %9412 = vmatpush3.bf16.msra.mxu1 %v10320_v62 }
 0x17f   :  { %1043 = vmatprep.subr.bf16.mxu0 %v11456_v63  ;;  %9413 = vmatprep.subr.bf16.mxu1 %v13034_v22 }
 0x182   :  { %1044 = vmatpush1.bf16.msra.mxu0 %v11462_v1  ;;  %9414 = vmatpush3.bf16.msra.mxu1 %v10321_v2  ;;  %v10338_v2 = vld [vmem:[#allocation8 + $0x20] sm:$0xff]  }
 0x183   :  { %1045 = vmatprep.subr.bf16.mxu0 %v11465_v3  ;;  %9415 = vmatprep.subr.bf16.mxu1 %v13034_v22 }
 0x186   :  { %1046 = vmatpush1.bf16.msra.mxu0 %v11469_v4  ;;  %9416 = vmatpush3.bf16.msra.mxu1 %v10322_v5 }
 0x187   :  { %1047 = vmatprep.subr.bf16.mxu0 %v11472_v6  ;;  %9417 = vmatprep.subr.bf16.mxu1 %v13034_v22 }
 0x18a   :  { %1048 = vmatpush1.bf16.msra.mxu0 %v11476_v11  ;;  %9418 = vmatpush3.bf16.msra.mxu1 %v10323_v16 }
 0x18b   :  { %1049 = vmatprep.subr.bf16.mxu0 %v11479_v18  ;;  %9419 = vmatprep.subr.bf16.mxu1 %v13034_v22 }
 0x18e   :  { %1050 = vmatpush1.bf16.msra.mxu0 %v11483_v21  ;;  %9420 = vmatpush3.bf16.msra.mxu1 %v10324_v23 }
 0x18f   :  { %1051 = vmatprep.subr.bf16.mxu0 %v11486_v25  ;;  %9421 = vmatprep.subr.bf16.mxu1 %v13034_v22 }
 0x192   :  { %1052 = vmatpush1.bf16.msra.mxu0 %v11490_v29  ;;  %9422 = vmatpush3.bf16.msra.mxu1 %v10325_v30  ;;  %v10339_v30 = vld [vmem:[#allocation8 + $0x28] sm:$0xff]  }
 0x193   :  { %9427 = vmatprep.subr.bf16.mxu0 %v13034_v22  ;;  %9447 = vmatprep.subr.bf16.mxu1 %v13034_v22 }
 0x195   :  { %1070 = vmatmul.mubr.bf16.vlgmr.msra.gmra.mrb[20].mxu0 %v13032_v0  ;;  %9424 = vmatmul.mubr.bf16.vlgmr.msra.gmra.mrb[16].mxu1 %v13032_v0 }
 0x196   :  { %9443 = vmatprep.mubr.msk.bf16.mxu0 %vm11147_vm2, %v13034_v22  ;;  %9463 = vmatprep.mubr.msk.bf16.mxu1 %vm11147_vm2, %v13034_v22 }
 0x197   :  { %9428 = vmatpush3.bf16.msra.mxu0 %v10326_v32  ;;  %9448 = vmatpush3.bf16.msra.mxu1 %v10334_v44  ;;  %v10340_v32 = vld [vmem:[#allocation8 + $0x30] sm:$0xff]  }
 0x198   :  { %9429 = vmatprep.subr.bf16.mxu0 %v13034_v22  ;;  %9449 = vmatprep.subr.bf16.mxu1 %v13034_v22 }
 0x19b   :  { %9430 = vmatpush3.bf16.msra.mxu0 %v10327_v13  ;;  %9450 = vmatpush3.bf16.msra.mxu1 %v10335_v46  ;;  %v338_v13 = vld [vmem:[%s13025_s7] sm:$0x7] }
 0x19c   :  { %9431 = vmatprep.subr.bf16.mxu0 %v13034_v22  ;;  %9451 = vmatprep.subr.bf16.mxu1 %v13034_v22 }
 0x19f   :  { %9432 = vmatpush3.bf16.msra.mxu0 %v10328_v14  ;;  %9452 = vmatpush3.bf16.msra.mxu1 %v10336_v50  ;;  %v11546_v14 = vrot.slane %v338_v13, %v118_v8 }
 0x1a0   :  { %9433 = vmatprep.subr.bf16.mxu0 %v13034_v22  ;;  %9453 = vmatprep.subr.bf16.mxu1 %v13034_v22 }
 0x1a3   :  { %9434 = vmatpush3.bf16.msra.mxu0 %v10329_v15  ;;  %9454 = vmatpush3.bf16.msra.mxu1 %v10337_v20 }
 0x1a4   :  { %9435 = vmatprep.subr.bf16.mxu0 %v13034_v22  ;;  %9455 = vmatprep.subr.bf16.mxu1 %v13034_v22 }
 0x1a7   :  { %9436 = vmatpush3.bf16.msra.mxu0 %v10330_v34  ;;  %9456 = vmatpush3.bf16.msra.mxu1 %v10338_v2  ;;  %v11550_v34 = vrot.slane %v338_v13, %v122_v9 }
 0x1a8   :  { %9437 = vmatprep.subr.bf16.mxu0 %v13034_v22  ;;  %9457 = vmatprep.subr.bf16.mxu1 %v13034_v22 }
 0x1ab   :  { %9438 = vmatpush3.bf16.msra.mxu0 %v10331_v37  ;;  %9458 = vmatpush3.bf16.msra.mxu1 %v10339_v30  ;;  %v11557_v30 = vld [vmem:[%s13026_s8] ss:$0 sm:$0xff] }
 0x1ac   :  { %9439 = vmatprep.subr.bf16.mxu0 %v13034_v22  ;;  %9459 = vmatprep.subr.bf16.mxu1 %v13034_v22 }
 0x1af   :  { %9440 = vmatpush3.bf16.msra.mxu0 %v10332_v38  ;;  %9460 = vmatpush3.bf16.msra.mxu1 %v10340_v32  ;;  %v11561_v32 = vrot.slane %v338_v13, %v126_v10  ;;  %v10999_v10 = vld [vmem:[#allocation3] ss:$12 sps:$4 sm:$0xff]   ;;  %v11001_v13 = vld [vmem:[#allocation3 + $0x18] ss:$12 sps:$4 sm:$0xff]  }
 0x1b0   :  { %9441 = vmatprep.subr.bf16.mxu0 %v13034_v22  ;;  %9461 = vmatprep.subr.bf16.mxu1 %v13034_v22 }
 0x1b3   :  { %9442 = vmatpush3.bf16.msra.mxu0 %v10333_v40 }
 0x1b4   :  { %1515 = vmatprep.subr.bf16.mxu0 %v10998_v42 }
 0x248   :  { %v871_v62 = vpop.f32.mrb[12].mxu1 }
 0x249   :  { %v9405_v5 = vpop.f32.mrb[13].mxu1 }
 0x24a   :  { %v874_v16 = vpop.f32.mrb[14].mxu1 }
 0x24b   :  { %v9406_v23 = vpop.f32.mrb[15].mxu1 }
 0x268   :  { %v1071_v15 = vpop.f32.mrb[20].mxu0  ;;  %v1112_v37 = vpop.f32.mrb[16].mxu1 }
 0x269   :  { %v10167_v38 = vadd.f32 %v1071_v15, %v11546_v14  ;;  %v1073_v40 = vpop.f32.mrb[21].mxu0  ;;  %v9425_v42 = vpop.f32.mrb[17].mxu1 }
 0x26a   :  { %v1075_v44 = vpop.f32.mrb[22].mxu0  ;;  %v1115_v46 = vpop.f32.mrb[18].mxu1  ;;  %v10168_v5 = vadd.f32 %v1073_v40, %v11550_v34  ;;  %v872_v42 = vadd.f32 %v871_v62, %v11561_v32  ;;  %v11000_v62 = vld [vmem:[#allocation3 + $0x1c] ss:$12 sps:$4 sm:$0xff]  }
 0x26b   :  { %v8330_v50 = vmul.f32 -1.442695, %v10167_v38  ;;  %v1076_v20 = vpop.f32.mrb[23].mxu0  ;;  %v9426_v2 = vpop.f32.mrb[19].mxu1  ;;  %v1132_v38 = vadd.f32 %v11557_v30, %v1112_v37  ;;  %v11002_v37 = vld [vmem:[#allocation3 + $0x34] ss:$12 sps:$4 sm:$0xff]  }
 0x26c   :  { %v8331_v8 = vmul.f32 -1.442695, %v10168_v5 }
 0x26d   :  { %10848 = vpow2.f32 %v8330_v50 }
 0x26e   :  { %10850 = vpow2.f32 %v8331_v8 }
 0x277   :  { %v10849_v16 = vpop.eup %10848 }
 0x278   :  { %v1122_v23 = vadd.f32 1.0, %v10849_v16  ;;  %v10851_v9 = vpop.eup %10850 }
 0x279   :  { %v1129_v15 = vadd.f32 1.0, %v10851_v9  ;;  %v11004_v9 = vld [vmem:[#allocation3 + $0x4c] ss:$12 sps:$4 sm:$0xff]  }
 0x27a   :  { %10852 = vrcp.f32 %v1122_v23  ;;  %v11003_v23 = vld [vmem:[#allocation3 + $0x30] ss:$12 sps:$4 sm:$0xff]  }
 0x27b   :  { %10854 = vrcp.f32 %v1129_v15  ;;  %v11005_v15 = vld [vmem:[#allocation3 + $0x48] ss:$12 sps:$4 sm:$0xff]  }
 0x284   :  { %v10853_v40 = vpop.eup %10852 }
 0x285   :  { %v1133_v44 = vmul.f32 %v10853_v40, %v1132_v38  ;;  %v10855_v50 = vpop.eup %10854  ;;  %v11006_v38 = vld [vmem:[#allocation3 + $0x64] ss:$12 sps:$4 sm:$0xff]   ;;  %v11007_v40 = vld [vmem:[#allocation3 + $0x60] ss:$12 sps:$4 sm:$0xff]  }
 0x286   :  { %v1136_v20 = vsub.f32 1.0, %v10855_v50  ;;  %v1138_v8 = vmul.f32 0.0, %v10855_v50  ;;  %v11011_v50 = vld [vmem:[#allocation3 + $0x90] ss:$12 sps:$4 sm:$0xff]  }
 0x287   :  { %v1134_v46 = vadd.f32 %v1133_v44, %v872_v42  ;;  %v11008_v42 = vld [vmem:[#allocation3 + $0x7c] ss:$12 sps:$4 sm:$0xff]   ;;  %v11009_v44 = vld [vmem:[#allocation3 + $0x78] ss:$12 sps:$4 sm:$0xff]  }
 0x289   :  { %10856 = vtanh.f32 %v1134_v46  ;;  %v11010_v46 = vld [vmem:[#allocation3 + $0x94] ss:$12 sps:$4 sm:$0xff]  }
 0x293   :  { %v10857_v2 = vpop.eup %10856 }
 0x294   :  { %v1137_v5 = vmul.f32 %v10857_v2, %v1136_v20  ;;  %v11012_v20 = vld [vmem:[#allocation3 + $0xac] ss:$12 sps:$4 sm:$0xff]   ;;  %v11013_v2 = vld [vmem:[#allocation3 + $0xa8] ss:$12 sps:$4 sm:$0xff]  }
 0x296   :  { %v11565_v16 = vadd.f32 %v1138_v8, %v1137_v5  ;;  %v11014_v5 = vld [vmem:[#allocation5 + $0x4] ss:$12 sps:$4 sm:$0xff]   ;;  %v11015_v8 = vld [vmem:[#allocation5] ss:$12 sps:$4 sm:$0xff]  }
 0x298   :  { %v11569_v7 = vpack.c.bf16 %v11565_v16, %v11565_v16 }
 0x29a   :  { %9444 = vmatmul.mubr.bf16.vlgmr.msra.gmra.mrb[24].mxu0 %v11569_v7 }
 0x29b   :  { %1516 = vmatpush1.bf16.msra.mxu0 %v10999_v10  ;;  %1547 = vmatprep.mubr.bf16.mxu0 %v13032_v0  ;;  %v11016_v10 = vld [vmem:[#allocation5 + $0x1c] ss:$12 sps:$4 sm:$0xff]  }
 0x29c   :  { %1517 = vmatprep.subr.bf16.mxu0 %v11000_v62  ;;  %v11017_v62 = vld [vmem:[#allocation5 + $0x18] ss:$12 sps:$4 sm:$0xff]  }
 0x29f   :  { %1518 = vmatpush1.bf16.msra.mxu0 %v11001_v13  ;;  %v11018_v13 = vld [vmem:[#allocation5 + $0x34] ss:$12 sps:$4 sm:$0xff]  }
 0x2a0   :  { %1519 = vmatprep.subr.bf16.mxu0 %v11002_v37  ;;  %v11019_v37 = vld [vmem:[#allocation5 + $0x30] ss:$12 sps:$4 sm:$0xff]  }
 0x2a3   :  { %1520 = vmatpush1.bf16.msra.mxu0 %v11003_v23  ;;  %v11020_v23 = vld [vmem:[#allocation5 + $0x4c] ss:$12 sps:$4 sm:$0xff]  }
 0x2a4   :  { %1521 = vmatprep.subr.bf16.mxu0 %v11004_v9  ;;  %v11021_v9 = vld [vmem:[#allocation5 + $0x48] ss:$12 sps:$4 sm:$0xff]  }
 0x2a7   :  { %1522 = vmatpush1.bf16.msra.mxu0 %v11005_v15  ;;  %v11022_v15 = vld [vmem:[#allocation5 + $0x64] ss:$12 sps:$4 sm:$0xff]  }
 0x2a8   :  { %1523 = vmatprep.subr.bf16.mxu0 %v11006_v38  ;;  %v11023_v38 = vld [vmem:[#allocation5 + $0x60] ss:$12 sps:$4 sm:$0xff]  }
 0x2ab   :  { %1524 = vmatpush1.bf16.msra.mxu0 %v11007_v40  ;;  %v11024_v40 = vld [vmem:[#allocation5 + $0x7c] ss:$12 sps:$4 sm:$0xff]  }
 0x2ac   :  { %1525 = vmatprep.subr.bf16.mxu0 %v11008_v42  ;;  %v11025_v42 = vld [vmem:[#allocation5 + $0x78] ss:$12 sps:$4 sm:$0xff]  }
 0x2af   :  { %1526 = vmatpush1.bf16.msra.mxu0 %v11009_v44  ;;  %v11026_v44 = vld [vmem:[#allocation5 + $0x94] ss:$12 sps:$4 sm:$0xff]  }
 0x2b0   :  { %1527 = vmatprep.subr.bf16.mxu0 %v11010_v46  ;;  %v11027_v46 = vld [vmem:[#allocation5 + $0x90] ss:$12 sps:$4 sm:$0xff]  }
 0x2b3   :  { %1528 = vmatpush1.bf16.msra.mxu0 %v11011_v50  ;;  %v11028_v50 = vld [vmem:[#allocation5 + $0xac] ss:$12 sps:$4 sm:$0xff]  }
 0x2b4   :  { %1529 = vmatprep.subr.bf16.mxu0 %v11012_v20  ;;  %v11029_v20 = vld [vmem:[#allocation5 + $0xa8] ss:$12 sps:$4 sm:$0xff]  }
 0x2b7   :  { %1530 = vmatpush1.bf16.msra.mxu0 %v11013_v2  ;;  %v11030_v2 = vld [vmem:[#allocation7 + $0x4] ss:$12 sps:$4 sm:$0xff]  }
 0x2b8   :  { %1779 = vmatprep.subr.bf16.mxu0 %v11014_v5  ;;  %v10341_v5 = vld [vmem:[#allocation8 + $0x38] sm:$0xff]  }
 0x2b9   :  { %9462 = vmatpush3.bf16.msra.mxu1 %v10341_v5  ;;  %v10349_v5 = vld [vmem:[#allocation3 + $0xb0] ss:$12 sps:$4 sm:$0xff]  }
 0x2ba   :  { %1548 = vmatmul.mubr.bf16.vlgmr.msra.gmra.mrb[28].mxu0 %v11440_v57  ;;  %9467 = vmatprep.subr.bf16.mxu1 %v13034_v22 }
 0x2bb   :  { %1780 = vmatpush1.bf16.msra.mxu0 %v11015_v8  ;;  %1811 = vmatprep.mubr.bf16.mxu0 %v13032_v0  ;;  %v11579_v8 = vld [vmem:[%s13028_s10] ss:$0 sm:$0xff] }
 0x2bc   :  { %1781 = vmatprep.subr.bf16.mxu0 %v11016_v10 }
 0x2bf   :  { %1782 = vmatpush1.bf16.msra.mxu0 %v11017_v62 }
 0x2c0   :  { %1783 = vmatprep.subr.bf16.mxu0 %v11018_v13 }
 0x2c3   :  { %1784 = vmatpush1.bf16.msra.mxu0 %v11019_v37 }
 0x2c4   :  { %1785 = vmatprep.subr.bf16.mxu0 %v11020_v23 }
 0x2c7   :  { %1786 = vmatpush1.bf16.msra.mxu0 %v11021_v9 }
 0x2c8   :  { %1787 = vmatprep.subr.bf16.mxu0 %v11022_v15  ;;  %v10342_v15 = vld [vmem:[#allocation3 + $0x8] ss:$12 sps:$4 sm:$0xff]  }
 0x2cb   :  { %1788 = vmatpush1.bf16.msra.mxu0 %v11023_v38 }
 0x2cc   :  { %1789 = vmatprep.subr.bf16.mxu0 %v11024_v40  ;;  %v10343_v40 = vld [vmem:[#allocation3 + $0x20] ss:$12 sps:$4 sm:$0xff]  }
 0x2cf   :  { %1790 = vmatpush1.bf16.msra.mxu0 %v11025_v42  ;;  %v10344_v42 = vld [vmem:[#allocation3 + $0x38] ss:$12 sps:$4 sm:$0xff]  }
 0x2d0   :  { %1791 = vmatprep.subr.bf16.mxu0 %v11026_v44  ;;  %v10345_v44 = vld [vmem:[#allocation3 + $0x50] ss:$12 sps:$4 sm:$0xff]  }
 0x2d3   :  { %1792 = vmatpush1.bf16.msra.mxu0 %v11027_v46  ;;  %v10346_v46 = vld [vmem:[#allocation3 + $0x68] ss:$12 sps:$4 sm:$0xff]  }
 0x2d4   :  { %1793 = vmatprep.subr.bf16.mxu0 %v11028_v50  ;;  %v10347_v50 = vld [vmem:[#allocation3 + $0x80] ss:$12 sps:$4 sm:$0xff]  }
 0x2d7   :  { %1794 = vmatpush1.bf16.msra.mxu0 %v11029_v20  ;;  %v10348_v20 = vld [vmem:[#allocation3 + $0x98] ss:$12 sps:$4 sm:$0xff]  }
 0x2d8   :  { %2020 = vmatprep.subr.bf16.mxu0 %v11030_v2 }
 0x36d   :  { %v1239_v10 = vpop.f32.mrb[24].mxu0 }
 0x36e   :  { %v1240_v62 = vadd.f32 %v11579_v8, %v1239_v10  ;;  %v9445_v13 = vpop.f32.mrb[25].mxu0 }
 0x36f   :  { %v1242_v37 = vpop.f32.mrb[26].mxu0 }
 0x370   :  { %v1245_v23 = vmax.f32 %v1240_v62, 0.0  ;;  %v9446_v9 = vpop.f32.mrb[27].mxu0 }
 0x371   :  { %v10350_v9 = vld [vmem:[#allocation5 + $0x8] ss:$12 sps:$4 sm:$0xff]  }
 0x372   :  { %v1246_v38 = vpack.c.bf16 %v1245_v23, %v1245_v23 }
 0x374   :  { %9464 = vmatmul.mubr.bf16.vlgmr.msra.gmra.mrb[20].mxu1 %v1246_v38  ;;  %v10355_v38 = vld [vmem:[#allocation5 + $0x80] ss:$12 sps:$4 sm:$0xff]  }
 0x375   :  { %9468 = vmatpush3.bf16.msra.mxu1 %v10342_v15  ;;  %9483 = vmatprep.mubr.msk.bf16.mxu1 %vm11147_vm2, %v13034_v22  ;;  %v10351_v15 = vld [vmem:[#allocation5 + $0x20] ss:$12 sps:$4 sm:$0xff]  }
 0x376   :  { %9469 = vmatprep.subr.bf16.mxu1 %v13034_v22 }
 0x379   :  { %9470 = vmatpush3.bf16.msra.mxu1 %v10343_v40  ;;  %v10356_v40 = vld [vmem:[#allocation5 + $0x98] ss:$12 sps:$4 sm:$0xff]  }
 0x37a   :  { %9471 = vmatprep.subr.bf16.mxu1 %v13034_v22 }
 0x37d   :  { %9472 = vmatpush3.bf16.msra.mxu1 %v10344_v42  ;;  %v10357_v42 = vld [vmem:[#allocation5 + $0xb0] ss:$12 sps:$4 sm:$0xff]  }
 0x37e   :  { %9473 = vmatprep.subr.bf16.mxu1 %v13034_v22 }
 0x381   :  { %9474 = vmatpush3.bf16.msra.mxu1 %v10345_v44  ;;  %v11608_v44 = vld [vmem:[%s13030_s12] ss:$0 sm:$0xff] }
 0x382   :  { %9475 = vmatprep.subr.bf16.mxu1 %v13034_v22 }
 0x385   :  { %9476 = vmatpush3.bf16.msra.mxu1 %v10346_v46 }
 0x386   :  { %9477 = vmatprep.subr.bf16.mxu1 %v13034_v22 }
 0x389   :  { %9478 = vmatpush3.bf16.msra.mxu1 %v10347_v50 }
 0x38a   :  { %9479 = vmatprep.subr.bf16.mxu1 %v13034_v22 }
 0x38d   :  { %v1549_v2 = vpop.f32.mrb[28].mxu0  ;;  %9480 = vmatpush3.bf16.msra.mxu1 %v10348_v20 }
 0x38e   :  { %v1596_v10 = vadd.f32 %v1549_v2, %v11372_v17  ;;  %v1551_v62 = vpop.f32.mrb[29].mxu0  ;;  %9481 = vmatprep.subr.bf16.mxu1 %v13034_v22  ;;  %v10352_v17 = vld [vmem:[#allocation5 + $0x38] ss:$12 sps:$4 sm:$0xff]  }
 0x38f   :  { %v1603_v13 = vadd.f32 %v1551_v62, %v11374_v19  ;;  %v1553_v37 = vpop.f32.mrb[30].mxu0  ;;  %v10353_v19 = vld [vmem:[#allocation5 + $0x50] ss:$12 sps:$4 sm:$0xff]  }
 0x390   :  { %v1554_v23 = vpop.f32.mrb[31].mxu0 }
 0x391   :  { %9482 = vmatpush3.bf16.msra.mxu1 %v10349_v5  ;;  %v8372_v5 = vmul.f32 -1.442695, %v1596_v10  ;;  %v8373_v37 = vmul.f32 -1.442695, %v1603_v13 }
 0x392   :  { %9487 = vmatprep.subr.bf16.mxu1 %v13034_v22 }
 0x393   :  { %10858 = vpow2.f32 %v8372_v5 }
 0x394   :  { %9484 = vmatmul.mubr.bf16.vlgmr.msra.gmra.mrb[24].mxu1 %v11440_v57  ;;  %v10354_v57 = vld [vmem:[#allocation5 + $0x68] ss:$12 sps:$4 sm:$0xff]   ;;  %10860 = vpow2.f32 %v8373_v37 }
 0x395   :  { %9503 = vmatprep.mubr.msk.bf16.mxu1 %vm11147_vm2, %v13034_v22  ;;  %9488 = vmatpush3.bf16.msra.mxu1 %v10350_v9 }
 0x396   :  { %9489 = vmatprep.subr.bf16.mxu1 %v13034_v22 }
 0x399   :  { %9490 = vmatpush3.bf16.msra.mxu1 %v10351_v15 }
 0x39a   :  { %9491 = vmatprep.subr.bf16.mxu1 %v13034_v22 }
 0x39d   :  { %9492 = vmatpush3.bf16.msra.mxu1 %v10352_v17  ;;  %v10859_v23 = vpop.eup %10858 }
 0x39e   :  { %9493 = vmatprep.subr.bf16.mxu1 %v13034_v22  ;;  %v1600_v9 = vadd.f32 1.0, %v10859_v23  ;;  %v10861_v15 = vpop.eup %10860  ;;  %v10358_v23 = vld [vmem:[#allocation7 + $0x8] ss:$12 sps:$4 sm:$0xff]  }
 0x39f   :  { %v1607_v17 = vadd.f32 1.0, %v10861_v15  ;;  %v10401_v15 = vld [vmem:[#allocation8 + $0x18] sm:$0xff]  }
 0x3a0   :  { %10862 = vrcp.f32 %v1600_v9  ;;  %v10400_v9 = vld [vmem:[#allocation8 + $0x10] sm:$0xff]  }
 0x3a1   :  { %9494 = vmatpush3.bf16.msra.mxu1 %v10353_v19  ;;  %10864 = vrcp.f32 %v1607_v17 }
 0x3a2   :  { %9495 = vmatprep.subr.bf16.mxu1 %v13034_v22 }
 0x3a5   :  { %9496 = vmatpush3.bf16.msra.mxu1 %v10354_v57 }
 0x3a6   :  { %9497 = vmatprep.subr.bf16.mxu1 %v13034_v22 }
 0x3a9   :  { %9498 = vmatpush3.bf16.msra.mxu1 %v10355_v38 }
 0x3aa   :  { %9499 = vmatprep.subr.bf16.mxu1 %v13034_v22 }
 0x3ad   :  { %9500 = vmatpush3.bf16.msra.mxu1 %v10356_v40  ;;  %v10863_v40 = vpop.eup %10862 }
 0x3ae   :  { %9501 = vmatprep.subr.bf16.mxu1 %v13034_v22 }
 0x3b1   :  { %9502 = vmatpush3.bf16.msra.mxu1 %v10357_v42 }
 0x3b2   :  { %9507 = vmatprep.subr.bf16.mxu1 %v13034_v22 }
 0x447   :  { %v1345_v46 = vpop.f32.mrb[20].mxu1 }
 0x448   :  { %v1346_v50 = vadd.f32 %v11608_v44, %v1345_v46  ;;  %v9465_v20 = vpop.f32.mrb[21].mxu1 }
 0x449   :  { %v1348_v2 = vpop.f32.mrb[22].mxu1  ;;  %v10865_v20 = vpop.eup %10864 }
 0x44a   :  { %1351 = vst [vmem:[%s13031_s13] sm:$0xff] %v1346_v50  ;;  %v9466_v62 = vpop.f32.mrb[23].mxu1  ;;  %v1614_v13 = vsub.f32 1.0, %v10865_v20 }
 0x44b   :  { %v1616_v62 = vmul.f32 %v10865_v20, %v11434_v53  ;;  %v10360_v53 = vld [vmem:[#allocation7 + $0x38] ss:$12 sps:$4 sm:$0xff]  }
 0x467   :  { %v1590_v19 = vpop.f32.mrb[24].mxu1 }
 0x468   :  { %v1610_v57 = vadd.f32 %v11428_v12, %v1590_v19  ;;  %v9485_v38 = vpop.f32.mrb[25].mxu1  ;;  %v10402_v19 = vld [vmem:[#allocation8 + $0x20] sm:$0xff]  }
 0x469   :  { %v1593_v42 = vpop.f32.mrb[26].mxu1 }
 0x46a   :  { %v1611_v10 = vmul.f32 %v10863_v40, %v1610_v57  ;;  %v9486_v46 = vpop.f32.mrb[27].mxu1  ;;  %v10403_v42 = vld [vmem:[#allocation8 + $0x28] sm:$0xff]  }
 0x46c   :  { %v1612_v50 = vadd.f32 %v1611_v10, %v11395_v36  ;;  %v10359_v36 = vld [vmem:[#allocation7 + $0x20] ss:$12 sps:$4 sm:$0xff]   ;;  %v10404_v10 = vld [vmem:[#allocation8 + $0x30] sm:$0xff]  }
 0x46e   :  { %10866 = vtanh.f32 %v1612_v50 }
 0x478   :  { %v10867_v2 = vpop.eup %10866 }
 0x479   :  { %v1615_v5 = vmul.f32 %v10867_v2, %v1614_v13 }
 0x47b   :  { %v11617_v37 = vadd.f32 %v1616_v62, %v1615_v5 }
 0x47d   :  { %v11621_v12 = vpack.c.bf16 %v11617_v37, %v11617_v37 }
 0x47f   :  { %1812 = vmatmul.mubr.bf16.vlgmr.msra.gmra.mrb[32].mxu0 %v11621_v12  ;;  %9504 = vmatmul.mubr.bf16.vlgmr.msra.gmra.mrb[28].mxu1 %v11621_v12 }
 0x480   :  { %2021 = vmatpush1.bf16.msra.mxu0 %v11432_v48  ;;  %9508 = vmatpush3.bf16.msra.mxu1 %v10358_v23  ;;  %v10361_v48 = vld [vmem:[#allocation7 + $0x50] ss:$12 sps:$4 sm:$0xff]  }
 0x481   :  { %2022 = vmatprep.subr.bf16.mxu0 %v11436_v55  ;;  %9509 = vmatprep.subr.bf16.mxu1 %v13034_v22  ;;  %v10362_v55 = vld [vmem:[#allocation7 + $0x68] ss:$12 sps:$4 sm:$0xff]  }
 0x482   :  { %2052 = vmatprep.mubr.bf16.mxu0 %v13032_v0  ;;  %9523 = vmatprep.mubr.msk.bf16.mxu1 %vm11147_vm2, %v13034_v22 }
 0x484   :  { %2023 = vmatpush1.bf16.msra.mxu0 %v11442_v59  ;;  %9510 = vmatpush3.bf16.msra.mxu1 %v10359_v36  ;;  %v10363_v59 = vld [vmem:[#allocation7 + $0x80] ss:$12 sps:$4 sm:$0xff]  }
 0x485   :  { %2024 = vmatprep.subr.bf16.mxu0 %v11446_v27  ;;  %9511 = vmatprep.subr.bf16.mxu1 %v13034_v22  ;;  %v10364_v27 = vld [vmem:[#allocation7 + $0x98] ss:$12 sps:$4 sm:$0xff]  }
 0x488   :  { %2025 = vmatpush1.bf16.msra.mxu0 %v11451_v61  ;;  %9512 = vmatpush3.bf16.msra.mxu1 %v10360_v53  ;;  %v10365_v61 = vld [vmem:[#allocation7 + $0xb0] ss:$12 sps:$4 sm:$0xff]  }
 0x489   :  { %2026 = vmatprep.subr.bf16.mxu0 %v11456_v63  ;;  %9513 = vmatprep.subr.bf16.mxu1 %v13034_v22  ;;  %v10366_v63 = vld [vmem:[%s13027_s9] sm:$0xff]  }
 0x48c   :  { %2027 = vmatpush1.bf16.msra.mxu0 %v11462_v1  ;;  %9514 = vmatpush3.bf16.msra.mxu1 %v10361_v48  ;;  %v10367_v1 = vld [vmem:[%s13027_s9 + $0x8] sm:$0xff]  }
 0x48d   :  { %2028 = vmatprep.subr.bf16.mxu0 %v11465_v3  ;;  %9515 = vmatprep.subr.bf16.mxu1 %v13034_v22  ;;  %v10368_v3 = vld [vmem:[%s13027_s9 + $0x10] sm:$0xff]  }
 0x490   :  { %2029 = vmatpush1.bf16.msra.mxu0 %v11469_v4  ;;  %9516 = vmatpush3.bf16.msra.mxu1 %v10362_v55  ;;  %v10369_v4 = vld [vmem:[%s13027_s9 + $0x18] sm:$0xff]  }
 0x491   :  { %2030 = vmatprep.subr.bf16.mxu0 %v11472_v6  ;;  %9517 = vmatprep.subr.bf16.mxu1 %v13034_v22  ;;  %v10370_v6 = vld [vmem:[%s13027_s9 + $0x20] sm:$0xff]  }
 0x494   :  { %2031 = vmatpush1.bf16.msra.mxu0 %v11476_v11  ;;  %9518 = vmatpush3.bf16.msra.mxu1 %v10363_v59  ;;  %v10371_v11 = vld [vmem:[%s13027_s9 + $0x28] sm:$0xff]  }
 0x495   :  { %2032 = vmatprep.subr.bf16.mxu0 %v11479_v18  ;;  %9519 = vmatprep.subr.bf16.mxu1 %v13034_v22  ;;  %v10372_v18 = vld [vmem:[%s13027_s9 + $0x30] sm:$0xff]  }
 0x498   :  { %2033 = vmatpush1.bf16.msra.mxu0 %v11483_v21  ;;  %9520 = vmatpush3.bf16.msra.mxu1 %v10364_v27  ;;  %v10373_v21 = vld [vmem:[%s13027_s9 + $0x38] sm:$0xff]  }
 0x499   :  { %2034 = vmatprep.subr.bf16.mxu0 %v11486_v25  ;;  %9521 = vmatprep.subr.bf16.mxu1 %v13034_v22  ;;  %v11689_v25 = vld [vmem:[#allocation3 + $0x4] ss:$12 sps:$4 sm:$0xff]  }
 0x49c   :  { %2035 = vmatpush1.bf16.msra.mxu0 %v11490_v29  ;;  %9522 = vmatpush3.bf16.msra.mxu1 %v10365_v61  ;;  %v10398_v29 = vld [vmem:[#allocation8] sm:$0xff]  }
 0x49d   :  { %9527 = vmatprep.subr.bf16.mxu0 %v13034_v22  ;;  %9547 = vmatprep.subr.bf16.mxu1 %v13034_v22 }
 0x49f   :  { %2053 = vmatmul.mubr.bf16.vlgmr.msra.gmra.mrb[32].mxu0 %v11569_v7  ;;  %9524 = vmatmul.mubr.bf16.vlgmr.msra.gmra.mrb[32].mxu1 %v11569_v7  ;;  %v10399_v7 = vld [vmem:[#allocation8 + $0x8] sm:$0xff]  }
 0x4a0   :  { %9543 = vmatprep.mubr.msk.bf16.mxu0 %vm11147_vm2, %v13034_v22  ;;  %9563 = vmatprep.mubr.msk.bf16.mxu1 %vm11147_vm2, %v13034_v22 }
 0x4a1   :  { %9528 = vmatpush3.bf16.msra.mxu0 %v10366_v63  ;;  %9548 = vmatpush3.bf16.msra.mxu1 %v10398_v29 }
 0x4a2   :  { %9529 = vmatprep.subr.bf16.mxu0 %v13034_v22  ;;  %9549 = vmatprep.subr.bf16.mxu1 %v13034_v22 }
 0x4a5   :  { %9530 = vmatpush3.bf16.msra.mxu0 %v10367_v1  ;;  %9550 = vmatpush3.bf16.msra.mxu1 %v10399_v7 }
 0x4a6   :  { %9531 = vmatprep.subr.bf16.mxu0 %v13034_v22  ;;  %9551 = vmatprep.subr.bf16.mxu1 %v13034_v22 }
 0x4a9   :  { %9532 = vmatpush3.bf16.msra.mxu0 %v10368_v3  ;;  %9552 = vmatpush3.bf16.msra.mxu1 %v10400_v9 }
 0x4aa   :  { %9533 = vmatprep.subr.bf16.mxu0 %v13034_v22  ;;  %9553 = vmatprep.subr.bf16.mxu1 %v13034_v22 }
 0x4ad   :  { %9534 = vmatpush3.bf16.msra.mxu0 %v10369_v4  ;;  %9554 = vmatpush3.bf16.msra.mxu1 %v10401_v15 }
 0x4ae   :  { %9535 = vmatprep.subr.bf16.mxu0 %v13034_v22  ;;  %9555 = vmatprep.subr.bf16.mxu1 %v13034_v22 }
 0x4b1   :  { %9536 = vmatpush3.bf16.msra.mxu0 %v10370_v6  ;;  %9556 = vmatpush3.bf16.msra.mxu1 %v10402_v19  ;;  %v11706_v19 = vld [vmem:[#allocation3] ss:$12 sps:$4 sm:$0xff]  }
 0x4b2   :  { %9537 = vmatprep.subr.bf16.mxu0 %v13034_v22  ;;  %9557 = vmatprep.subr.bf16.mxu1 %v13034_v22 }
 0x4b5   :  { %9538 = vmatpush3.bf16.msra.mxu0 %v10371_v11  ;;  %9558 = vmatpush3.bf16.msra.mxu1 %v10403_v42  ;;  %v11729_v42 = vld [vmem:[#allocation3 + $0x48] ss:$12 sps:$4 sm:$0xff]  }
 0x4b6   :  { %9539 = vmatprep.subr.bf16.mxu0 %v13034_v22  ;;  %9559 = vmatprep.subr.bf16.mxu1 %v13034_v22 }
 0x4b9   :  { %9540 = vmatpush3.bf16.msra.mxu0 %v10372_v18  ;;  %9560 = vmatpush3.bf16.msra.mxu1 %v10404_v10  ;;  %v11732_v10 = vld [vmem:[#allocation3 + $0x64] ss:$12 sps:$4 sm:$0xff]  }
 0x4ba   :  { %9541 = vmatprep.subr.bf16.mxu0 %v13034_v22  ;;  %9561 = vmatprep.subr.bf16.mxu1 %v13034_v22 }
 0x4bd   :  { %9542 = vmatpush3.bf16.msra.mxu0 %v10373_v21 }
 0x4be   :  { %2498 = vmatprep.subr.bf16.mxu0 %v11689_v25 }
 0x552   :  { %v1854_v17 = vpop.f32.mrb[28].mxu1 }
 0x553   :  { %v9505_v57 = vpop.f32.mrb[29].mxu1  ;;  %v1855_v4 = vadd.f32 %v1854_v17, %v11561_v32  ;;  %v11716_v17 = vld [vmem:[#allocation3 + $0x18] ss:$12 sps:$4 sm:$0xff]  }
 0x554   :  { %v1857_v38 = vpop.f32.mrb[30].mxu1  ;;  %v11712_v57 = vld [vmem:[#allocation3 + $0x1c] ss:$12 sps:$4 sm:$0xff]  }
 0x555   :  { %v9506_v40 = vpop.f32.mrb[31].mxu1  ;;  %v11723_v38 = vld [vmem:[#allocation3 + $0x30] ss:$12 sps:$4 sm:$0xff]  }
 0x556   :  { %v11726_v40 = vld [vmem:[#allocation3 + $0x4c] ss:$12 sps:$4 sm:$0xff]  }
 0x572   :  { %v2054_v46 = vpop.f32.mrb[32].mxu0  ;;  %v2095_v50 = vpop.f32.mrb[32].mxu1 }
 0x573   :  { %v10169_v20 = vadd.f32 %v2054_v46, %v11546_v14  ;;  %v2056_v13 = vpop.f32.mrb[33].mxu0  ;;  %v9525_v2 = vpop.f32.mrb[33].mxu1  ;;  %v2115_v1 = vadd.f32 %v11557_v30, %v2095_v50  ;;  %v11735_v46 = vld [vmem:[#allocation3 + $0x60] ss:$12 sps:$4 sm:$0xff]   ;;  %v11738_v50 = vld [vmem:[#allocation3 + $0x7c] ss:$12 sps:$4 sm:$0xff]  }
 0x574   :  { %v2058_v5 = vpop.f32.mrb[34].mxu0  ;;  %v2098_v62 = vpop.f32.mrb[34].mxu1  ;;  %v10170_v48 = vadd.f32 %v2056_v13, %v11550_v34  ;;  %v11744_v13 = vld [vmem:[#allocation3 + $0x94] ss:$12 sps:$4 sm:$0xff]   ;;  %v11747_v2 = vld [vmem:[#allocation3 + $0x90] ss:$12 sps:$4 sm:$0xff]  }
 0x575   :  { %v8422_v23 = vmul.f32 -1.442695, %v10169_v20  ;;  %v2059_v36 = vpop.f32.mrb[35].mxu0  ;;  %v9526_v53 = vpop.f32.mrb[35].mxu1  ;;  %v11741_v20 = vld [vmem:[#allocation3 + $0x78] ss:$12 sps:$4 sm:$0xff]  }
 0x576   :  { %v8423_v55 = vmul.f32 -1.442695, %v10170_v48  ;;  %v11750_v5 = vld [vmem:[#allocation3 + $0xac] ss:$12 sps:$4 sm:$0xff]   ;;  %v11753_v62 = vld [vmem:[#allocation3 + $0xa8] ss:$12 sps:$4 sm:$0xff]  }
 0x577   :  { %10868 = vpow2.f32 %v8422_v23  ;;  %v10405_v23 = vld [vmem:[#allocation8 + $0x38] sm:$0xff]  }
 0x578   :  { %10870 = vpow2.f32 %v8423_v55  ;;  %9562 = vmatpush3.bf16.msra.mxu1 %v10405_v23 }
 0x579   :  { %9567 = vmatprep.subr.bf16.mxu1 %v13034_v22 }
 0x581   :  { %v10869_v59 = vpop.eup %10868 }
 0x582   :  { %v2105_v27 = vadd.f32 1.0, %v10869_v59  ;;  %v10871_v61 = vpop.eup %10870 }
 0x583   :  { %v2112_v63 = vadd.f32 1.0, %v10871_v61  ;;  %v10406_v61 = vld [vmem:[#allocation3 + $0x8] ss:$12 sps:$4 sm:$0xff]  }
 0x584   :  { %10872 = vrcp.f32 %v2105_v27 }
 0x585   :  { %10874 = vrcp.f32 %v2112_v63 }
 0x58e   :  { %v10873_v3 = vpop.eup %10872 }
 0x58f   :  { %v2116_v6 = vmul.f32 %v10873_v3, %v2115_v1  ;;  %v10875_v18 = vpop.eup %10874  ;;  %v10407_v1 = vld [vmem:[#allocation3 + $0x20] ss:$12 sps:$4 sm:$0xff]   ;;  %v10408_v3 = vld [vmem:[#allocation3 + $0x38] ss:$12 sps:$4 sm:$0xff]  }
 0x590   :  { %v2119_v21 = vsub.f32 1.0, %v10875_v18  ;;  %v2121_v9 = vmul.f32 %v10875_v18, %v11565_v16  ;;  %v11720_v16 = vld [vmem:[#allocation3 + $0x34] ss:$12 sps:$4 sm:$0xff]  }
 0x591   :  { %v2117_v11 = vadd.f32 %v2116_v6, %v1855_v4  ;;  %v10410_v4 = vld [vmem:[#allocation3 + $0x68] ss:$12 sps:$4 sm:$0xff]   ;;  %v10411_v6 = vld [vmem:[#allocation3 + $0x80] ss:$12 sps:$4 sm:$0xff]  }
 0x593   :  { %10876 = vtanh.f32 %v2117_v11  ;;  %v10412_v11 = vld [vmem:[#allocation3 + $0x98] ss:$12 sps:$4 sm:$0xff]  }
 0x59d   :  { %v10877_v29 = vpop.eup %10876 }
 0x59e   :  { %v2120_v7 = vmul.f32 %v10877_v29, %v2119_v21  ;;  %v10413_v21 = vld [vmem:[#allocation3 + $0xb0] ss:$12 sps:$4 sm:$0xff]  }
 0x5a0   :  { %v11704_v15 = vadd.f32 %v2121_v9, %v2120_v7 }
 0x5a2   :  { %v11710_v30 = vpack.c.bf16 %v11704_v15, %v11704_v15 }
 0x5a4   :  { %9544 = vmatmul.mubr.bf16.vlgmr.msra.gmra.mrb[36].mxu0 %v11710_v30 }
 0x5a5   :  { %2499 = vmatpush1.bf16.msra.mxu0 %v11706_v19  ;;  %2530 = vmatprep.mubr.bf16.mxu0 %v13032_v0 }
 0x5a6   :  { %2500 = vmatprep.subr.bf16.mxu0 %v11712_v57 }
 0x5a9   :  { %2501 = vmatpush1.bf16.msra.mxu0 %v11716_v17 }
 0x5aa   :  { %2502 = vmatprep.subr.bf16.mxu0 %v11720_v16 }
 0x5ad   :  { %2503 = vmatpush1.bf16.msra.mxu0 %v11723_v38 }
 0x5ae   :  { %2504 = vmatprep.subr.bf16.mxu0 %v11726_v40 }
 0x5b1   :  { %2505 = vmatpush1.bf16.msra.mxu0 %v11729_v42 }
 0x5b2   :  { %2506 = vmatprep.subr.bf16.mxu0 %v11732_v10 }
 0x5b5   :  { %2507 = vmatpush1.bf16.msra.mxu0 %v11735_v46 }
 0x5b6   :  { %2508 = vmatprep.subr.bf16.mxu0 %v11738_v50 }
 0x5b9   :  { %2509 = vmatpush1.bf16.msra.mxu0 %v11741_v20 }
 0x5ba   :  { %2510 = vmatprep.subr.bf16.mxu0 %v11744_v13 }
 0x5bd   :  { %2511 = vmatpush1.bf16.msra.mxu0 %v11747_v2 }
 0x5be   :  { %2512 = vmatprep.subr.bf16.mxu0 %v11750_v5 }
 0x5c1   :  { %2513 = vmatpush1.bf16.msra.mxu0 %v11753_v62 }
 0x5c4   :  { %2531 = vmatmul.mubr.bf16.vlgmr.msra.gmra.mrb[40].mxu0 %v11621_v12 }
 0x5c5   :  { %2794 = vmatprep.mubr.bf16.mxu0 %v13032_v0 }
 0x677   :  { %v2222_v36 = vpop.f32.mrb[36].mxu0 }
 0x678   :  { %v2223_v53 = vadd.f32 %v11579_v8, %v2222_v36  ;;  %v9545_v48 = vpop.f32.mrb[37].mxu0  ;;  %v10409_v8 = vld [vmem:[#allocation3 + $0x50] ss:$12 sps:$4 sm:$0xff]  }
 0x679   :  { %v2225_v55 = vpop.f32.mrb[38].mxu0  ;;  %v10417_v48 = vld [vmem:[#allocation5 + $0x8] ss:$12 sps:$4 sm:$0xff]  }
 0x67a   :  { %v2228_v59 = vmax.f32 %v2223_v53, 0.0  ;;  %v9546_v27 = vpop.f32.mrb[39].mxu0  ;;  %v11780_v53 = vld [vmem:[#allocation5] ss:$12 sps:$4 sm:$0xff]   ;;  %v11784_v55 = vld [vmem:[#allocation5 + $0x1c] ss:$12 sps:$4 sm:$0xff]  }
 0x67b   :  { %v11795_v27 = vld [vmem:[#allocation5 + $0x30] ss:$12 sps:$4 sm:$0xff]  }
 0x67c   :  { %v2229_v63 = vpack.c.bf16 %v2228_v59, %v2228_v59  ;;  %v11788_v59 = vld [vmem:[#allocation5 + $0x18] ss:$12 sps:$4 sm:$0xff]  }
 0x67e   :  { %9564 = vmatmul.mubr.bf16.vlgmr.msra.gmra.mrb[36].mxu1 %v2229_v63  ;;  %v11800_v63 = vld [vmem:[#allocation5 + $0x4c] ss:$12 sps:$4 sm:$0xff]  }
 0x67f   :  { %9568 = vmatpush3.bf16.msra.mxu1 %v10406_v61  ;;  %9583 = vmatprep.mubr.msk.bf16.mxu1 %vm11147_vm2, %v13034_v22  ;;  %v10425_v61 = vld [vmem:[#allocation5 + $0x38] ss:$12 sps:$4 sm:$0xff]  }
 0x680   :  { %9569 = vmatprep.subr.bf16.mxu1 %v13034_v22 }
 0x683   :  { %9570 = vmatpush3.bf16.msra.mxu1 %v10407_v1  ;;  %v11803_v1 = vld [vmem:[#allocation5 + $0x48] ss:$12 sps:$4 sm:$0xff]  }
 0x684   :  { %9571 = vmatprep.subr.bf16.mxu1 %v13034_v22 }
 0x687   :  { %9572 = vmatpush3.bf16.msra.mxu1 %v10408_v3  ;;  %v10429_v3 = vld [vmem:[#allocation5 + $0x50] ss:$12 sps:$4 sm:$0xff]  }
 0x688   :  { %9573 = vmatprep.subr.bf16.mxu1 %v13034_v22 }
 0x68b   :  { %9574 = vmatpush3.bf16.msra.mxu1 %v10409_v8  ;;  %v11807_v8 = vld [vmem:[#allocation5 + $0x64] ss:$12 sps:$4 sm:$0xff]  }
 0x68c   :  { %9575 = vmatprep.subr.bf16.mxu1 %v13034_v22 }
 0x68f   :  { %9576 = vmatpush3.bf16.msra.mxu1 %v10410_v4  ;;  %v11810_v4 = vld [vmem:[#allocation5 + $0x60] ss:$12 sps:$4 sm:$0xff]  }
 0x690   :  { %9577 = vmatprep.subr.bf16.mxu1 %v13034_v22 }
 0x693   :  { %9578 = vmatpush3.bf16.msra.mxu1 %v10411_v6  ;;  %v10433_v6 = vld [vmem:[#allocation5 + $0x68] ss:$12 sps:$4 sm:$0xff]  }
 0x694   :  { %9579 = vmatprep.subr.bf16.mxu1 %v13034_v22 }
 0x697   :  { %v2532_v18 = vpop.f32.mrb[40].mxu0  ;;  %9580 = vmatpush3.bf16.msra.mxu1 %v10412_v11  ;;  %v11813_v11 = vld [vmem:[#allocation5 + $0x7c] ss:$12 sps:$4 sm:$0xff]  }
 0x698   :  { %v11770_v29 = vadd.f32 %v2532_v18, %v11380_v24  ;;  %v2534_v7 = vpop.f32.mrb[41].mxu0  ;;  %9581 = vmatprep.subr.bf16.mxu1 %v13034_v22  ;;  %v11782_v24 = vld [vmem:[#allocation5 + $0x4] ss:$12 sps:$4 sm:$0xff]  }
 0x699   :  { %v11774_v9 = vadd.f32 %v2534_v7, %v11385_v28  ;;  %v2536_v23 = vpop.f32.mrb[42].mxu0  ;;  %2762 = vmatprep.subr.bf16.mxu0 %v11782_v24  ;;  %v10421_v28 = vld [vmem:[#allocation5 + $0x20] ss:$12 sps:$4 sm:$0xff]   ;;  %v11816_v18 = vld [vmem:[#allocation5 + $0x78] ss:$12 sps:$4 sm:$0xff]  }
 0x69a   :  { %v2537_v36 = vpop.f32.mrb[43].mxu0  ;;  %2763 = vmatpush1.bf16.msra.mxu0 %v11780_v53  ;;  %v11820_v7 = vld [vmem:[#allocation5 + $0x94] ss:$12 sps:$4 sm:$0xff]   ;;  %v11823_v23 = vld [vmem:[#allocation5 + $0x90] ss:$12 sps:$4 sm:$0xff]  }
 0x69b   :  { %9582 = vmatpush3.bf16.msra.mxu1 %v10413_v21  ;;  %2764 = vmatprep.subr.bf16.mxu0 %v11784_v55  ;;  %v10437_v21 = vld [vmem:[#allocation5 + $0x80] ss:$12 sps:$4 sm:$0xff]   ;;  %v10441_v36 = vld [vmem:[#allocation5 + $0x98] ss:$12 sps:$4 sm:$0xff]   ;;  %v8464_v49 = vmul.f32 -1.442695, %v11770_v29 }
 0x69c   :  { %9587 = vmatprep.subr.bf16.mxu1 %v13034_v22  ;;  %v8465_v58 = vmul.f32 -1.442695, %v11774_v9 }
 0x69d   :  { %10878 = vpow2.f32 %v8464_v49 }
 0x69e   :  { %9584 = vmatmul.mubr.bf16.vlgmr.msra.gmra.mrb[40].mxu1 %v11621_v12  ;;  %v11792_v12 = vld [vmem:[#allocation5 + $0x34] ss:$12 sps:$4 sm:$0xff]   ;;  %2765 = vmatpush1.bf16.msra.mxu0 %v11788_v59  ;;  %10880 = vpow2.f32 %v8465_v58 }
 0x69f   :  { %9603 = vmatprep.mubr.msk.bf16.mxu1 %vm11147_vm2, %v13034_v22  ;;  %9588 = vmatpush3.bf16.msra.mxu1 %v10417_v48  ;;  %v11827_v48 = vld [vmem:[#allocation5 + $0xac] ss:$12 sps:$4 sm:$0xff]  }
 0x6a0   :  { %9589 = vmatprep.subr.bf16.mxu1 %v13034_v22  ;;  %2766 = vmatprep.subr.bf16.mxu0 %v11792_v12 }
 0x6a2   :  { %2767 = vmatpush1.bf16.msra.mxu0 %v11795_v27 }
 0x6a3   :  { %9590 = vmatpush3.bf16.msra.mxu1 %v10421_v28  ;;  %2768 = vmatprep.subr.bf16.mxu0 %v11800_v63  ;;  %v11830_v28 = vld [vmem:[#allocation5 + $0xa8] ss:$12 sps:$4 sm:$0xff]  }
 0x6a4   :  { %9591 = vmatprep.subr.bf16.mxu1 %v13034_v22 }
 0x6a6   :  { %2769 = vmatpush1.bf16.msra.mxu0 %v11803_v1 }
 0x6a7   :  { %9592 = vmatpush3.bf16.msra.mxu1 %v10425_v61  ;;  %2770 = vmatprep.subr.bf16.mxu0 %v11807_v8  ;;  %v10445_v61 = vld [vmem:[#allocation5 + $0xb0] ss:$12 sps:$4 sm:$0xff]  }
 0x6a8   :  { %9593 = vmatprep.subr.bf16.mxu1 %v13034_v22 }
 0x6aa   :  { %2771 = vmatpush1.bf16.msra.mxu0 %v11810_v4 }
 0x6ab   :  { %9594 = vmatpush3.bf16.msra.mxu1 %v10429_v3  ;;  %2772 = vmatprep.subr.bf16.mxu0 %v11813_v11  ;;  %v11834_v3 = vld [vmem:[#allocation7 + $0x4] ss:$12 sps:$4 sm:$0xff]  }
 0x6ac   :  { %9595 = vmatprep.subr.bf16.mxu1 %v13034_v22 }
 0x6ae   :  { %2773 = vmatpush1.bf16.msra.mxu0 %v11816_v18 }
 0x6af   :  { %9596 = vmatpush3.bf16.msra.mxu1 %v10433_v6  ;;  %2774 = vmatprep.subr.bf16.mxu0 %v11820_v7 }
 0x6b0   :  { %9597 = vmatprep.subr.bf16.mxu1 %v13034_v22 }
 0x6b2   :  { %2775 = vmatpush1.bf16.msra.mxu0 %v11823_v23 }
 0x6b3   :  { %9598 = vmatpush3.bf16.msra.mxu1 %v10437_v21  ;;  %2776 = vmatprep.subr.bf16.mxu0 %v11827_v48 }
 0x6b4   :  { %9599 = vmatprep.subr.bf16.mxu1 %v13034_v22 }
 0x6b6   :  { %2777 = vmatpush1.bf16.msra.mxu0 %v11830_v28 }
 0x6b7   :  { %9600 = vmatpush3.bf16.msra.mxu1 %v10441_v36  ;;  %3003 = vmatprep.subr.bf16.mxu0 %v11834_v3 }
 0x6b8   :  { %9601 = vmatprep.subr.bf16.mxu1 %v13034_v22 }
 0x6bb   :  { %9602 = vmatpush3.bf16.msra.mxu1 %v10445_v61  ;;  %v10879_v61 = vpop.eup %10878 }
 0x6bc   :  { %9607 = vmatprep.subr.bf16.mxu1 %v13034_v22  ;;  %v2583_v41 = vadd.f32 1.0, %v10879_v61  ;;  %v10881_v22 = vpop.eup %10880 }
 0x6bd   :  { %v2590_v56 = vadd.f32 1.0, %v10881_v22 }
 0x6be   :  { %10882 = vrcp.f32 %v2583_v41 }
 0x6bf   :  { %10884 = vrcp.f32 %v2590_v56  ;;  %v11861_v56 = vld [vmem:[#allocation7 + $0x1c] ss:$12 sps:$4 sm:$0xff]  }
 0x751   :  { %v2328_v6 = vpop.f32.mrb[36].mxu1 }
 0x752   :  { %v2329_v21 = vadd.f32 %v11608_v44, %v2328_v6  ;;  %v9565_v36 = vpop.f32.mrb[37].mxu1  ;;  %v10883_v6 = vpop.eup %10882 }
 0x753   :  { %v2331_v0 = vpop.f32.mrb[38].mxu1  ;;  %v10885_v41 = vpop.eup %10884 }
 0x754   :  { %2334 = vst [vmem:[%s13031_s13 + $0x8] sm:$0xff] %v2329_v21  ;;  %v9566_v60 = vpop.f32.mrb[39].mxu1  ;;  %v11848_v0 = vld [vmem:[%s13022_s4] ss:$0 sm:$0xff]  ;;  %v2597_v21 = vsub.f32 1.0, %v10885_v41  ;;  %v2599_v61 = vmul.f32 %v10885_v41, %v11617_v37 }
 0x755   :  { %v10453_v37 = vld [vmem:[#allocation7 + $0x20] ss:$12 sps:$4 sm:$0xff]   ;;  %v11883_v41 = vld [vmem:[#allocation7 + $0x48] ss:$12 sps:$4 sm:$0xff]  }
 0x756   :  { %13083 = vst [vmem:[#allocation28_spill] sm:$0xff] %v11883_v41 }
 0x771   :  { %v2573_v54 = vpop.f32.mrb[40].mxu1 }
 0x772   :  { %v2593_v44 = vadd.f32 %v11848_v0, %v2573_v54  ;;  %v9585_v29 = vpop.f32.mrb[41].mxu1  ;;  %v10449_v54 = vld [vmem:[#allocation7 + $0x8] ss:$12 sps:$4 sm:$0xff]  }
 0x773   :  { %v2576_v60 = vpop.f32.mrb[42].mxu1 }
 0x774   :  { %v2594_v49 = vmul.f32 %v10883_v6, %v2593_v44  ;;  %v9586_v9 = vpop.f32.mrb[43].mxu1  ;;  %v13078_v44 = vmov 0.0   ;;  %v11870_v6 = vld [vmem:[#allocation7 + $0x34] ss:$12 sps:$4 sm:$0xff]   ;;  %v13080_v60 = vmov 0  }
 0x775   :  { %13079 = vst [vmem:[#allocation25_spill] sm:$0xff] %v11870_v6  ;;  %v10457_v9 = vld [vmem:[#allocation7 + $0x38] ss:$12 sps:$4 sm:$0xff]  }
 0x776   :  { %v2595_v58 = vadd.f32 %v2594_v49, %v11383_v26  ;;  %v11866_v26 = vld [vmem:[#allocation7 + $0x18] ss:$12 sps:$4 sm:$0xff]   ;;  %v11876_v49 = vld [vmem:[#allocation7 + $0x30] ss:$12 sps:$4 sm:$0xff]  }
 0x777   :  { %13081 = vst [vmem:[#allocation26_spill] sm:$0xff] %v11876_v49 }
 0x778   :  { %10886 = vtanh.f32 %v2595_v58  ;;  %v11880_v58 = vld [vmem:[#allocation7 + $0x4c] ss:$12 sps:$4 sm:$0xff]  }
 0x779   :  { %13082 = vst [vmem:[#allocation27_spill] sm:$0xff] %v11880_v58 }
 0x782   :  { %v10887_v22 = vpop.eup %10886 }
 0x783   :  { %v2598_v36 = vmul.f32 %v10887_v22, %v2597_v21  ;;  %v10461_v21 = vld [vmem:[#allocation7 + $0x50] ss:$12 sps:$4 sm:$0xff]  }
 0x784   :  { %v11887_v22 = vld [vmem:[#allocation7 + $0x64] ss:$12 sps:$4 sm:$0xff]  }
 0x785   :  { %v11853_v52 = vadd.f32 %v2599_v61, %v2598_v36  ;;  %13084 = vst [vmem:[#allocation29_spill] sm:$0xff] %v11887_v22  ;;  %v11890_v36 = vld [vmem:[#allocation7 + $0x60] ss:$12 sps:$4 sm:$0xff]   ;;  %v10465_v61 = vld [vmem:[#allocation7 + $0x68] ss:$12 sps:$4 sm:$0xff]  }
 0x786   :  { %13085 = vst [vmem:[#allocation30_spill] sm:$0xff] %v11890_v36 }
 0x787   :  { %v11859_v29 = vpack.c.bf16 %v11853_v52, %v11853_v52 }
 0x789   :  { %2795 = vmatmul.mubr.bf16.vlgmr.msra.gmra.mrb[44].mxu0 %v11859_v29  ;;  %9604 = vmatmul.mubr.bf16.vlgmr.msra.gmra.mrb[44].mxu1 %v11859_v29 }
 0x78a   :  { %3004 = vmatpush1.bf16.msra.mxu0 %v11855_v51  ;;  %9608 = vmatpush3.bf16.msra.mxu1 %v10449_v54  ;;  %v11894_v54 = vld [vmem:[#allocation7 + $0x7c] ss:$12 sps:$4 sm:$0xff]  }
 0x78b   :  { %3005 = vmatprep.subr.bf16.mxu0 %v11861_v56  ;;  %9609 = vmatprep.subr.bf16.mxu1 %v13078_v44  ;;  %13086 = vst [vmem:[#allocation31_spill] sm:$0xff] %v11894_v54 }
 0x78c   :  { %3035 = vmatprep.mubr.bf16.mxu0 %v13080_v60  ;;  %9623 = vmatprep.mubr.msk.bf16.mxu1 %vm11147_vm2, %v13078_v44 }
 0x78e   :  { %3006 = vmatpush1.bf16.msra.mxu0 %v11866_v26  ;;  %9610 = vmatpush3.bf16.msra.mxu1 %v10453_v37  ;;  %v11897_v37 = vld [vmem:[#allocation7 + $0x78] ss:$12 sps:$4 sm:$0xff]  }
 0x78f   :  { %3007 = vmatprep.subr.bf16.mxu0 %v11870_v6  ;;  %9611 = vmatprep.subr.bf16.mxu1 %v13078_v44  ;;  %13087 = vst [vmem:[#allocation32_spill] sm:$0xff] %v11897_v37 }
 0x792   :  { %3008 = vmatpush1.bf16.msra.mxu0 %v11876_v49  ;;  %9612 = vmatpush3.bf16.msra.mxu1 %v10457_v9  ;;  %v10469_v9 = vld [vmem:[#allocation7 + $0x80] ss:$12 sps:$4 sm:$0xff]  }
 0x793   :  { %3009 = vmatprep.subr.bf16.mxu0 %v11880_v58  ;;  %9613 = vmatprep.subr.bf16.mxu1 %v13078_v44 }
 0x796   :  { %3010 = vmatpush1.bf16.msra.mxu0 %v11883_v41  ;;  %9614 = vmatpush3.bf16.msra.mxu1 %v10461_v21  ;;  %v11901_v21 = vld [vmem:[#allocation7 + $0x94] ss:$12 sps:$4 sm:$0xff]  }
 0x797   :  { %3011 = vmatprep.subr.bf16.mxu0 %v11887_v22  ;;  %9615 = vmatprep.subr.bf16.mxu1 %v13078_v44  ;;  %13088 = vst [vmem:[#allocation33_spill] sm:$0xff] %v11901_v21 }
 0x79a   :  { %3012 = vmatpush1.bf16.msra.mxu0 %v11890_v36  ;;  %9616 = vmatpush3.bf16.msra.mxu1 %v10465_v61  ;;  %v11908_v61 = vld [vmem:[#allocation7 + $0xac] ss:$12 sps:$4 sm:$0xff]  }
 0x79b   :  { %3013 = vmatprep.subr.bf16.mxu0 %v11894_v54  ;;  %9617 = vmatprep.subr.bf16.mxu1 %v13078_v44  ;;  %13090 = vst [vmem:[#allocation35_spill] sm:$0xff] %v11908_v61 }
 0x79e   :  { %3014 = vmatpush1.bf16.msra.mxu0 %v11897_v37  ;;  %9618 = vmatpush3.bf16.msra.mxu1 %v10469_v9  ;;  %v10481_v9 = vld [vmem:[%s13027_s9 + $0x18] sm:$0xff]  }
 0x79f   :  { %3015 = vmatprep.subr.bf16.mxu0 %v11901_v21  ;;  %9619 = vmatprep.subr.bf16.mxu1 %v13078_v44 }
 0x7a2   :  { %3016 = vmatpush1.bf16.msra.mxu0 %v11904_v47  ;;  %9620 = vmatpush3.bf16.msra.mxu1 %v10473_v45  ;;  %v10478_v45 = vld [vmem:[%s13027_s9] sm:$0xff]  }
 0x7a3   :  { %3017 = vmatprep.subr.bf16.mxu0 %v11908_v61  ;;  %9621 = vmatprep.subr.bf16.mxu1 %v13078_v44  ;;  %v10490_v47 = vld [vmem:[#allocation8 + $0x20] sm:$0xff]  }
 0x7a6   :  { %3018 = vmatpush1.bf16.msra.mxu0 %v11911_v43  ;;  %9622 = vmatpush3.bf16.msra.mxu1 %v10477_v39  ;;  %v10479_v39 = vld [vmem:[%s13027_s9 + $0x8] sm:$0xff]  }
 0x7a7   :  { %9627 = vmatprep.subr.bf16.mxu0 %v13078_v44  ;;  %9647 = vmatprep.subr.bf16.mxu1 %v13078_v44  ;;  %v10487_v43 = vld [vmem:[#allocation8 + $0x8] sm:$0xff]  }
 0x7a9   :  { %3036 = vmatmul.mubr.bf16.vlgmr.msra.gmra.mrb[44].mxu0 %v11710_v30  ;;  %9624 = vmatmul.mubr.bf16.vlgmr.msra.gmra.mrb[48].mxu1 %v11710_v30  ;;  %v10480_v30 = vld [vmem:[%s13027_s9 + $0x10] sm:$0xff]  }
 0x7aa   :  { %9643 = vmatprep.mubr.msk.bf16.mxu0 %vm11147_vm2, %v13078_v44  ;;  %9663 = vmatprep.mubr.msk.bf16.mxu1 %vm11147_vm2, %v13078_v44 }
 0x7ab   :  { %9628 = vmatpush3.bf16.msra.mxu0 %v10478_v45  ;;  %v10482_v45 = vld [vmem:[%s13027_s9 + $0x20] sm:$0xff]  }
 0x7ac   :  { %9629 = vmatprep.subr.bf16.mxu0 %v13078_v44 }
 0x7af   :  { %9630 = vmatpush3.bf16.msra.mxu0 %v10479_v39  ;;  %v10483_v39 = vld [vmem:[%s13027_s9 + $0x28] sm:$0xff]  }
 0x7b0   :  { %9631 = vmatprep.subr.bf16.mxu0 %v13078_v44 }
 0x7b3   :  { %9632 = vmatpush3.bf16.msra.mxu0 %v10480_v30  ;;  %v10484_v30 = vld [vmem:[%s13027_s9 + $0x30] sm:$0xff]  }
 0x7b4   :  { %9633 = vmatprep.subr.bf16.mxu0 %v13078_v44 }
 0x7b7   :  { %9634 = vmatpush3.bf16.msra.mxu0 %v10481_v9  ;;  %v10485_v9 = vld [vmem:[%s13027_s9 + $0x38] sm:$0xff]  }
 0x7b8   :  { %9635 = vmatprep.subr.bf16.mxu0 %v13078_v44 }
 0x7bb   :  { %9636 = vmatpush3.bf16.msra.mxu0 %v10482_v45  ;;  %v10486_v45 = vld [vmem:[#allocation8] sm:$0xff]  }
 0x7bc   :  { %9637 = vmatprep.subr.bf16.mxu0 %v13078_v44  ;;  %9648 = vmatpush3.bf16.msra.mxu1 %v10486_v45  ;;  %v10491_v45 = vld [vmem:[#allocation8 + $0x28] sm:$0xff]  }
 0x7bd   :  { %9649 = vmatprep.subr.bf16.mxu1 %v13078_v44 }
 0x7bf   :  { %9638 = vmatpush3.bf16.msra.mxu0 %v10483_v39  ;;  %v10488_v39 = vld [vmem:[#allocation8 + $0x10] sm:$0xff]  }
 0x7c0   :  { %9639 = vmatprep.subr.bf16.mxu0 %v13078_v44  ;;  %9650 = vmatpush3.bf16.msra.mxu1 %v10487_v43  ;;  %v10492_v43 = vld [vmem:[#allocation8 + $0x30] sm:$0xff]  }
 0x7c1   :  { %9651 = vmatprep.subr.bf16.mxu1 %v13078_v44 }
 0x7c3   :  { %9640 = vmatpush3.bf16.msra.mxu0 %v10484_v30  ;;  %v10489_v30 = vld [vmem:[#allocation8 + $0x18] sm:$0xff]  }
 0x7c4   :  { %9641 = vmatprep.subr.bf16.mxu0 %v13078_v44  ;;  %9652 = vmatpush3.bf16.msra.mxu1 %v10488_v39 }
 0x7c5   :  { %9653 = vmatprep.subr.bf16.mxu1 %v13078_v44 }
 0x7c7   :  { %9642 = vmatpush3.bf16.msra.mxu0 %v10485_v9 }
 0x7c8   :  { %3481 = vmatprep.subr.bf16.mxu0 %v11689_v25  ;;  %9654 = vmatpush3.bf16.msra.mxu1 %v10489_v30 }
 0x7c9   :  { %9655 = vmatprep.subr.bf16.mxu1 %v13078_v44 }
 0x7cc   :  { %9656 = vmatpush3.bf16.msra.mxu1 %v10490_v47 }
 0x7cd   :  { %9657 = vmatprep.subr.bf16.mxu1 %v13078_v44 }
 0x7d0   :  { %9658 = vmatpush3.bf16.msra.mxu1 %v10491_v45 }
 0x7d1   :  { %9659 = vmatprep.subr.bf16.mxu1 %v13078_v44 }
 0x7d4   :  { %9660 = vmatpush3.bf16.msra.mxu1 %v10492_v43 }
 0x7d5   :  { %9661 = vmatprep.subr.bf16.mxu1 %v13078_v44 }
 0x85c   :  { %v2837_v61 = vpop.f32.mrb[44].mxu1 }
 0x85d   :  { %v9605_v21 = vpop.f32.mrb[45].mxu1 }
 0x85e   :  { %v2840_v25 = vpop.f32.mrb[46].mxu1 }
 0x85f   :  { %v9606_v9 = vpop.f32.mrb[47].mxu1 }
 0x87c   :  { %v3037_v39 = vpop.f32.mrb[44].mxu0  ;;  %v3078_v37 = vpop.f32.mrb[48].mxu1 }
 0x87d   :  { %v10171_v30 = vadd.f32 %v3037_v39, %v11546_v14  ;;  %v3039_v21 = vpop.f32.mrb[45].mxu0  ;;  %v9625_v54 = vpop.f32.mrb[49].mxu1  ;;  %v11968_v39 = vld [vmem:[%s13026_s8] ss:$0 sm:$0xff] }
 0x87e   :  { %v3041_v36 = vpop.f32.mrb[46].mxu0  ;;  %v3081_v25 = vpop.f32.mrb[50].mxu1  ;;  %v10172_v41 = vadd.f32 %v3039_v21, %v11550_v34 }
 0x87f   :  { %v8514_v9 = vmul.f32 -1.442695, %v10171_v30  ;;  %v3042_v47 = vpop.f32.mrb[47].mxu0  ;;  %v9626_v22 = vpop.f32.mrb[51].mxu1  ;;  %v3098_v36 = vadd.f32 %v11968_v39, %v3078_v37 }
 0x880   :  { %v8515_v45 = vmul.f32 -1.442695, %v10172_v41  ;;  %v2838_v22 = vadd.f32 %v2837_v61, %v11561_v32 }
 0x881   :  { %10888 = vpow2.f32 %v8514_v9 }
 0x882   :  { %10890 = vpow2.f32 %v8515_v45 }
 0x88b   :  { %v10889_v58 = vpop.eup %10888 }
 0x88c   :  { %v3088_v43 = vadd.f32 1.0, %v10889_v58  ;;  %v10891_v49 = vpop.eup %10890 }
 0x88d   :  { %v3095_v6 = vadd.f32 1.0, %v10891_v49 }
 0x88e   :  { %10892 = vrcp.f32 %v3088_v43 }
 0x88f   :  { %10894 = vrcp.f32 %v3095_v6 }
 0x898   :  { %v10893_v54 = vpop.eup %10892 }
 0x899   :  { %v3099_v30 = vmul.f32 %v10893_v54, %v3098_v36  ;;  %v10895_v41 = vpop.eup %10894 }
 0x89a   :  { %v3102_v25 = vsub.f32 1.0, %v10895_v41  ;;  %v3104_v49 = vmul.f32 %v10895_v41, %v11704_v15  ;;  %v10493_v15 = vld [vmem:[#allocation8 + $0x38] sm:$0xff]  }
 0x89b   :  { %v3100_v21 = vadd.f32 %v3099_v30, %v2838_v22  ;;  %9662 = vmatpush3.bf16.msra.mxu1 %v10493_v15 }
 0x89c   :  { %9667 = vmatprep.subr.bf16.mxu1 %v13078_v44 }
 0x89d   :  { %10896 = vtanh.f32 %v3100_v21 }
 0x8a7   :  { %v10897_v58 = vpop.eup %10896 }
 0x8a8   :  { %v3103_v9 = vmul.f32 %v10897_v58, %v3102_v25 }
 0x8aa   :  { %v11973_v47 = vadd.f32 %v3104_v49, %v3103_v9 }
 0x8ac   :  { %v11977_v45 = vpack.c.bf16 %v11973_v47, %v11973_v47 }
 0x8ae   :  { %9644 = vmatmul.mubr.bf16.vlgmr.msra.gmra.mrb[48].mxu0 %v11977_v45 }
 0x8af   :  { %3482 = vmatpush1.bf16.msra.mxu0 %v11706_v19  ;;  %3513 = vmatprep.mubr.bf16.mxu0 %v13080_v60 }
 0x8b0   :  { %3483 = vmatprep.subr.bf16.mxu0 %v11712_v57  ;;  %v12019_v57 = vld [vmem:[%s13028_s10] ss:$0 sm:$0xff] }
 0x8b3   :  { %3484 = vmatpush1.bf16.msra.mxu0 %v11716_v17 }
 0x8b4   :  { %3485 = vmatprep.subr.bf16.mxu0 %v11720_v16 }
 0x8b7   :  { %3486 = vmatpush1.bf16.msra.mxu0 %v11723_v38 }
 0x8b8   :  { %3487 = vmatprep.subr.bf16.mxu0 %v11726_v40 }
 0x8bb   :  { %3488 = vmatpush1.bf16.msra.mxu0 %v11729_v42 }
 0x8bc   :  { %3489 = vmatprep.subr.bf16.mxu0 %v11732_v10  ;;  %v10494_v10 = vld [vmem:[#allocation3 + $0x8] ss:$12 sps:$4 sm:$0xff]  }
 0x8bf   :  { %3490 = vmatpush1.bf16.msra.mxu0 %v11735_v46 }
 0x8c0   :  { %3491 = vmatprep.subr.bf16.mxu0 %v11738_v50  ;;  %v10495_v50 = vld [vmem:[#allocation3 + $0x20] ss:$12 sps:$4 sm:$0xff]  }
 0x8c3   :  { %3492 = vmatpush1.bf16.msra.mxu0 %v11741_v20  ;;  %v10496_v20 = vld [vmem:[#allocation3 + $0x38] ss:$12 sps:$4 sm:$0xff]  }
 0x8c4   :  { %3493 = vmatprep.subr.bf16.mxu0 %v11744_v13  ;;  %v10497_v13 = vld [vmem:[#allocation3 + $0x50] ss:$12 sps:$4 sm:$0xff]  }
 0x8c7   :  { %3494 = vmatpush1.bf16.msra.mxu0 %v11747_v2  ;;  %v10498_v2 = vld [vmem:[#allocation3 + $0x68] ss:$12 sps:$4 sm:$0xff]  }
 0x8c8   :  { %3495 = vmatprep.subr.bf16.mxu0 %v11750_v5  ;;  %v10499_v5 = vld [vmem:[#allocation3 + $0x80] ss:$12 sps:$4 sm:$0xff]  }
 0x8cb   :  { %3496 = vmatpush1.bf16.msra.mxu0 %v11753_v62  ;;  %v10500_v62 = vld [vmem:[#allocation3 + $0x98] ss:$12 sps:$4 sm:$0xff]  }
 0x8cc   :  { %3745 = vmatprep.subr.bf16.mxu0 %v11782_v24  ;;  %v10501_v24 = vld [vmem:[#allocation3 + $0xb0] ss:$12 sps:$4 sm:$0xff]  }
 0x8ce   :  { %3514 = vmatmul.mubr.bf16.vlgmr.msra.gmra.mrb[52].mxu0 %v11859_v29 }
 0x8cf   :  { %3746 = vmatpush1.bf16.msra.mxu0 %v11780_v53  ;;  %3777 = vmatprep.mubr.bf16.mxu0 %v13080_v60 }
 0x8d0   :  { %3747 = vmatprep.subr.bf16.mxu0 %v11784_v55 }
 0x8d3   :  { %3748 = vmatpush1.bf16.msra.mxu0 %v11788_v59 }
 0x8d4   :  { %3749 = vmatprep.subr.bf16.mxu0 %v11792_v12 }
 0x8d7   :  { %3750 = vmatpush1.bf16.msra.mxu0 %v11795_v27 }
 0x8d8   :  { %3751 = vmatprep.subr.bf16.mxu0 %v11800_v63 }
 0x8db   :  { %3752 = vmatpush1.bf16.msra.mxu0 %v11803_v1  ;;  %v10502_v1 = vld [vmem:[#allocation5 + $0x8] ss:$12 sps:$4 sm:$0xff]  }
 0x8dc   :  { %3753 = vmatprep.subr.bf16.mxu0 %v11807_v8  ;;  %v10503_v8 = vld [vmem:[#allocation5 + $0x20] ss:$12 sps:$4 sm:$0xff]  }
 0x8df   :  { %3754 = vmatpush1.bf16.msra.mxu0 %v11810_v4  ;;  %v10506_v4 = vld [vmem:[#allocation5 + $0x68] ss:$12 sps:$4 sm:$0xff]  }
 0x8e0   :  { %3755 = vmatprep.subr.bf16.mxu0 %v11813_v11  ;;  %v10507_v11 = vld [vmem:[#allocation5 + $0x80] ss:$12 sps:$4 sm:$0xff]  }
 0x8e3   :  { %3756 = vmatpush1.bf16.msra.mxu0 %v11816_v18  ;;  %v10508_v18 = vld [vmem:[#allocation5 + $0x98] ss:$12 sps:$4 sm:$0xff]  }
 0x8e4   :  { %3757 = vmatprep.subr.bf16.mxu0 %v11820_v7  ;;  %v10509_v7 = vld [vmem:[#allocation5 + $0xb0] ss:$12 sps:$4 sm:$0xff]  }
 0x8e7   :  { %3758 = vmatpush1.bf16.msra.mxu0 %v11823_v23 }
 0x8e8   :  { %3759 = vmatprep.subr.bf16.mxu0 %v11827_v48  ;;  %v12048_v48 = vld [vmem:[%s13030_s12] ss:$0 sm:$0xff] }
 0x8eb   :  { %3760 = vmatpush1.bf16.msra.mxu0 %v11830_v28 }
 0x8ec   :  { %3986 = vmatprep.subr.bf16.mxu0 %v11834_v3 }
 0x981   :  { %v3205_v19 = vpop.f32.mrb[48].mxu0 }
 0x982   :  { %v3206_v17 = vadd.f32 %v12019_v57, %v3205_v19  ;;  %v9645_v16 = vpop.f32.mrb[49].mxu0 }
 0x983   :  { %v3208_v38 = vpop.f32.mrb[50].mxu0 }
 0x984   :  { %v3211_v40 = vmax.f32 %v3206_v17, 0.0  ;;  %v9646_v42 = vpop.f32.mrb[51].mxu0 }
 0x986   :  { %v3212_v46 = vpack.c.bf16 %v3211_v40, %v3211_v40 }
 0x988   :  { %9664 = vmatmul.mubr.bf16.vlgmr.msra.gmra.mrb[52].mxu1 %v3212_v46  ;;  %v13092_v46 = vld [vmem:[#allocation25_spill] sm:$0xff] }
 0x989   :  { %9668 = vmatpush3.bf16.msra.mxu1 %v10494_v10  ;;  %9683 = vmatprep.mubr.msk.bf16.mxu1 %vm11147_vm2, %v13078_v44  ;;  %v10510_v10 = vld [vmem:[#allocation7 + $0x8] ss:$12 sps:$4 sm:$0xff]  }
 0x98a   :  { %9669 = vmatprep.subr.bf16.mxu1 %v13078_v44 }
 0x98d   :  { %9670 = vmatpush3.bf16.msra.mxu1 %v10495_v50  ;;  %v10513_v50 = vld [vmem:[#allocation7 + $0x50] ss:$12 sps:$4 sm:$0xff]  }
 0x98e   :  { %9671 = vmatprep.subr.bf16.mxu1 %v13078_v44 }
 0x991   :  { %9672 = vmatpush3.bf16.msra.mxu1 %v10496_v20  ;;  %v13095_v20 = vld [vmem:[#allocation28_spill] sm:$0xff] }
 0x992   :  { %9673 = vmatprep.subr.bf16.mxu1 %v13078_v44 }
 0x995   :  { %9674 = vmatpush3.bf16.msra.mxu1 %v10497_v13  ;;  %v10514_v13 = vld [vmem:[#allocation7 + $0x68] ss:$12 sps:$4 sm:$0xff]  }
 0x996   :  { %9675 = vmatprep.subr.bf16.mxu1 %v13078_v44 }
 0x999   :  { %9676 = vmatpush3.bf16.msra.mxu1 %v10498_v2  ;;  %v13096_v2 = vld [vmem:[#allocation29_spill] sm:$0xff] }
 0x99a   :  { %9677 = vmatprep.subr.bf16.mxu1 %v13078_v44 }
 0x99d   :  { %9678 = vmatpush3.bf16.msra.mxu1 %v10499_v5  ;;  %v10515_v5 = vld [vmem:[#allocation7 + $0x80] ss:$12 sps:$4 sm:$0xff]  }
 0x99e   :  { %9679 = vmatprep.subr.bf16.mxu1 %v13078_v44 }
 0x9a1   :  { %v3515_v53 = vpop.f32.mrb[52].mxu0  ;;  %9680 = vmatpush3.bf16.msra.mxu1 %v10500_v62  ;;  %v13098_v62 = vld [vmem:[#allocation31_spill] sm:$0xff] }
 0x9a2   :  { %v3562_v55 = vadd.f32 %v3515_v53, %v11387_v31  ;;  %v3517_v59 = vpop.f32.mrb[53].mxu0  ;;  %9681 = vmatprep.subr.bf16.mxu1 %v13078_v44  ;;  %v10504_v31 = vld [vmem:[#allocation5 + $0x38] ss:$12 sps:$4 sm:$0xff]  }
 0x9a3   :  { %v3569_v12 = vadd.f32 %v3517_v59, %v11392_v35  ;;  %v3519_v27 = vpop.f32.mrb[54].mxu0  ;;  %v10505_v35 = vld [vmem:[#allocation5 + $0x50] ss:$12 sps:$4 sm:$0xff]   ;;  %v13101_v59 = vld [vmem:[#allocation34_spill] sm:$0xff] }
 0x9a4   :  { %v3520_v63 = vpop.f32.mrb[55].mxu0  ;;  %v8556_v6 = vmul.f32 -1.442695, %v3562_v55  ;;  %v13099_v53 = vld [vmem:[#allocation32_spill] sm:$0xff]  ;;  %v13100_v55 = vld [vmem:[#allocation33_spill] sm:$0xff]  ;;  %v13102_v27 = vld [vmem:[#allocation35_spill] sm:$0xff] }
 0x9a5   :  { %9682 = vmatpush3.bf16.msra.mxu1 %v10501_v24  ;;  %v8557_v61 = vmul.f32 -1.442695, %v3569_v12  ;;  %v10516_v24 = vld [vmem:[#allocation7 + $0x98] ss:$12 sps:$4 sm:$0xff]   ;;  %v10517_v12 = vld [vmem:[#allocation7 + $0xb0] ss:$12 sps:$4 sm:$0xff]  }
 0x9a6   :  { %9687 = vmatprep.subr.bf16.mxu1 %v13078_v44  ;;  %10898 = vpow2.f32 %v8556_v6  ;;  %v13103_v63 = vld [vmem:[#allocation36_spill] sm:$0xff] }
 0x9a7   :  { %10900 = vpow2.f32 %v8557_v61 }
 0x9a8   :  { %9684 = vmatmul.mubr.bf16.vlgmr.msra.gmra.mrb[56].mxu1 %v11859_v29 }
 0x9a9   :  { %9703 = vmatprep.mubr.msk.bf16.mxu1 %vm11147_vm2, %v13078_v44  ;;  %9688 = vmatpush3.bf16.msra.mxu1 %v10502_v1  ;;  %v10518_v1 = vld [vmem:[%s13027_s9] sm:$0xff]  }
 0x9aa   :  { %9689 = vmatprep.subr.bf16.mxu1 %v13078_v44 }
 0x9ad   :  { %9690 = vmatpush3.bf16.msra.mxu1 %v10503_v8  ;;  %v10519_v8 = vld [vmem:[%s13027_s9 + $0x8] sm:$0xff]  }
 0x9ae   :  { %9691 = vmatprep.subr.bf16.mxu1 %v13078_v44 }
 0x9b0   :  { %v10899_v43 = vpop.eup %10898 }
 0x9b1   :  { %9692 = vmatpush3.bf16.msra.mxu1 %v10504_v31  ;;  %v3566_v36 = vadd.f32 1.0, %v10899_v43  ;;  %v10901_v54 = vpop.eup %10900  ;;  %v10521_v31 = vld [vmem:[%s13027_s9 + $0x18] sm:$0xff]  }
 0x9b2   :  { %9693 = vmatprep.subr.bf16.mxu1 %v13078_v44  ;;  %v3573_v22 = vadd.f32 1.0, %v10901_v54  ;;  %v10555_v54 = vld [vmem:[#allocation8 + $0x28] sm:$0xff]  }
 0x9b3   :  { %10902 = vrcp.f32 %v3566_v36 }
 0x9b4   :  { %10904 = vrcp.f32 %v3573_v22  ;;  %v10556_v22 = vld [vmem:[#allocation8 + $0x30] sm:$0xff]  }
 0x9b5   :  { %9694 = vmatpush3.bf16.msra.mxu1 %v10505_v35  ;;  %v10522_v35 = vld [vmem:[%s13027_s9 + $0x20] sm:$0xff]  }
 0x9b6   :  { %9695 = vmatprep.subr.bf16.mxu1 %v13078_v44 }
 0x9b9   :  { %9696 = vmatpush3.bf16.msra.mxu1 %v10506_v4  ;;  %v10523_v4 = vld [vmem:[%s13027_s9 + $0x28] sm:$0xff]  }
 0x9ba   :  { %9697 = vmatprep.subr.bf16.mxu1 %v13078_v44 }
 0x9bd   :  { %9698 = vmatpush3.bf16.msra.mxu1 %v10507_v11  ;;  %v10903_v25 = vpop.eup %10902  ;;  %v10524_v11 = vld [vmem:[%s13027_s9 + $0x30] sm:$0xff]  }
 0x9be   :  { %9699 = vmatprep.subr.bf16.mxu1 %v13078_v44  ;;  %v10905_v19 = vpop.eup %10904 }
 0x9bf   :  { %v3580_v17 = vsub.f32 1.0, %v10905_v19  ;;  %v3582_v40 = vmul.f32 %v10905_v19, %v11853_v52  ;;  %v10512_v52 = vld [vmem:[#allocation7 + $0x38] ss:$12 sps:$4 sm:$0xff]  }
 0x9c1   :  { %9700 = vmatpush3.bf16.msra.mxu1 %v10508_v18  ;;  %v10525_v18 = vld [vmem:[%s13027_s9 + $0x38] sm:$0xff]  }
 0x9c2   :  { %9701 = vmatprep.subr.bf16.mxu1 %v13078_v44 }
 0x9c5   :  { %9702 = vmatpush3.bf16.msra.mxu1 %v10509_v7  ;;  %v12129_v7 = vld [vmem:[#allocation3 + $0x4] ss:$12 sps:$4 sm:$0xff]  }
 0x9c6   :  { %9707 = vmatprep.subr.bf16.mxu1 %v13078_v44 }
 0xa5b   :  { %v3311_v23 = vpop.f32.mrb[52].mxu1 }
 0xa5c   :  { %v3312_v28 = vadd.f32 %v12048_v48, %v3311_v23  ;;  %v9665_v3 = vpop.f32.mrb[53].mxu1  ;;  %v10550_v23 = vld [vmem:[#allocation8] sm:$0xff]  }
 0xa5d   :  { %v3314_v29 = vpop.f32.mrb[54].mxu1  ;;  %v10552_v3 = vld [vmem:[#allocation8 + $0x10] sm:$0xff]  }
 0xa5e   :  { %3317 = vst [vmem:[%s13031_s13 + $0x10] sm:$0xff] %v3312_v28  ;;  %v9666_v37 = vpop.f32.mrb[55].mxu1  ;;  %v10551_v28 = vld [vmem:[#allocation8 + $0x8] sm:$0xff]   ;;  %v10553_v29 = vld [vmem:[#allocation8 + $0x18] sm:$0xff]  }
 0xa5f   :  { %v10554_v37 = vld [vmem:[#allocation8 + $0x20] sm:$0xff]  }
 0xa7b   :  { %v3556_v30 = vpop.f32.mrb[56].mxu1 }
 0xa7c   :  { %v3576_v21 = vadd.f32 %v11848_v0, %v3556_v30  ;;  %v9685_v41 = vpop.f32.mrb[57].mxu1 }
 0xa7d   :  { %v3559_v58 = vpop.f32.mrb[58].mxu1 }
 0xa7e   :  { %v3577_v9 = vmul.f32 %v10903_v25, %v3576_v21  ;;  %v9686_v49 = vpop.f32.mrb[59].mxu1 }
 0xa80   :  { %v3578_v15 = vadd.f32 %v3577_v9, %v11390_v33  ;;  %v10511_v33 = vld [vmem:[#allocation7 + $0x20] ss:$12 sps:$4 sm:$0xff]  }
 0xa82   :  { %10906 = vtanh.f32 %v3578_v15 }
 0xa8c   :  { %v10907_v16 = vpop.eup %10906 }
 0xa8d   :  { %v3581_v38 = vmul.f32 %v10907_v16, %v3580_v17 }
 0xa8f   :  { %v12057_v42 = vadd.f32 %v3582_v40, %v3581_v38 }
 0xa91   :  { %v12061_v0 = vpack.c.bf16 %v12057_v42, %v12057_v42 }
 0xa93   :  { %3778 = vmatmul.mubr.bf16.vlgmr.msra.gmra.mrb[56].mxu0 %v12061_v0  ;;  %9704 = vmatmul.mubr.bf16.vlgmr.msra.gmra.mrb[60].mxu1 %v12061_v0 }
 0xa94   :  { %3987 = vmatpush1.bf16.msra.mxu0 %v11855_v51  ;;  %9708 = vmatpush3.bf16.msra.mxu1 %v10510_v10  ;;  %v13093_v51 = vld [vmem:[#allocation26_spill] sm:$0xff] }
 0xa95   :  { %3988 = vmatprep.subr.bf16.mxu0 %v11861_v56  ;;  %9709 = vmatprep.subr.bf16.mxu1 %v13078_v44  ;;  %v13094_v56 = vld [vmem:[#allocation27_spill] sm:$0xff] }
 0xa96   :  { %4018 = vmatprep.mubr.bf16.mxu0 %v13080_v60  ;;  %9723 = vmatprep.mubr.msk.bf16.mxu1 %vm11147_vm2, %v13078_v44 }
 0xa98   :  { %3989 = vmatpush1.bf16.msra.mxu0 %v11866_v26  ;;  %9710 = vmatpush3.bf16.msra.mxu1 %v10511_v33  ;;  %v13097_v26 = vld [vmem:[#allocation30_spill] sm:$0xff] }
 0xa99   :  { %3990 = vmatprep.subr.bf16.mxu0 %v13092_v46  ;;  %9711 = vmatprep.subr.bf16.mxu1 %v13078_v44 }
 0xa9c   :  { %3991 = vmatpush1.bf16.msra.mxu0 %v13093_v51  ;;  %9712 = vmatpush3.bf16.msra.mxu1 %v10512_v52 }
 0xa9d   :  { %3992 = vmatprep.subr.bf16.mxu0 %v13094_v56  ;;  %9713 = vmatprep.subr.bf16.mxu1 %v13078_v44 }
 0xaa0   :  { %3993 = vmatpush1.bf16.msra.mxu0 %v13095_v20  ;;  %9714 = vmatpush3.bf16.msra.mxu1 %v10513_v50 }
 0xaa1   :  { %3994 = vmatprep.subr.bf16.mxu0 %v13096_v2  ;;  %9715 = vmatprep.subr.bf16.mxu1 %v13078_v44 }
 0xaa4   :  { %3995 = vmatpush1.bf16.msra.mxu0 %v13097_v26  ;;  %9716 = vmatpush3.bf16.msra.mxu1 %v10514_v13 }
 0xaa5   :  { %3996 = vmatprep.subr.bf16.mxu0 %v13098_v62  ;;  %9717 = vmatprep.subr.bf16.mxu1 %v13078_v44 }
 0xaa8   :  { %3997 = vmatpush1.bf16.msra.mxu0 %v13099_v53  ;;  %9718 = vmatpush3.bf16.msra.mxu1 %v10515_v5 }
 0xaa9   :  { %3998 = vmatprep.subr.bf16.mxu0 %v13100_v55  ;;  %9719 = vmatprep.subr.bf16.mxu1 %v13078_v44  ;;  %v12152_v55 = vld [vmem:[#allocation3 + $0x1c] ss:$12 sps:$4 sm:$0xff]  }
 0xaac   :  { %3999 = vmatpush1.bf16.msra.mxu0 %v13101_v59  ;;  %9720 = vmatpush3.bf16.msra.mxu1 %v10516_v24  ;;  %v12146_v24 = vld [vmem:[#allocation3] ss:$12 sps:$4 sm:$0xff]   ;;  %v12156_v59 = vld [vmem:[#allocation3 + $0x18] ss:$12 sps:$4 sm:$0xff]  }
 0xaad   :  { %4000 = vmatprep.subr.bf16.mxu0 %v13102_v27  ;;  %9721 = vmatprep.subr.bf16.mxu1 %v13078_v44  ;;  %v12166_v27 = vld [vmem:[#allocation3 + $0x4c] ss:$12 sps:$4 sm:$0xff]  }
 0xab0   :  { %4001 = vmatpush1.bf16.msra.mxu0 %v13103_v63  ;;  %9722 = vmatpush3.bf16.msra.mxu1 %v10517_v12  ;;  %v12163_v12 = vld [vmem:[#allocation3 + $0x30] ss:$12 sps:$4 sm:$0xff]   ;;  %v12169_v63 = vld [vmem:[#allocation3 + $0x48] ss:$12 sps:$4 sm:$0xff]  }
 0xab1   :  { %9727 = vmatprep.subr.bf16.mxu0 %v13078_v44  ;;  %9747 = vmatprep.subr.bf16.mxu1 %v13078_v44 }
 0xab3   :  { %4019 = vmatmul.mubr.bf16.vlgmr.msra.gmra.mrb[56].mxu0 %v11977_v45  ;;  %9724 = vmatmul.mubr.bf16.vlgmr.msra.gmra.mrb[64].mxu1 %v11977_v45  ;;  %v10520_v45 = vld [vmem:[%s13027_s9 + $0x10] sm:$0xff]  }
 0xab4   :  { %9743 = vmatprep.mubr.msk.bf16.mxu0 %vm11147_vm2, %v13078_v44  ;;  %9763 = vmatprep.mubr.msk.bf16.mxu1 %vm11147_vm2, %v13078_v44 }
 0xab5   :  { %9728 = vmatpush3.bf16.msra.mxu0 %v10518_v1  ;;  %9748 = vmatpush3.bf16.msra.mxu1 %v10550_v23  ;;  %v12172_v1 = vld [vmem:[#allocation3 + $0x64] ss:$12 sps:$4 sm:$0xff]   ;;  %v10557_v23 = vld [vmem:[#allocation8 + $0x38] sm:$0xff]  }
 0xab6   :  { %9729 = vmatprep.subr.bf16.mxu0 %v13078_v44  ;;  %9749 = vmatprep.subr.bf16.mxu1 %v13078_v44 }
 0xab9   :  { %9730 = vmatpush3.bf16.msra.mxu0 %v10519_v8  ;;  %9750 = vmatpush3.bf16.msra.mxu1 %v10551_v28  ;;  %v12175_v8 = vld [vmem:[#allocation3 + $0x60] ss:$12 sps:$4 sm:$0xff]  }
 0xaba   :  { %9731 = vmatprep.subr.bf16.mxu0 %v13078_v44  ;;  %9751 = vmatprep.subr.bf16.mxu1 %v13078_v44 }
 0xabd   :  { %9732 = vmatpush3.bf16.msra.mxu0 %v10520_v45  ;;  %9752 = vmatpush3.bf16.msra.mxu1 %v10552_v3  ;;  %v12178_v45 = vld [vmem:[#allocation3 + $0x7c] ss:$12 sps:$4 sm:$0xff]  }
 0xabe   :  { %9733 = vmatprep.subr.bf16.mxu0 %v13078_v44  ;;  %9753 = vmatprep.subr.bf16.mxu1 %v13078_v44 }
 0xac1   :  { %9734 = vmatpush3.bf16.msra.mxu0 %v10521_v31  ;;  %9754 = vmatpush3.bf16.msra.mxu1 %v10553_v29  ;;  %v12181_v31 = vld [vmem:[#allocation3 + $0x78] ss:$12 sps:$4 sm:$0xff]  }
 0xac2   :  { %9735 = vmatprep.subr.bf16.mxu0 %v13078_v44  ;;  %9755 = vmatprep.subr.bf16.mxu1 %v13078_v44 }
 0xac5   :  { %9736 = vmatpush3.bf16.msra.mxu0 %v10522_v35  ;;  %9756 = vmatpush3.bf16.msra.mxu1 %v10554_v37  ;;  %v12184_v35 = vld [vmem:[#allocation3 + $0x94] ss:$12 sps:$4 sm:$0xff]  }
 0xac6   :  { %9737 = vmatprep.subr.bf16.mxu0 %v13078_v44  ;;  %9757 = vmatprep.subr.bf16.mxu1 %v13078_v44 }
 0xac9   :  { %9738 = vmatpush3.bf16.msra.mxu0 %v10523_v4  ;;  %9758 = vmatpush3.bf16.msra.mxu1 %v10555_v54  ;;  %v12187_v4 = vld [vmem:[#allocation3 + $0x90] ss:$12 sps:$4 sm:$0xff]   ;;  %v10559_v54 = vld [vmem:[#allocation3 + $0x20] ss:$12 sps:$4 sm:$0xff]  }
 0xaca   :  { %9739 = vmatprep.subr.bf16.mxu0 %v13078_v44  ;;  %9759 = vmatprep.subr.bf16.mxu1 %v13078_v44 }
 0xacd   :  { %9740 = vmatpush3.bf16.msra.mxu0 %v10524_v11  ;;  %9760 = vmatpush3.bf16.msra.mxu1 %v10556_v22  ;;  %v12190_v11 = vld [vmem:[#allocation3 + $0xac] ss:$12 sps:$4 sm:$0xff]  }
 0xace   :  { %9741 = vmatprep.subr.bf16.mxu0 %v13078_v44  ;;  %9761 = vmatprep.subr.bf16.mxu1 %v13078_v44  ;;  %v10560_v22 = vld [vmem:[#allocation3 + $0x38] ss:$12 sps:$4 sm:$0xff]  }
 0xad1   :  { %9742 = vmatpush3.bf16.msra.mxu0 %v10525_v18  ;;  %v12193_v18 = vld [vmem:[#allocation3 + $0xa8] ss:$12 sps:$4 sm:$0xff]   ;;  %9762 = vmatpush3.bf16.msra.mxu1 %v10557_v23 }
 0xad2   :  { %4464 = vmatprep.subr.bf16.mxu0 %v12129_v7  ;;  %9767 = vmatprep.subr.bf16.mxu1 %v13078_v44  ;;  %v12253_v23 = vld [vmem:[#allocation5 + $0x7c] ss:$12 sps:$4 sm:$0xff]  }
 0xb66   :  { %v3820_v6 = vpop.f32.mrb[60].mxu1 }
 0xb67   :  { %v9705_v61 = vpop.f32.mrb[61].mxu1  ;;  %v3821_v50 = vadd.f32 %v3820_v6, %v11561_v32 }
 0xb68   :  { %v3823_v43 = vpop.f32.mrb[62].mxu1 }
 0xb69   :  { %v9706_v36 = vpop.f32.mrb[63].mxu1  ;;  %v10558_v43 = vld [vmem:[#allocation3 + $0x8] ss:$12 sps:$4 sm:$0xff]  }
 0xb86   :  { %v4020_v30 = vpop.f32.mrb[56].mxu0  ;;  %v4061_v21 = vpop.f32.mrb[64].mxu1 }
 0xb87   :  { %v10173_v41 = vadd.f32 %v4020_v30, %v11546_v14  ;;  %v4022_v25 = vpop.f32.mrb[57].mxu0  ;;  %v9725_v58 = vpop.f32.mrb[65].mxu1  ;;  %v4081_v46 = vadd.f32 %v11968_v39, %v4061_v21  ;;  %v10562_v30 = vld [vmem:[#allocation3 + $0x68] ss:$12 sps:$4 sm:$0xff]   ;;  %v10563_v21 = vld [vmem:[#allocation3 + $0x80] ss:$12 sps:$4 sm:$0xff]  }
 0xb88   :  { %v4024_v9 = vpop.f32.mrb[58].mxu0  ;;  %v4064_v49 = vpop.f32.mrb[66].mxu1  ;;  %v10174_v16 = vadd.f32 %v4022_v25, %v11550_v34  ;;  %v10565_v58 = vld [vmem:[#allocation3 + $0xb0] ss:$12 sps:$4 sm:$0xff]  }
 0xb89   :  { %v8606_v15 = vmul.f32 -1.442695, %v10173_v41  ;;  %v4025_v19 = vpop.f32.mrb[59].mxu0  ;;  %v9726_v17 = vpop.f32.mrb[67].mxu1  ;;  %v10564_v41 = vld [vmem:[#allocation3 + $0x98] ss:$12 sps:$4 sm:$0xff]  }
 0xb8a   :  { %v8607_v38 = vmul.f32 -1.442695, %v10174_v16  ;;  %v13104_v9 = vld [vmem:[#allocation13_spill] sm:$0xff]  ;;  %v13105_v19 = vld [vmem:[#allocation15_spill] sm:$0xff] }
 0xb8b   :  { %10908 = vpow2.f32 %v8606_v15 }
 0xb8c   :  { %10910 = vpow2.f32 %v8607_v38 }
 0xb95   :  { %v10909_v40 = vpop.eup %10908 }
 0xb96   :  { %v4071_v10 = vadd.f32 1.0, %v10909_v40  ;;  %v10911_v33 = vpop.eup %10910  ;;  %v12220_v40 = vld [vmem:[#allocation5] ss:$12 sps:$4 sm:$0xff]  }
 0xb97   :  { %v4078_v52 = vadd.f32 1.0, %v10911_v33  ;;  %v10569_v33 = vld [vmem:[#allocation5 + $0x8] ss:$12 sps:$4 sm:$0xff]  }
 0xb98   :  { %10912 = vrcp.f32 %v4071_v10  ;;  %v12222_v10 = vld [vmem:[#allocation5 + $0x4] ss:$12 sps:$4 sm:$0xff]  }
 0xb99   :  { %10914 = vrcp.f32 %v4078_v52  ;;  %v12224_v52 = vld [vmem:[#allocation5 + $0x1c] ss:$12 sps:$4 sm:$0xff]  }
 0xba2   :  { %v10913_v51 = vpop.eup %10912 }
 0xba3   :  { %v4082_v56 = vmul.f32 %v10913_v51, %v4081_v46  ;;  %v10915_v13 = vpop.eup %10914  ;;  %v10573_v46 = vld [vmem:[#allocation5 + $0x20] ss:$12 sps:$4 sm:$0xff]   ;;  %v12228_v51 = vld [vmem:[#allocation5 + $0x18] ss:$12 sps:$4 sm:$0xff]  }
 0xba4   :  { %v4085_v2 = vsub.f32 1.0, %v10915_v13  ;;  %v4087_v62 = vmul.f32 %v10915_v13, %v11973_v47  ;;  %v12160_v47 = vld [vmem:[#allocation3 + $0x34] ss:$12 sps:$4 sm:$0xff]  }
 0xba5   :  { %v4083_v20 = vadd.f32 %v4082_v56, %v3821_v50  ;;  %v12235_v50 = vld [vmem:[#allocation5 + $0x30] ss:$12 sps:$4 sm:$0xff]   ;;  %v10577_v56 = vld [vmem:[#allocation5 + $0x38] ss:$12 sps:$4 sm:$0xff]   ;;  %v12243_v13 = vld [vmem:[#allocation5 + $0x48] ss:$12 sps:$4 sm:$0xff]  }
 0xba7   :  { %10916 = vtanh.f32 %v4083_v20  ;;  %v12240_v20 = vld [vmem:[#allocation5 + $0x4c] ss:$12 sps:$4 sm:$0xff]  }
 0xbb1   :  { %v10917_v26 = vpop.eup %10916 }
 0xbb2   :  { %v4086_v5 = vmul.f32 %v10917_v26, %v4085_v2  ;;  %v10581_v2 = vld [vmem:[#allocation5 + $0x50] ss:$12 sps:$4 sm:$0xff]  }
 0xbb3   :  { %v12247_v26 = vld [vmem:[#allocation5 + $0x64] ss:$12 sps:$4 sm:$0xff]  }
 0xbb4   :  { %v12144_v53 = vadd.f32 %v4087_v62, %v4086_v5  ;;  %v12250_v5 = vld [vmem:[#allocation5 + $0x60] ss:$12 sps:$4 sm:$0xff]   ;;  %v10585_v62 = vld [vmem:[#allocation5 + $0x68] ss:$12 sps:$4 sm:$0xff]  }
 0xbb6   :  { %v12150_v39 = vpack.c.bf16 %v12144_v53, %v12144_v53 }
 0xbb8   :  { %9744 = vmatmul.mubr.bf16.vlgmr.msra.gmra.mrb[60].mxu0 %v12150_v39 }
 0xbb9   :  { %4465 = vmatpush1.bf16.msra.mxu0 %v12146_v24  ;;  %4496 = vmatprep.mubr.bf16.mxu0 %v13080_v60 }
 0xbba   :  { %4466 = vmatprep.subr.bf16.mxu0 %v12152_v55 }
 0xbbd   :  { %4467 = vmatpush1.bf16.msra.mxu0 %v12156_v59 }
 0xbbe   :  { %4468 = vmatprep.subr.bf16.mxu0 %v12160_v47 }
 0xbc1   :  { %4469 = vmatpush1.bf16.msra.mxu0 %v12163_v12 }
 0xbc2   :  { %4470 = vmatprep.subr.bf16.mxu0 %v12166_v27 }
 0xbc5   :  { %4471 = vmatpush1.bf16.msra.mxu0 %v12169_v63 }
 0xbc6   :  { %4472 = vmatprep.subr.bf16.mxu0 %v12172_v1 }
 0xbc9   :  { %4473 = vmatpush1.bf16.msra.mxu0 %v12175_v8 }
 0xbca   :  { %4474 = vmatprep.subr.bf16.mxu0 %v12178_v45 }
 0xbcd   :  { %4475 = vmatpush1.bf16.msra.mxu0 %v12181_v31 }
 0xbce   :  { %4476 = vmatprep.subr.bf16.mxu0 %v12184_v35 }
 0xbd1   :  { %4477 = vmatpush1.bf16.msra.mxu0 %v12187_v4 }
 0xbd2   :  { %4478 = vmatprep.subr.bf16.mxu0 %v12190_v11 }
 0xbd5   :  { %4479 = vmatpush1.bf16.msra.mxu0 %v12193_v18 }
 0xbd6   :  { %4728 = vmatprep.subr.bf16.mxu0 %v12222_v10 }
 0xbd8   :  { %4497 = vmatmul.mubr.bf16.vlgmr.msra.gmra.mrb[64].mxu0 %v12061_v0 }
 0xbd9   :  { %4760 = vmatprep.mubr.bf16.mxu0 %v13080_v60  ;;  %4729 = vmatpush1.bf16.msra.mxu0 %v12220_v40 }
 0xbda   :  { %4730 = vmatprep.subr.bf16.mxu0 %v12224_v52 }
 0xbdd   :  { %4731 = vmatpush1.bf16.msra.mxu0 %v12228_v51 }
 0xc8b   :  { %v4188_v28 = vpop.f32.mrb[60].mxu0 }
 0xc8c   :  { %v4189_v3 = vadd.f32 %v12019_v57, %v4188_v28  ;;  %v9745_v29 = vpop.f32.mrb[61].mxu0  ;;  %v10561_v57 = vld [vmem:[#allocation3 + $0x50] ss:$12 sps:$4 sm:$0xff]   ;;  %v12256_v28 = vld [vmem:[#allocation5 + $0x78] ss:$12 sps:$4 sm:$0xff]  }
 0xc8d   :  { %v4191_v6 = vpop.f32.mrb[62].mxu0  ;;  %v12260_v29 = vld [vmem:[#allocation5 + $0x94] ss:$12 sps:$4 sm:$0xff]  }
 0xc8e   :  { %v4194_v37 = vmax.f32 %v4189_v3, 0.0  ;;  %v9746_v61 = vpop.f32.mrb[63].mxu0  ;;  %v10589_v3 = vld [vmem:[#allocation5 + $0x80] ss:$12 sps:$4 sm:$0xff]   ;;  %v12263_v6 = vld [vmem:[#allocation5 + $0x90] ss:$12 sps:$4 sm:$0xff]  }
 0xc8f   :  { %v12267_v61 = vld [vmem:[#allocation5 + $0xac] ss:$12 sps:$4 sm:$0xff]  }
 0xc90   :  { %v4195_v36 = vpack.c.bf16 %v4194_v37, %v4194_v37  ;;  %v10593_v37 = vld [vmem:[#allocation5 + $0x98] ss:$12 sps:$4 sm:$0xff]  }
 0xc92   :  { %9764 = vmatmul.mubr.bf16.vlgmr.msra.gmra.mrb[68].mxu1 %v4195_v36  ;;  %v10597_v36 = vld [vmem:[#allocation5 + $0xb0] ss:$12 sps:$4 sm:$0xff]  }
 0xc93   :  { %9768 = vmatpush3.bf16.msra.mxu1 %v10558_v43  ;;  %9783 = vmatprep.mubr.msk.bf16.mxu1 %vm11147_vm2, %v13078_v44  ;;  %v12270_v43 = vld [vmem:[#allocation5 + $0xa8] ss:$12 sps:$4 sm:$0xff]  }
 0xc94   :  { %9769 = vmatprep.subr.bf16.mxu1 %v13078_v44 }
 0xc97   :  { %9770 = vmatpush3.bf16.msra.mxu1 %v10559_v54  ;;  %v12274_v54 = vld [vmem:[#allocation7 + $0x4] ss:$12 sps:$4 sm:$0xff]  }
 0xc98   :  { %9771 = vmatprep.subr.bf16.mxu1 %v13078_v44 }
 0xc9b   :  { %9772 = vmatpush3.bf16.msra.mxu1 %v10560_v22 }
 0xc9c   :  { %9773 = vmatprep.subr.bf16.mxu1 %v13078_v44 }
 0xc9f   :  { %9774 = vmatpush3.bf16.msra.mxu1 %v10561_v57 }
 0xca0   :  { %9775 = vmatprep.subr.bf16.mxu1 %v13078_v44 }
 0xca3   :  { %9776 = vmatpush3.bf16.msra.mxu1 %v10562_v30 }
 0xca4   :  { %9777 = vmatprep.subr.bf16.mxu1 %v13078_v44 }
 0xca7   :  { %9778 = vmatpush3.bf16.msra.mxu1 %v10563_v21 }
 0xca8   :  { %9779 = vmatprep.subr.bf16.mxu1 %v13078_v44 }
 0xcab   :  { %v4498_v25 = vpop.f32.mrb[64].mxu0  ;;  %9780 = vmatpush3.bf16.msra.mxu1 %v10564_v41 }
 0xcac   :  { %v12210_v49 = vadd.f32 %v4498_v25, %v13104_v9  ;;  %v4500_v15 = vpop.f32.mrb[65].mxu0  ;;  %9781 = vmatprep.subr.bf16.mxu1 %v13078_v44 }
 0xcad   :  { %v12214_v17 = vadd.f32 %v4500_v15, %v13105_v19  ;;  %v4502_v16 = vpop.f32.mrb[66].mxu0 }
 0xcae   :  { %v4503_v38 = vpop.f32.mrb[67].mxu0  ;;  %v8648_v41 = vmul.f32 -1.442695, %v12210_v49 }
 0xcaf   :  { %9782 = vmatpush3.bf16.msra.mxu1 %v10565_v58  ;;  %v8649_v58 = vmul.f32 -1.442695, %v12214_v17 }
 0xcb0   :  { %9787 = vmatprep.subr.bf16.mxu1 %v13078_v44  ;;  %10918 = vpow2.f32 %v8648_v41  ;;  %v12295_v41 = vld [vmem:[#allocation7] ss:$12 sps:$4 sm:$0xff]  }
 0xcb1   :  { %10920 = vpow2.f32 %v8649_v58 }
 0xcb2   :  { %9784 = vmatmul.mubr.bf16.vlgmr.msra.gmra.mrb[72].mxu1 %v12061_v0  ;;  %v12232_v0 = vld [vmem:[#allocation5 + $0x34] ss:$12 sps:$4 sm:$0xff]  }
 0xcb3   :  { %9803 = vmatprep.mubr.msk.bf16.mxu1 %vm11147_vm2, %v13078_v44  ;;  %9788 = vmatpush3.bf16.msra.mxu1 %v10569_v33 }
 0xcb4   :  { %9789 = vmatprep.subr.bf16.mxu1 %v13078_v44  ;;  %4732 = vmatprep.subr.bf16.mxu0 %v12232_v0 }
 0xcb5   :  { %4733 = vmatpush1.bf16.msra.mxu0 %v12235_v50 }
 0xcb6   :  { %4734 = vmatprep.subr.bf16.mxu0 %v12240_v20 }
 0xcb7   :  { %9790 = vmatpush3.bf16.msra.mxu1 %v10573_v46 }
 0xcb8   :  { %9791 = vmatprep.subr.bf16.mxu1 %v13078_v44 }
 0xcb9   :  { %4735 = vmatpush1.bf16.msra.mxu0 %v12243_v13 }
 0xcba   :  { %4736 = vmatprep.subr.bf16.mxu0 %v12247_v26  ;;  %v10919_v9 = vpop.eup %10918 }
 0xcbb   :  { %9792 = vmatpush3.bf16.msra.mxu1 %v10577_v56  ;;  %v4549_v15 = vadd.f32 1.0, %v10919_v9  ;;  %v10921_v19 = vpop.eup %10920  ;;  %v12301_v9 = vld [vmem:[#allocation7 + $0x1c] ss:$12 sps:$4 sm:$0xff]  }
 0xcbc   :  { %9793 = vmatprep.subr.bf16.mxu1 %v13078_v44  ;;  %v4556_v16 = vadd.f32 1.0, %v10921_v19  ;;  %v12310_v19 = vld [vmem:[#allocation7 + $0x34] ss:$12 sps:$4 sm:$0xff]  }
 0xcbd   :  { %4737 = vmatpush1.bf16.msra.mxu0 %v12250_v5  ;;  %10922 = vrcp.f32 %v4549_v15  ;;  %v12306_v15 = vld [vmem:[#allocation7 + $0x18] ss:$12 sps:$4 sm:$0xff]  }
 0xcbe   :  { %4738 = vmatprep.subr.bf16.mxu0 %v12253_v23  ;;  %10924 = vrcp.f32 %v4556_v16  ;;  %v12316_v16 = vld [vmem:[#allocation7 + $0x30] ss:$12 sps:$4 sm:$0xff]  }
 0xcbf   :  { %9794 = vmatpush3.bf16.msra.mxu1 %v10581_v2 }
 0xcc0   :  { %9795 = vmatprep.subr.bf16.mxu1 %v13078_v44 }
 0xcc1   :  { %4739 = vmatpush1.bf16.msra.mxu0 %v12256_v28 }
 0xcc2   :  { %4740 = vmatprep.subr.bf16.mxu0 %v12260_v29 }
 0xcc3   :  { %9796 = vmatpush3.bf16.msra.mxu1 %v10585_v62  ;;  %v13106_v62 = vld [vmem:[#allocation16_spill] sm:$0xff] }
 0xcc4   :  { %9797 = vmatprep.subr.bf16.mxu1 %v13078_v44 }
 0xcc5   :  { %4741 = vmatpush1.bf16.msra.mxu0 %v12263_v6 }
 0xcc6   :  { %4742 = vmatprep.subr.bf16.mxu0 %v12267_v61 }
 0xcc7   :  { %9798 = vmatpush3.bf16.msra.mxu1 %v10589_v3  ;;  %v10923_v46 = vpop.eup %10922 }
 0xcc8   :  { %9799 = vmatprep.subr.bf16.mxu1 %v13078_v44 }
 0xcc9   :  { %4743 = vmatpush1.bf16.msra.mxu0 %v12270_v43 }
 0xcca   :  { %4969 = vmatprep.subr.bf16.mxu0 %v12274_v54 }
 0xccb   :  { %9800 = vmatpush3.bf16.msra.mxu1 %v10593_v37  ;;  %v10925_v37 = vpop.eup %10924 }
 0xccc   :  { %9801 = vmatprep.subr.bf16.mxu1 %v13078_v44 }
 0xccf   :  { %9802 = vmatpush3.bf16.msra.mxu1 %v10597_v36  ;;  %v4563_v36 = vsub.f32 1.0, %v10925_v37 }
 0xcd0   :  { %9807 = vmatprep.subr.bf16.mxu1 %v13078_v44 }
 0xd65   :  { %v4294_v22 = vpop.f32.mrb[68].mxu1 }
 0xd66   :  { %v4295_v57 = vadd.f32 %v12048_v48, %v4294_v22  ;;  %v9765_v30 = vpop.f32.mrb[69].mxu1  ;;  %v12288_v48 = vld [vmem:[%s13022_s4] ss:$0 sm:$0xff] }
 0xd67   :  { %v4297_v21 = vpop.f32.mrb[70].mxu1  ;;  %v4565_v30 = vmul.f32 %v10925_v37, %v12057_v42  ;;  %v10605_v42 = vld [vmem:[#allocation7 + $0x20] ss:$12 sps:$4 sm:$0xff]  }
 0xd68   :  { %4300 = vst [vmem:[%s13031_s13 + $0x18] sm:$0xff] %v4295_v57  ;;  %v9766_v25 = vpop.f32.mrb[71].mxu1  ;;  %v10621_v37 = vld [vmem:[#allocation7 + $0x80] ss:$12 sps:$4 sm:$0xff]  }
 0xd69   :  { %v10601_v25 = vld [vmem:[#allocation7 + $0x8] ss:$12 sps:$4 sm:$0xff]  }
 0xd85   :  { %v4539_v38 = vpop.f32.mrb[72].mxu1 }
 0xd86   :  { %v4559_v49 = vadd.f32 %v12288_v48, %v4539_v38  ;;  %v9785_v33 = vpop.f32.mrb[73].mxu1  ;;  %v10609_v38 = vld [vmem:[#allocation7 + $0x38] ss:$12 sps:$4 sm:$0xff]  }
 0xd87   :  { %v4542_v56 = vpop.f32.mrb[74].mxu1  ;;  %v12323_v33 = vld [vmem:[#allocation7 + $0x48] ss:$12 sps:$4 sm:$0xff]  }
 0xd88   :  { %v4560_v2 = vmul.f32 %v10923_v46, %v4559_v49  ;;  %v9786_v17 = vpop.f32.mrb[75].mxu1  ;;  %v12320_v49 = vld [vmem:[#allocation7 + $0x4c] ss:$12 sps:$4 sm:$0xff]   ;;  %13107 = vst [vmem:[#allocation25_spill] sm:$0xff] %v12323_v33  ;;  %v10613_v46 = vld [vmem:[#allocation7 + $0x50] ss:$12 sps:$4 sm:$0xff]  }
 0xd89   :  { %v12327_v56 = vld [vmem:[#allocation7 + $0x64] ss:$12 sps:$4 sm:$0xff]   ;;  %v10617_v17 = vld [vmem:[#allocation7 + $0x68] ss:$12 sps:$4 sm:$0xff]  }
 0xd8a   :  { %v4561_v3 = vadd.f32 %v4560_v2, %v13106_v62  ;;  %13108 = vst [vmem:[#allocation26_spill] sm:$0xff] %v12327_v56  ;;  %v12330_v2 = vld [vmem:[#allocation7 + $0x60] ss:$12 sps:$4 sm:$0xff]   ;;  %v12334_v62 = vld [vmem:[#allocation7 + $0x7c] ss:$12 sps:$4 sm:$0xff]  }
 0xd8b   :  { %13109 = vst [vmem:[#allocation27_spill] sm:$0xff] %v12330_v2  ;;  %13110 = vst [vmem:[#allocation28_spill] sm:$0xff] %v12334_v62 }
 0xd8c   :  { %10926 = vtanh.f32 %v4561_v3  ;;  %v12337_v3 = vld [vmem:[#allocation7 + $0x78] ss:$12 sps:$4 sm:$0xff]  }
 0xd8d   :  { %13111 = vst [vmem:[#allocation29_spill] sm:$0xff] %v12337_v3 }
 0xd96   :  { %v10927_v22 = vpop.eup %10926 }
 0xd97   :  { %v4564_v57 = vmul.f32 %v10927_v22, %v4563_v36  ;;  %v12341_v36 = vld [vmem:[#allocation7 + $0x94] ss:$12 sps:$4 sm:$0xff]   ;;  %v12344_v22 = vld [vmem:[#allocation7 + $0x90] ss:$12 sps:$4 sm:$0xff]  }
 0xd98   :  { %13112 = vst [vmem:[#allocation30_spill] sm:$0xff] %v12341_v36  ;;  %13113 = vst [vmem:[#allocation31_spill] sm:$0xff] %v12344_v22 }
 0xd99   :  { %v12293_v21 = vadd.f32 %v4565_v30, %v4564_v57  ;;  %v10625_v57 = vld [vmem:[#allocation7 + $0x98] ss:$12 sps:$4 sm:$0xff]  }
 0xd9a   :  { %v12348_v30 = vld [vmem:[#allocation7 + $0xac] ss:$12 sps:$4 sm:$0xff]  }
 0xd9b   :  { %v12299_v58 = vpack.c.bf16 %v12293_v21, %v12293_v21  ;;  %13114 = vst [vmem:[#allocation32_spill] sm:$0xff] %v12348_v30 }
 0xd9d   :  { %4761 = vmatmul.mubr.bf16.vlgmr.msra.gmra.mrb[68].mxu0 %v12299_v58  ;;  %9804 = vmatmul.mubr.bf16.vlgmr.msra.gmra.mrb[76].mxu1 %v12299_v58 }
 0xd9e   :  { %4970 = vmatpush1.bf16.msra.mxu0 %v12295_v41  ;;  %9808 = vmatpush3.bf16.msra.mxu1 %v10601_v25  ;;  %v12351_v25 = vld [vmem:[#allocation7 + $0xa8] ss:$12 sps:$4 sm:$0xff]  }
 0xd9f   :  { %4971 = vmatprep.subr.bf16.mxu0 %v12301_v9  ;;  %9809 = vmatprep.subr.bf16.mxu1 %v13078_v44  ;;  %13115 = vst [vmem:[#allocation33_spill] sm:$0xff] %v12351_v25 }
 0xda0   :  { %5001 = vmatprep.mubr.bf16.mxu0 %v13080_v60  ;;  %9823 = vmatprep.mubr.msk.bf16.mxu1 %vm11147_vm2, %v13078_v44 }
 0xda2   :  { %4972 = vmatpush1.bf16.msra.mxu0 %v12306_v15  ;;  %9810 = vmatpush3.bf16.msra.mxu1 %v10605_v42  ;;  %v10629_v42 = vld [vmem:[#allocation7 + $0xb0] ss:$12 sps:$4 sm:$0xff]  }
 0xda3   :  { %4973 = vmatprep.subr.bf16.mxu0 %v12310_v19  ;;  %9811 = vmatprep.subr.bf16.mxu1 %v13078_v44 }
 0xda6   :  { %4974 = vmatpush1.bf16.msra.mxu0 %v12316_v16  ;;  %9812 = vmatpush3.bf16.msra.mxu1 %v10609_v38  ;;  %v10630_v38 = vld [vmem:[%s13027_s9] sm:$0xff]  }
 0xda7   :  { %4975 = vmatprep.subr.bf16.mxu0 %v12320_v49  ;;  %9813 = vmatprep.subr.bf16.mxu1 %v13078_v44 }
 0xdaa   :  { %4976 = vmatpush1.bf16.msra.mxu0 %v12323_v33  ;;  %9814 = vmatpush3.bf16.msra.mxu1 %v10613_v46  ;;  %v10631_v46 = vld [vmem:[%s13027_s9 + $0x8] sm:$0xff]  }
 0xdab   :  { %4977 = vmatprep.subr.bf16.mxu0 %v12327_v56  ;;  %9815 = vmatprep.subr.bf16.mxu1 %v13078_v44 }
 0xdae   :  { %4978 = vmatpush1.bf16.msra.mxu0 %v12330_v2  ;;  %9816 = vmatpush3.bf16.msra.mxu1 %v10617_v17  ;;  %v10633_v17 = vld [vmem:[%s13027_s9 + $0x18] sm:$0xff]  }
 0xdaf   :  { %4979 = vmatprep.subr.bf16.mxu0 %v12334_v62  ;;  %9817 = vmatprep.subr.bf16.mxu1 %v13078_v44 }
 0xdb2   :  { %4980 = vmatpush1.bf16.msra.mxu0 %v12337_v3  ;;  %9818 = vmatpush3.bf16.msra.mxu1 %v10621_v37  ;;  %v10634_v37 = vld [vmem:[%s13027_s9 + $0x20] sm:$0xff]  }
 0xdb3   :  { %4981 = vmatprep.subr.bf16.mxu0 %v12341_v36  ;;  %9819 = vmatprep.subr.bf16.mxu1 %v13078_v44 }
 0xdb6   :  { %4982 = vmatpush1.bf16.msra.mxu0 %v12344_v22  ;;  %9820 = vmatpush3.bf16.msra.mxu1 %v10625_v57  ;;  %v10635_v57 = vld [vmem:[%s13027_s9 + $0x28] sm:$0xff]  }
 0xdb7   :  { %4983 = vmatprep.subr.bf16.mxu0 %v12348_v30  ;;  %9821 = vmatprep.subr.bf16.mxu1 %v13078_v44 }
 0xdba   :  { %4984 = vmatpush1.bf16.msra.mxu0 %v12351_v25  ;;  %9822 = vmatpush3.bf16.msra.mxu1 %v10629_v42  ;;  %v10636_v42 = vld [vmem:[%s13027_s9 + $0x30] sm:$0xff]  }
 0xdbb   :  { %9827 = vmatprep.subr.bf16.mxu0 %v13078_v44  ;;  %9847 = vmatprep.subr.bf16.mxu1 %v13078_v44 }
 0xdbd   :  { %5002 = vmatmul.mubr.bf16.vlgmr.msra.gmra.mrb[68].mxu0 %v12150_v39  ;;  %9824 = vmatmul.mubr.bf16.vlgmr.msra.gmra.mrb[80].mxu1 %v12150_v39  ;;  %v10632_v39 = vld [vmem:[%s13027_s9 + $0x10] sm:$0xff]  }
 0xdbe   :  { %9843 = vmatprep.mubr.msk.bf16.mxu0 %vm11147_vm2, %v13078_v44  ;;  %9863 = vmatprep.mubr.msk.bf16.mxu1 %vm11147_vm2, %v13078_v44 }
 0xdbf   :  { %9828 = vmatpush3.bf16.msra.mxu0 %v10630_v38  ;;  %v10637_v38 = vld [vmem:[%s13027_s9 + $0x38] sm:$0xff]  }
 0xdc0   :  { %9829 = vmatprep.subr.bf16.mxu0 %v13078_v44 }
 0xdc3   :  { %9830 = vmatpush3.bf16.msra.mxu0 %v10631_v46  ;;  %v10638_v46 = vld [vmem:[#allocation8] sm:$0xff]  }
 0xdc4   :  { %9831 = vmatprep.subr.bf16.mxu0 %v13078_v44  ;;  %9848 = vmatpush3.bf16.msra.mxu1 %v10638_v46  ;;  %v10643_v46 = vld [vmem:[#allocation8 + $0x28] sm:$0xff]  }
 0xdc5   :  { %9849 = vmatprep.subr.bf16.mxu1 %v13078_v44 }
 0xdc7   :  { %9832 = vmatpush3.bf16.msra.mxu0 %v10632_v39  ;;  %v10639_v39 = vld [vmem:[#allocation8 + $0x8] sm:$0xff]  }
 0xdc8   :  { %9833 = vmatprep.subr.bf16.mxu0 %v13078_v44  ;;  %9850 = vmatpush3.bf16.msra.mxu1 %v10639_v39  ;;  %v10644_v39 = vld [vmem:[#allocation8 + $0x30] sm:$0xff]  }
 0xdc9   :  { %9851 = vmatprep.subr.bf16.mxu1 %v13078_v44 }
 0xdcb   :  { %9834 = vmatpush3.bf16.msra.mxu0 %v10633_v17  ;;  %v10640_v17 = vld [vmem:[#allocation8 + $0x10] sm:$0xff]  }
 0xdcc   :  { %9835 = vmatprep.subr.bf16.mxu0 %v13078_v44  ;;  %9852 = vmatpush3.bf16.msra.mxu1 %v10640_v17 }
 0xdcd   :  { %9853 = vmatprep.subr.bf16.mxu1 %v13078_v44 }
 0xdcf   :  { %9836 = vmatpush3.bf16.msra.mxu0 %v10634_v37  ;;  %v10641_v37 = vld [vmem:[#allocation8 + $0x18] sm:$0xff]  }
 0xdd0   :  { %9837 = vmatprep.subr.bf16.mxu0 %v13078_v44  ;;  %9854 = vmatpush3.bf16.msra.mxu1 %v10641_v37 }
 0xdd1   :  { %9855 = vmatprep.subr.bf16.mxu1 %v13078_v44 }
 0xdd3   :  { %9838 = vmatpush3.bf16.msra.mxu0 %v10635_v57 }
 0xdd4   :  { %9839 = vmatprep.subr.bf16.mxu0 %v13078_v44 }
 0xdd7   :  { %9840 = vmatpush3.bf16.msra.mxu0 %v10636_v42  ;;  %v10642_v42 = vld [vmem:[#allocation8 + $0x20] sm:$0xff]  }
 0xdd8   :  { %9841 = vmatprep.subr.bf16.mxu0 %v13078_v44  ;;  %9856 = vmatpush3.bf16.msra.mxu1 %v10642_v42 }
 0xdd9   :  { %9857 = vmatprep.subr.bf16.mxu1 %v13078_v44 }
 0xddb   :  { %9842 = vmatpush3.bf16.msra.mxu0 %v10637_v38 }
 0xddc   :  { %5447 = vmatprep.subr.bf16.mxu0 %v12129_v7  ;;  %9858 = vmatpush3.bf16.msra.mxu1 %v10643_v46 }
 0xddd   :  { %9859 = vmatprep.subr.bf16.mxu1 %v13078_v44 }
 0xde0   :  { %9860 = vmatpush3.bf16.msra.mxu1 %v10644_v39 }
 0xde1   :  { %9861 = vmatprep.subr.bf16.mxu1 %v13078_v44 }
 0xe70   :  { %v4803_v57 = vpop.f32.mrb[76].mxu1 }
 0xe71   :  { %v9805_v25 = vpop.f32.mrb[77].mxu1 }
 0xe72   :  { %v4806_v7 = vpop.f32.mrb[78].mxu1 }
 0xe73   :  { %v9806_v38 = vpop.f32.mrb[79].mxu1 }
 0xe90   :  { %v5003_v17 = vpop.f32.mrb[68].mxu0  ;;  %v5044_v30 = vpop.f32.mrb[80].mxu1 }
 0xe91   :  { %v10175_v37 = vadd.f32 %v5003_v17, %v11546_v14  ;;  %v5005_v25 = vpop.f32.mrb[69].mxu0  ;;  %v9825_v22 = vpop.f32.mrb[81].mxu1  ;;  %v12408_v17 = vld [vmem:[%s13026_s8] ss:$0 sm:$0xff] }
 0xe92   :  { %v5007_v36 = vpop.f32.mrb[70].mxu0  ;;  %v5047_v7 = vpop.f32.mrb[82].mxu1  ;;  %v10176_v62 = vadd.f32 %v5005_v25, %v11550_v34 }
 0xe93   :  { %v8698_v38 = vmul.f32 -1.442695, %v10175_v37  ;;  %v5008_v42 = vpop.f32.mrb[71].mxu0  ;;  %v9826_v3 = vpop.f32.mrb[83].mxu1  ;;  %v5064_v36 = vadd.f32 %v12408_v17, %v5044_v30 }
 0xe94   :  { %v8699_v46 = vmul.f32 -1.442695, %v10176_v62  ;;  %v4804_v3 = vadd.f32 %v4803_v57, %v11561_v32 }
 0xe95   :  { %10928 = vpow2.f32 %v8698_v38 }
 0xe96   :  { %10930 = vpow2.f32 %v8699_v46 }
 0xe9f   :  { %v10929_v2 = vpop.eup %10928 }
 0xea0   :  { %v5054_v39 = vadd.f32 1.0, %v10929_v2  ;;  %v10931_v56 = vpop.eup %10930 }
 0xea1   :  { %v5061_v33 = vadd.f32 1.0, %v10931_v56 }
 0xea2   :  { %10932 = vrcp.f32 %v5054_v39 }
 0xea3   :  { %10934 = vrcp.f32 %v5061_v33  ;;  %v12488_v33 = vld [vmem:[%s13030_s12] ss:$0 sm:$0xff] }
 0xeac   :  { %v10933_v22 = vpop.eup %10932 }
 0xead   :  { %v5065_v37 = vmul.f32 %v10933_v22, %v5064_v36  ;;  %v10935_v62 = vpop.eup %10934 }
 0xeae   :  { %v5068_v7 = vsub.f32 1.0, %v10935_v62  ;;  %v5070_v56 = vmul.f32 %v10935_v62, %v12144_v53  ;;  %v10645_v53 = vld [vmem:[#allocation8 + $0x38] sm:$0xff]  }
 0xeaf   :  { %v5066_v25 = vadd.f32 %v5065_v37, %v4804_v3  ;;  %9862 = vmatpush3.bf16.msra.mxu1 %v10645_v53 }
 0xeb0   :  { %9867 = vmatprep.subr.bf16.mxu1 %v13078_v44 }
 0xeb1   :  { %10936 = vtanh.f32 %v5066_v25 }
 0xebb   :  { %v10937_v2 = vpop.eup %10936 }
 0xebc   :  { %v5069_v38 = vmul.f32 %v10937_v2, %v5068_v7 }
 0xebe   :  { %v12413_v42 = vadd.f32 %v5070_v56, %v5069_v38 }
 0xec0   :  { %v12417_v46 = vpack.c.bf16 %v12413_v42, %v12413_v42 }
 0xec2   :  { %9844 = vmatmul.mubr.bf16.vlgmr.msra.gmra.mrb[72].mxu0 %v12417_v46 }
 0xec3   :  { %5448 = vmatpush1.bf16.msra.mxu0 %v12146_v24  ;;  %5479 = vmatprep.mubr.bf16.mxu0 %v13080_v60 }
 0xec4   :  { %5449 = vmatprep.subr.bf16.mxu0 %v12152_v55  ;;  %v12459_v55 = vld [vmem:[%s13028_s10] ss:$0 sm:$0xff] }
 0xec7   :  { %5450 = vmatpush1.bf16.msra.mxu0 %v12156_v59 }
 0xec8   :  { %5451 = vmatprep.subr.bf16.mxu0 %v12160_v47 }
 0xecb   :  { %5452 = vmatpush1.bf16.msra.mxu0 %v12163_v12 }
 0xecc   :  { %5453 = vmatprep.subr.bf16.mxu0 %v12166_v27 }
 0xecf   :  { %5454 = vmatpush1.bf16.msra.mxu0 %v12169_v63 }
 0xed0   :  { %5455 = vmatprep.subr.bf16.mxu0 %v12172_v1  ;;  %v10646_v1 = vld [vmem:[#allocation3 + $0x8] ss:$12 sps:$4 sm:$0xff]  }
 0xed3   :  { %5456 = vmatpush1.bf16.msra.mxu0 %v12175_v8 }
 0xed4   :  { %5457 = vmatprep.subr.bf16.mxu0 %v12178_v45  ;;  %v10647_v45 = vld [vmem:[#allocation3 + $0x20] ss:$12 sps:$4 sm:$0xff]  }
 0xed7   :  { %5458 = vmatpush1.bf16.msra.mxu0 %v12181_v31  ;;  %v10648_v31 = vld [vmem:[#allocation3 + $0x38] ss:$12 sps:$4 sm:$0xff]  }
 0xed8   :  { %5459 = vmatprep.subr.bf16.mxu0 %v12184_v35  ;;  %v10649_v35 = vld [vmem:[#allocation3 + $0x50] ss:$12 sps:$4 sm:$0xff]  }
 0xedb   :  { %5460 = vmatpush1.bf16.msra.mxu0 %v12187_v4  ;;  %v10650_v4 = vld [vmem:[#allocation3 + $0x68] ss:$12 sps:$4 sm:$0xff]  }
 0xedc   :  { %5461 = vmatprep.subr.bf16.mxu0 %v12190_v11  ;;  %v10651_v11 = vld [vmem:[#allocation3 + $0x80] ss:$12 sps:$4 sm:$0xff]  }
 0xedf   :  { %5462 = vmatpush1.bf16.msra.mxu0 %v12193_v18  ;;  %v10652_v18 = vld [vmem:[#allocation3 + $0x98] ss:$12 sps:$4 sm:$0xff]  }
 0xee0   :  { %5711 = vmatprep.subr.bf16.mxu0 %v12222_v10  ;;  %v10653_v10 = vld [vmem:[#allocation3 + $0xb0] ss:$12 sps:$4 sm:$0xff]  }
 0xee2   :  { %5480 = vmatmul.mubr.bf16.vlgmr.msra.gmra.mrb[76].mxu0 %v12299_v58 }
 0xee3   :  { %5712 = vmatpush1.bf16.msra.mxu0 %v12220_v40  ;;  %5743 = vmatprep.mubr.bf16.mxu0 %v13080_v60 }
 0xee4   :  { %5713 = vmatprep.subr.bf16.mxu0 %v12224_v52  ;;  %v13116_v52 = vld [vmem:[#allocation17_spill] sm:$0xff] }
 0xee7   :  { %5714 = vmatpush1.bf16.msra.mxu0 %v12228_v51 }
 0xee8   :  { %5715 = vmatprep.subr.bf16.mxu0 %v12232_v0 }
 0xeeb   :  { %5716 = vmatpush1.bf16.msra.mxu0 %v12235_v50  ;;  %v13117_v50 = vld [vmem:[#allocation19_spill] sm:$0xff] }
 0xeec   :  { %5717 = vmatprep.subr.bf16.mxu0 %v12240_v20 }
 0xeef   :  { %5718 = vmatpush1.bf16.msra.mxu0 %v12243_v13 }
 0xef0   :  { %5719 = vmatprep.subr.bf16.mxu0 %v12247_v26 }
 0xef3   :  { %5720 = vmatpush1.bf16.msra.mxu0 %v12250_v5  ;;  %v10654_v5 = vld [vmem:[#allocation5 + $0x8] ss:$12 sps:$4 sm:$0xff]  }
 0xef4   :  { %5721 = vmatprep.subr.bf16.mxu0 %v12253_v23  ;;  %v10655_v23 = vld [vmem:[#allocation5 + $0x20] ss:$12 sps:$4 sm:$0xff]  }
 0xef7   :  { %5722 = vmatpush1.bf16.msra.mxu0 %v12256_v28  ;;  %v10656_v28 = vld [vmem:[#allocation5 + $0x38] ss:$12 sps:$4 sm:$0xff]  }
 0xef8   :  { %5723 = vmatprep.subr.bf16.mxu0 %v12260_v29  ;;  %v10657_v29 = vld [vmem:[#allocation5 + $0x50] ss:$12 sps:$4 sm:$0xff]  }
 0xefb   :  { %5724 = vmatpush1.bf16.msra.mxu0 %v12263_v6  ;;  %v10658_v6 = vld [vmem:[#allocation5 + $0x68] ss:$12 sps:$4 sm:$0xff]  }
 0xefc   :  { %5725 = vmatprep.subr.bf16.mxu0 %v12267_v61  ;;  %v10659_v61 = vld [vmem:[#allocation5 + $0x80] ss:$12 sps:$4 sm:$0xff]  }
 0xeff   :  { %5726 = vmatpush1.bf16.msra.mxu0 %v12270_v43  ;;  %v10660_v43 = vld [vmem:[#allocation5 + $0x98] ss:$12 sps:$4 sm:$0xff]  }
 0xf00   :  { %5952 = vmatprep.subr.bf16.mxu0 %v12274_v54  ;;  %v10661_v54 = vld [vmem:[#allocation5 + $0xb0] ss:$12 sps:$4 sm:$0xff]  }
 0xf95   :  { %v5171_v24 = vpop.f32.mrb[72].mxu0 }
 0xf96   :  { %v5172_v59 = vadd.f32 %v12459_v55, %v5171_v24  ;;  %v9845_v47 = vpop.f32.mrb[73].mxu0 }
 0xf97   :  { %v5174_v12 = vpop.f32.mrb[74].mxu0 }
 0xf98   :  { %v5177_v27 = vmax.f32 %v5172_v59, 0.0  ;;  %v9846_v63 = vpop.f32.mrb[75].mxu0  ;;  %v13118_v12 = vld [vmem:[#allocation20_spill] sm:$0xff] }
 0xf9a   :  { %v5178_v8 = vpack.c.bf16 %v5177_v27, %v5177_v27 }
 0xf9c   :  { %9864 = vmatmul.mubr.bf16.vlgmr.msra.gmra.mrb[84].mxu1 %v5178_v8 }
 0xf9d   :  { %9868 = vmatpush3.bf16.msra.mxu1 %v10646_v1  ;;  %9883 = vmatprep.mubr.msk.bf16.mxu1 %vm11147_vm2, %v13078_v44 }
 0xf9e   :  { %9869 = vmatprep.subr.bf16.mxu1 %v13078_v44 }
 0xfa1   :  { %9870 = vmatpush3.bf16.msra.mxu1 %v10647_v45 }
 0xfa2   :  { %9871 = vmatprep.subr.bf16.mxu1 %v13078_v44 }
 0xfa5   :  { %9872 = vmatpush3.bf16.msra.mxu1 %v10648_v31 }
 0xfa6   :  { %9873 = vmatprep.subr.bf16.mxu1 %v13078_v44 }
 0xfa9   :  { %9874 = vmatpush3.bf16.msra.mxu1 %v10649_v35 }
 0xfaa   :  { %9875 = vmatprep.subr.bf16.mxu1 %v13078_v44 }
 0xfad   :  { %9876 = vmatpush3.bf16.msra.mxu1 %v10650_v4  ;;  %v10662_v4 = vld [vmem:[#allocation7 + $0x8] ss:$12 sps:$4 sm:$0xff]  }
 0xfae   :  { %9877 = vmatprep.subr.bf16.mxu1 %v13078_v44 }
 0xfb1   :  { %9878 = vmatpush3.bf16.msra.mxu1 %v10651_v11  ;;  %v10663_v11 = vld [vmem:[#allocation7 + $0x20] ss:$12 sps:$4 sm:$0xff]  }
 0xfb2   :  { %9879 = vmatprep.subr.bf16.mxu1 %v13078_v44 }
 0xfb5   :  { %v5481_v40 = vpop.f32.mrb[76].mxu0  ;;  %9880 = vmatpush3.bf16.msra.mxu1 %v10652_v18  ;;  %v10666_v18 = vld [vmem:[#allocation7 + $0x68] ss:$12 sps:$4 sm:$0xff]  }
 0xfb6   :  { %v5528_v51 = vadd.f32 %v5481_v40, %v13116_v52  ;;  %v5483_v0 = vpop.f32.mrb[77].mxu0  ;;  %9881 = vmatprep.subr.bf16.mxu1 %v13078_v44  ;;  %v13120_v40 = vld [vmem:[#allocation26_spill] sm:$0xff] }
 0xfb7   :  { %v5535_v20 = vadd.f32 %v5483_v0, %v13117_v50  ;;  %v5485_v13 = vpop.f32.mrb[78].mxu0  ;;  %v13124_v52 = vld [vmem:[#allocation30_spill] sm:$0xff]  ;;  %v10669_v0 = vld [vmem:[#allocation7 + $0xb0] ss:$12 sps:$4 sm:$0xff]  }
 0xfb8   :  { %v5486_v26 = vpop.f32.mrb[79].mxu0  ;;  %v8740_v36 = vmul.f32 -1.442695, %v5528_v51  ;;  %v13125_v51 = vld [vmem:[#allocation31_spill] sm:$0xff]  ;;  %v13126_v50 = vld [vmem:[#allocation32_spill] sm:$0xff]  ;;  %v10670_v13 = vld [vmem:[%s13027_s9] sm:$0xff]  }
 0xfb9   :  { %9882 = vmatpush3.bf16.msra.mxu1 %v10653_v10  ;;  %v8741_v3 = vmul.f32 -1.442695, %v5535_v20  ;;  %v13122_v10 = vld [vmem:[#allocation28_spill] sm:$0xff]  ;;  %v13127_v20 = vld [vmem:[#allocation33_spill] sm:$0xff]  ;;  %v10671_v26 = vld [vmem:[%s13027_s9 + $0x8] sm:$0xff]  }
 0xfba   :  { %9887 = vmatprep.subr.bf16.mxu1 %v13078_v44  ;;  %10938 = vpow2.f32 %v8740_v36 }
 0xfbb   :  { %10940 = vpow2.f32 %v8741_v3 }
 0xfbc   :  { %9884 = vmatmul.mubr.bf16.vlgmr.msra.gmra.mrb[88].mxu1 %v12299_v58 }
 0xfbd   :  { %9903 = vmatprep.mubr.msk.bf16.mxu1 %vm11147_vm2, %v13078_v44  ;;  %9888 = vmatpush3.bf16.msra.mxu1 %v10654_v5  ;;  %v10673_v5 = vld [vmem:[%s13027_s9 + $0x18] sm:$0xff]  }
 0xfbe   :  { %9889 = vmatprep.subr.bf16.mxu1 %v13078_v44 }
 0xfc1   :  { %9890 = vmatpush3.bf16.msra.mxu1 %v10655_v23  ;;  %v10674_v23 = vld [vmem:[%s13027_s9 + $0x20] sm:$0xff]  }
 0xfc2   :  { %9891 = vmatprep.subr.bf16.mxu1 %v13078_v44 }
 0xfc4   :  { %v10939_v37 = vpop.eup %10938 }
 0xfc5   :  { %9892 = vmatpush3.bf16.msra.mxu1 %v10656_v28  ;;  %v5532_v25 = vadd.f32 1.0, %v10939_v37  ;;  %v10941_v62 = vpop.eup %10940  ;;  %v10675_v28 = vld [vmem:[%s13027_s9 + $0x28] sm:$0xff]  }
 0xfc6   :  { %9893 = vmatprep.subr.bf16.mxu1 %v13078_v44  ;;  %v5539_v7 = vadd.f32 1.0, %v10941_v62  ;;  %v10707_v37 = vld [vmem:[#allocation8 + $0x28] sm:$0xff]  }
 0xfc7   :  { %10942 = vrcp.f32 %v5532_v25  ;;  %v10708_v25 = vld [vmem:[#allocation8 + $0x30] sm:$0xff]  }
 0xfc8   :  { %10944 = vrcp.f32 %v5539_v7 }
 0xfc9   :  { %9894 = vmatpush3.bf16.msra.mxu1 %v10657_v29  ;;  %v10676_v29 = vld [vmem:[%s13027_s9 + $0x30] sm:$0xff]  }
 0xfca   :  { %9895 = vmatprep.subr.bf16.mxu1 %v13078_v44 }
 0xfcd   :  { %9896 = vmatpush3.bf16.msra.mxu1 %v10658_v6  ;;  %v10677_v6 = vld [vmem:[%s13027_s9 + $0x38] sm:$0xff]  }
 0xfce   :  { %9897 = vmatprep.subr.bf16.mxu1 %v13078_v44 }
 0xfd1   :  { %9898 = vmatpush3.bf16.msra.mxu1 %v10659_v61  ;;  %v10943_v53 = vpop.eup %10942  ;;  %v12569_v61 = vld [vmem:[#allocation3 + $0x4] ss:$12 sps:$4 sm:$0xff]  }
 0xfd2   :  { %9899 = vmatprep.subr.bf16.mxu1 %v13078_v44  ;;  %v10945_v63 = vpop.eup %10944 }
 0xfd3   :  { %v5546_v1 = vsub.f32 1.0, %v10945_v63  ;;  %v5548_v31 = vmul.f32 %v10945_v63, %v12293_v21  ;;  %v10664_v21 = vld [vmem:[#allocation7 + $0x38] ss:$12 sps:$4 sm:$0xff]  }
 0xfd5   :  { %9900 = vmatpush3.bf16.msra.mxu1 %v10660_v43  ;;  %v10702_v43 = vld [vmem:[#allocation8] sm:$0xff]  }
 0xfd6   :  { %9901 = vmatprep.subr.bf16.mxu1 %v13078_v44 }
 0xfd9   :  { %9902 = vmatpush3.bf16.msra.mxu1 %v10661_v54  ;;  %v10703_v54 = vld [vmem:[#allocation8 + $0x8] sm:$0xff]  }
 0xfda   :  { %9907 = vmatprep.subr.bf16.mxu1 %v13078_v44 }
0x106f   :  { %v5277_v58 = vpop.f32.mrb[84].mxu1 }
0x1070   :  { %v5278_v30 = vadd.f32 %v12488_v33, %v5277_v58  ;;  %v9865_v57 = vpop.f32.mrb[85].mxu1  ;;  %v10704_v58 = vld [vmem:[#allocation8 + $0x10] sm:$0xff]  }
0x1071   :  { %v5280_v39 = vpop.f32.mrb[86].mxu1 }
0x1072   :  { %5283 = vst [vmem:[%s13031_s13 + $0x20] sm:$0xff] %v5278_v30  ;;  %v9866_v22 = vpop.f32.mrb[87].mxu1  ;;  %v10705_v30 = vld [vmem:[#allocation8 + $0x18] sm:$0xff]   ;;  %v10706_v39 = vld [vmem:[#allocation8 + $0x20] sm:$0xff]  }
0x108f   :  { %v5522_v2 = vpop.f32.mrb[88].mxu1 }
0x1090   :  { %v5542_v38 = vadd.f32 %v12288_v48, %v5522_v2  ;;  %v9885_v56 = vpop.f32.mrb[89].mxu1 }
0x1091   :  { %v5525_v24 = vpop.f32.mrb[90].mxu1 }
0x1092   :  { %v5543_v59 = vmul.f32 %v10943_v53, %v5542_v38  ;;  %v9886_v47 = vpop.f32.mrb[91].mxu1 }
0x1094   :  { %v5544_v27 = vadd.f32 %v5543_v59, %v13118_v12 }
0x1096   :  { %10946 = vtanh.f32 %v5544_v27 }
0x10a0   :  { %v10947_v8 = vpop.eup %10946 }
0x10a1   :  { %v5547_v45 = vmul.f32 %v10947_v8, %v5546_v1 }
0x10a3   :  { %v12497_v35 = vadd.f32 %v5548_v31, %v5547_v45 }
0x10a5   :  { %v12501_v48 = vpack.c.bf16 %v12497_v35, %v12497_v35 }
0x10a7   :  { %5744 = vmatmul.mubr.bf16.vlgmr.msra.gmra.mrb[80].mxu0 %v12501_v48  ;;  %9904 = vmatmul.mubr.bf16.vlgmr.msra.gmra.mrb[92].mxu1 %v12501_v48 }
0x10a8   :  { %5953 = vmatpush1.bf16.msra.mxu0 %v12295_v41  ;;  %9908 = vmatpush3.bf16.msra.mxu1 %v10662_v4  ;;  %v10665_v41 = vld [vmem:[#allocation7 + $0x50] ss:$12 sps:$4 sm:$0xff]  }
0x10a9   :  { %5954 = vmatprep.subr.bf16.mxu0 %v12301_v9  ;;  %9909 = vmatprep.subr.bf16.mxu1 %v13078_v44  ;;  %v13119_v9 = vld [vmem:[#allocation25_spill] sm:$0xff] }
0x10aa   :  { %5984 = vmatprep.mubr.bf16.mxu0 %v13080_v60  ;;  %9923 = vmatprep.mubr.msk.bf16.mxu1 %vm11147_vm2, %v13078_v44 }
0x10ac   :  { %5955 = vmatpush1.bf16.msra.mxu0 %v12306_v15  ;;  %9910 = vmatpush3.bf16.msra.mxu1 %v10663_v11  ;;  %v13121_v15 = vld [vmem:[#allocation27_spill] sm:$0xff] }
0x10ad   :  { %5956 = vmatprep.subr.bf16.mxu0 %v12310_v19  ;;  %9911 = vmatprep.subr.bf16.mxu1 %v13078_v44  ;;  %v10667_v19 = vld [vmem:[#allocation7 + $0x80] ss:$12 sps:$4 sm:$0xff]  }
0x10b0   :  { %5957 = vmatpush1.bf16.msra.mxu0 %v12316_v16  ;;  %9912 = vmatpush3.bf16.msra.mxu1 %v10664_v21  ;;  %v13123_v16 = vld [vmem:[#allocation29_spill] sm:$0xff] }
0x10b1   :  { %5958 = vmatprep.subr.bf16.mxu0 %v12320_v49  ;;  %9913 = vmatprep.subr.bf16.mxu1 %v13078_v44  ;;  %v10668_v49 = vld [vmem:[#allocation7 + $0x98] ss:$12 sps:$4 sm:$0xff]  }
0x10b4   :  { %5959 = vmatpush1.bf16.msra.mxu0 %v13119_v9  ;;  %9914 = vmatpush3.bf16.msra.mxu1 %v10665_v41 }
0x10b5   :  { %5960 = vmatprep.subr.bf16.mxu0 %v13120_v40  ;;  %9915 = vmatprep.subr.bf16.mxu1 %v13078_v44 }
0x10b8   :  { %5961 = vmatpush1.bf16.msra.mxu0 %v13121_v15  ;;  %9916 = vmatpush3.bf16.msra.mxu1 %v10666_v18 }
0x10b9   :  { %5962 = vmatprep.subr.bf16.mxu0 %v13122_v10  ;;  %9917 = vmatprep.subr.bf16.mxu1 %v13078_v44 }
0x10bc   :  { %5963 = vmatpush1.bf16.msra.mxu0 %v13123_v16  ;;  %9918 = vmatpush3.bf16.msra.mxu1 %v10667_v19 }
0x10bd   :  { %5964 = vmatprep.subr.bf16.mxu0 %v13124_v52  ;;  %9919 = vmatprep.subr.bf16.mxu1 %v13078_v44  ;;  %v12592_v52 = vld [vmem:[#allocation3 + $0x1c] ss:$12 sps:$4 sm:$0xff]  }
0x10c0   :  { %5965 = vmatpush1.bf16.msra.mxu0 %v13125_v51  ;;  %9920 = vmatpush3.bf16.msra.mxu1 %v10668_v49  ;;  %v12586_v49 = vld [vmem:[#allocation3] ss:$12 sps:$4 sm:$0xff]   ;;  %v12596_v51 = vld [vmem:[#allocation3 + $0x18] ss:$12 sps:$4 sm:$0xff]  }
0x10c1   :  { %5966 = vmatprep.subr.bf16.mxu0 %v13126_v50  ;;  %9921 = vmatprep.subr.bf16.mxu1 %v13078_v44  ;;  %v12606_v50 = vld [vmem:[#allocation3 + $0x4c] ss:$12 sps:$4 sm:$0xff]  }
0x10c4   :  { %5967 = vmatpush1.bf16.msra.mxu0 %v13127_v20  ;;  %9922 = vmatpush3.bf16.msra.mxu1 %v10669_v0  ;;  %v12603_v0 = vld [vmem:[#allocation3 + $0x30] ss:$12 sps:$4 sm:$0xff]   ;;  %v12609_v20 = vld [vmem:[#allocation3 + $0x48] ss:$12 sps:$4 sm:$0xff]  }
0x10c5   :  { %9927 = vmatprep.subr.bf16.mxu0 %v13078_v44  ;;  %9947 = vmatprep.subr.bf16.mxu1 %v13078_v44 }
0x10c7   :  { %5985 = vmatmul.mubr.bf16.vlgmr.msra.gmra.mrb[80].mxu0 %v12417_v46  ;;  %9924 = vmatmul.mubr.bf16.vlgmr.msra.gmra.mrb[96].mxu1 %v12417_v46  ;;  %v10672_v46 = vld [vmem:[%s13027_s9 + $0x10] sm:$0xff]  }
0x10c8   :  { %9943 = vmatprep.mubr.msk.bf16.mxu0 %vm11147_vm2, %v13078_v44  ;;  %9963 = vmatprep.mubr.msk.bf16.mxu1 %vm11147_vm2, %v13078_v44 }
0x10c9   :  { %9928 = vmatpush3.bf16.msra.mxu0 %v10670_v13  ;;  %9948 = vmatpush3.bf16.msra.mxu1 %v10702_v43  ;;  %v12612_v13 = vld [vmem:[#allocation3 + $0x64] ss:$12 sps:$4 sm:$0xff]   ;;  %v10709_v43 = vld [vmem:[#allocation8 + $0x38] sm:$0xff]  }
0x10ca   :  { %9929 = vmatprep.subr.bf16.mxu0 %v13078_v44  ;;  %9949 = vmatprep.subr.bf16.mxu1 %v13078_v44 }
0x10cd   :  { %9930 = vmatpush3.bf16.msra.mxu0 %v10671_v26  ;;  %9950 = vmatpush3.bf16.msra.mxu1 %v10703_v54  ;;  %v12615_v26 = vld [vmem:[#allocation3 + $0x60] ss:$12 sps:$4 sm:$0xff]  }
0x10ce   :  { %9931 = vmatprep.subr.bf16.mxu0 %v13078_v44  ;;  %9951 = vmatprep.subr.bf16.mxu1 %v13078_v44 }
0x10d1   :  { %9932 = vmatpush3.bf16.msra.mxu0 %v10672_v46  ;;  %9952 = vmatpush3.bf16.msra.mxu1 %v10704_v58  ;;  %v12618_v46 = vld [vmem:[#allocation3 + $0x7c] ss:$12 sps:$4 sm:$0xff]  }
0x10d2   :  { %9933 = vmatprep.subr.bf16.mxu0 %v13078_v44  ;;  %9953 = vmatprep.subr.bf16.mxu1 %v13078_v44 }
0x10d5   :  { %9934 = vmatpush3.bf16.msra.mxu0 %v10673_v5  ;;  %9954 = vmatpush3.bf16.msra.mxu1 %v10705_v30  ;;  %v12621_v5 = vld [vmem:[#allocation3 + $0x78] ss:$12 sps:$4 sm:$0xff]  }
0x10d6   :  { %9935 = vmatprep.subr.bf16.mxu0 %v13078_v44  ;;  %9955 = vmatprep.subr.bf16.mxu1 %v13078_v44 }
0x10d9   :  { %9936 = vmatpush3.bf16.msra.mxu0 %v10674_v23  ;;  %9956 = vmatpush3.bf16.msra.mxu1 %v10706_v39  ;;  %v12624_v23 = vld [vmem:[#allocation3 + $0x94] ss:$12 sps:$4 sm:$0xff]  }
0x10da   :  { %9937 = vmatprep.subr.bf16.mxu0 %v13078_v44  ;;  %9957 = vmatprep.subr.bf16.mxu1 %v13078_v44 }
0x10dd   :  { %9938 = vmatpush3.bf16.msra.mxu0 %v10675_v28  ;;  %9958 = vmatpush3.bf16.msra.mxu1 %v10707_v37  ;;  %v12627_v28 = vld [vmem:[#allocation3 + $0x90] ss:$12 sps:$4 sm:$0xff]   ;;  %v10711_v37 = vld [vmem:[#allocation3 + $0x20] ss:$12 sps:$4 sm:$0xff]  }
0x10de   :  { %9939 = vmatprep.subr.bf16.mxu0 %v13078_v44  ;;  %9959 = vmatprep.subr.bf16.mxu1 %v13078_v44 }
0x10e1   :  { %9940 = vmatpush3.bf16.msra.mxu0 %v10676_v29  ;;  %9960 = vmatpush3.bf16.msra.mxu1 %v10708_v25  ;;  %v12630_v29 = vld [vmem:[#allocation3 + $0xac] ss:$12 sps:$4 sm:$0xff]  }
0x10e2   :  { %9941 = vmatprep.subr.bf16.mxu0 %v13078_v44  ;;  %9961 = vmatprep.subr.bf16.mxu1 %v13078_v44  ;;  %v10712_v25 = vld [vmem:[#allocation3 + $0x38] ss:$12 sps:$4 sm:$0xff]  }
0x10e5   :  { %9942 = vmatpush3.bf16.msra.mxu0 %v10677_v6  ;;  %v12633_v6 = vld [vmem:[#allocation3 + $0xa8] ss:$12 sps:$4 sm:$0xff]   ;;  %9962 = vmatpush3.bf16.msra.mxu1 %v10709_v43 }
0x10e6   :  { %6430 = vmatprep.subr.bf16.mxu0 %v12569_v61  ;;  %9967 = vmatprep.subr.bf16.mxu1 %v13078_v44  ;;  %v12693_v43 = vld [vmem:[#allocation5 + $0x7c] ss:$12 sps:$4 sm:$0xff]  }
0x117a   :  { %v5786_v57 = vpop.f32.mrb[92].mxu1 }
0x117b   :  { %v9905_v36 = vpop.f32.mrb[93].mxu1  ;;  %v5787_v21 = vadd.f32 %v5786_v57, %v11561_v32 }
0x117c   :  { %v5789_v22 = vpop.f32.mrb[94].mxu1 }
0x117d   :  { %v9906_v3 = vpop.f32.mrb[95].mxu1  ;;  %v10710_v22 = vld [vmem:[#allocation3 + $0x8] ss:$12 sps:$4 sm:$0xff]  }
0x119a   :  { %v5986_v62 = vpop.f32.mrb[80].mxu0  ;;  %v6027_v7 = vpop.f32.mrb[96].mxu1 }
0x119b   :  { %v10177_v2 = vadd.f32 %v5986_v62, %v11546_v14  ;;  %v5988_v38 = vpop.f32.mrb[81].mxu0  ;;  %v9925_v56 = vpop.f32.mrb[97].mxu1  ;;  %v6047_v4 = vadd.f32 %v12408_v17, %v6027_v7  ;;  %v10714_v62 = vld [vmem:[#allocation3 + $0x68] ss:$12 sps:$4 sm:$0xff]   ;;  %v10715_v7 = vld [vmem:[#allocation3 + $0x80] ss:$12 sps:$4 sm:$0xff]  }
0x119c   :  { %v5990_v53 = vpop.f32.mrb[82].mxu0  ;;  %v6030_v24 = vpop.f32.mrb[98].mxu1  ;;  %v10178_v27 = vadd.f32 %v5988_v38, %v11550_v34  ;;  %v10717_v56 = vld [vmem:[#allocation3 + $0xb0] ss:$12 sps:$4 sm:$0xff]  }
0x119d   :  { %v8790_v59 = vmul.f32 -1.442695, %v10177_v2  ;;  %v5991_v47 = vpop.f32.mrb[83].mxu0  ;;  %v9926_v12 = vpop.f32.mrb[99].mxu1  ;;  %v10716_v2 = vld [vmem:[#allocation3 + $0x98] ss:$12 sps:$4 sm:$0xff]  }
0x119e   :  { %v8791_v63 = vmul.f32 -1.442695, %v10178_v27  ;;  %v13128_v53 = vld [vmem:[#allocation21_spill] sm:$0xff]  ;;  %v13129_v47 = vld [vmem:[#allocation22_spill] sm:$0xff] }
0x119f   :  { %10948 = vpow2.f32 %v8790_v59 }
0x11a0   :  { %10950 = vpow2.f32 %v8791_v63 }
0x11a9   :  { %v10949_v1 = vpop.eup %10948 }
0x11aa   :  { %v6037_v8 = vadd.f32 1.0, %v10949_v1  ;;  %v10951_v45 = vpop.eup %10950  ;;  %v12660_v1 = vld [vmem:[#allocation5] ss:$12 sps:$4 sm:$0xff]  }
0x11ab   :  { %v6044_v31 = vadd.f32 1.0, %v10951_v45  ;;  %v10721_v45 = vld [vmem:[#allocation5 + $0x8] ss:$12 sps:$4 sm:$0xff]  }
0x11ac   :  { %10952 = vrcp.f32 %v6037_v8  ;;  %v12662_v8 = vld [vmem:[#allocation5 + $0x4] ss:$12 sps:$4 sm:$0xff]  }
0x11ad   :  { %10954 = vrcp.f32 %v6044_v31  ;;  %v12664_v31 = vld [vmem:[#allocation5 + $0x1c] ss:$12 sps:$4 sm:$0xff]  }
0x11b6   :  { %v10953_v11 = vpop.eup %10952 }
0x11b7   :  { %v6048_v41 = vmul.f32 %v10953_v11, %v6047_v4  ;;  %v10955_v18 = vpop.eup %10954  ;;  %v10725_v4 = vld [vmem:[#allocation5 + $0x20] ss:$12 sps:$4 sm:$0xff]   ;;  %v12668_v11 = vld [vmem:[#allocation5 + $0x18] ss:$12 sps:$4 sm:$0xff]  }
0x11b8   :  { %v6051_v40 = vsub.f32 1.0, %v10955_v18  ;;  %v6053_v10 = vmul.f32 %v10955_v18, %v12413_v42  ;;  %v12600_v42 = vld [vmem:[#allocation3 + $0x34] ss:$12 sps:$4 sm:$0xff]  }
0x11b9   :  { %v6049_v9 = vadd.f32 %v6048_v41, %v5787_v21  ;;  %v12675_v21 = vld [vmem:[#allocation5 + $0x30] ss:$12 sps:$4 sm:$0xff]   ;;  %v10729_v41 = vld [vmem:[#allocation5 + $0x38] ss:$12 sps:$4 sm:$0xff]   ;;  %v12683_v18 = vld [vmem:[#allocation5 + $0x48] ss:$12 sps:$4 sm:$0xff]  }
0x11bb   :  { %10956 = vtanh.f32 %v6049_v9  ;;  %v12680_v9 = vld [vmem:[#allocation5 + $0x4c] ss:$12 sps:$4 sm:$0xff]  }
0x11c5   :  { %v10957_v15 = vpop.eup %10956 }
0x11c6   :  { %v6052_v19 = vmul.f32 %v10957_v15, %v6051_v40  ;;  %v10733_v40 = vld [vmem:[#allocation5 + $0x50] ss:$12 sps:$4 sm:$0xff]  }
0x11c7   :  { %v12687_v15 = vld [vmem:[#allocation5 + $0x64] ss:$12 sps:$4 sm:$0xff]  }
0x11c8   :  { %v12584_v16 = vadd.f32 %v6053_v10, %v6052_v19  ;;  %v12690_v19 = vld [vmem:[#allocation5 + $0x60] ss:$12 sps:$4 sm:$0xff]   ;;  %v10737_v10 = vld [vmem:[#allocation5 + $0x68] ss:$12 sps:$4 sm:$0xff]  }
0x11ca   :  { %v12590_v17 = vpack.c.bf16 %v12584_v16, %v12584_v16 }
0x11cc   :  { %9944 = vmatmul.mubr.bf16.vlgmr.msra.gmra.mrb[84].mxu0 %v12590_v17 }
0x11cd   :  { %6431 = vmatpush1.bf16.msra.mxu0 %v12586_v49  ;;  %6462 = vmatprep.mubr.bf16.mxu0 %v13080_v60 }
0x11ce   :  { %6432 = vmatprep.subr.bf16.mxu0 %v12592_v52 }
0x11d1   :  { %6433 = vmatpush1.bf16.msra.mxu0 %v12596_v51 }
0x11d2   :  { %6434 = vmatprep.subr.bf16.mxu0 %v12600_v42 }
0x11d5   :  { %6435 = vmatpush1.bf16.msra.mxu0 %v12603_v0 }
0x11d6   :  { %6436 = vmatprep.subr.bf16.mxu0 %v12606_v50 }
0x11d9   :  { %6437 = vmatpush1.bf16.msra.mxu0 %v12609_v20 }
0x11da   :  { %6438 = vmatprep.subr.bf16.mxu0 %v12612_v13 }
0x11dd   :  { %6439 = vmatpush1.bf16.msra.mxu0 %v12615_v26 }
0x11de   :  { %6440 = vmatprep.subr.bf16.mxu0 %v12618_v46 }
0x11e1   :  { %6441 = vmatpush1.bf16.msra.mxu0 %v12621_v5 }
0x11e2   :  { %6442 = vmatprep.subr.bf16.mxu0 %v12624_v23 }
0x11e5   :  { %6443 = vmatpush1.bf16.msra.mxu0 %v12627_v28 }
0x11e6   :  { %6444 = vmatprep.subr.bf16.mxu0 %v12630_v29 }
0x11e9   :  { %6445 = vmatpush1.bf16.msra.mxu0 %v12633_v6 }
0x11ea   :  { %6694 = vmatprep.subr.bf16.mxu0 %v12662_v8 }
0x11ec   :  { %6463 = vmatmul.mubr.bf16.vlgmr.msra.gmra.mrb[88].mxu0 %v12501_v48 }
0x11ed   :  { %6726 = vmatprep.mubr.bf16.mxu0 %v13080_v60  ;;  %6695 = vmatpush1.bf16.msra.mxu0 %v12660_v1 }
0x11ee   :  { %6696 = vmatprep.subr.bf16.mxu0 %v12664_v31 }
0x11f1   :  { %6697 = vmatpush1.bf16.msra.mxu0 %v12668_v11 }
0x129f   :  { %v6154_v54 = vpop.f32.mrb[84].mxu0 }
0x12a0   :  { %v6155_v58 = vadd.f32 %v12459_v55, %v6154_v54  ;;  %v9945_v30 = vpop.f32.mrb[85].mxu0  ;;  %v10713_v55 = vld [vmem:[#allocation3 + $0x50] ss:$12 sps:$4 sm:$0xff]   ;;  %v12696_v54 = vld [vmem:[#allocation5 + $0x78] ss:$12 sps:$4 sm:$0xff]  }
0x12a1   :  { %v6157_v57 = vpop.f32.mrb[86].mxu0  ;;  %v12700_v30 = vld [vmem:[#allocation5 + $0x94] ss:$12 sps:$4 sm:$0xff]  }
0x12a2   :  { %v6160_v39 = vmax.f32 %v6155_v58, 0.0  ;;  %v9946_v36 = vpop.f32.mrb[87].mxu0  ;;  %v10741_v58 = vld [vmem:[#allocation5 + $0x80] ss:$12 sps:$4 sm:$0xff]   ;;  %v12703_v57 = vld [vmem:[#allocation5 + $0x90] ss:$12 sps:$4 sm:$0xff]  }
0x12a3   :  { %v12707_v36 = vld [vmem:[#allocation5 + $0xac] ss:$12 sps:$4 sm:$0xff]  }
0x12a4   :  { %v6161_v3 = vpack.c.bf16 %v6160_v39, %v6160_v39  ;;  %v10745_v39 = vld [vmem:[#allocation5 + $0x98] ss:$12 sps:$4 sm:$0xff]  }
0x12a6   :  { %9964 = vmatmul.mubr.bf16.vlgmr.msra.gmra.mrb[100].mxu1 %v6161_v3  ;;  %v10749_v3 = vld [vmem:[#allocation5 + $0xb0] ss:$12 sps:$4 sm:$0xff]  }
0x12a7   :  { %9968 = vmatpush3.bf16.msra.mxu1 %v10710_v22  ;;  %9983 = vmatprep.mubr.msk.bf16.mxu1 %vm11147_vm2, %v13078_v44  ;;  %v12710_v22 = vld [vmem:[#allocation5 + $0xa8] ss:$12 sps:$4 sm:$0xff]  }
0x12a8   :  { %9969 = vmatprep.subr.bf16.mxu1 %v13078_v44 }
0x12ab   :  { %9970 = vmatpush3.bf16.msra.mxu1 %v10711_v37  ;;  %v12714_v37 = vld [vmem:[#allocation7 + $0x4] ss:$12 sps:$4 sm:$0xff]  }
0x12ac   :  { %9971 = vmatprep.subr.bf16.mxu1 %v13078_v44 }
0x12af   :  { %9972 = vmatpush3.bf16.msra.mxu1 %v10712_v25 }
0x12b0   :  { %9973 = vmatprep.subr.bf16.mxu1 %v13078_v44 }
0x12b3   :  { %9974 = vmatpush3.bf16.msra.mxu1 %v10713_v55 }
0x12b4   :  { %9975 = vmatprep.subr.bf16.mxu1 %v13078_v44 }
0x12b7   :  { %9976 = vmatpush3.bf16.msra.mxu1 %v10714_v62 }
0x12b8   :  { %9977 = vmatprep.subr.bf16.mxu1 %v13078_v44 }
0x12bb   :  { %9978 = vmatpush3.bf16.msra.mxu1 %v10715_v7 }
0x12bc   :  { %9979 = vmatprep.subr.bf16.mxu1 %v13078_v44 }
0x12bf   :  { %v6464_v38 = vpop.f32.mrb[88].mxu0  ;;  %9980 = vmatpush3.bf16.msra.mxu1 %v10716_v2 }
0x12c0   :  { %v12650_v24 = vadd.f32 %v6464_v38, %v13128_v53  ;;  %v6466_v59 = vpop.f32.mrb[89].mxu0  ;;  %9981 = vmatprep.subr.bf16.mxu1 %v13078_v44 }
0x12c1   :  { %v12654_v12 = vadd.f32 %v6466_v59, %v13129_v47  ;;  %v6468_v27 = vpop.f32.mrb[90].mxu0 }
0x12c2   :  { %v6469_v63 = vpop.f32.mrb[91].mxu0  ;;  %v8832_v2 = vmul.f32 -1.442695, %v12650_v24 }
0x12c3   :  { %9982 = vmatpush3.bf16.msra.mxu1 %v10717_v56  ;;  %v8833_v56 = vmul.f32 -1.442695, %v12654_v12 }
0x12c4   :  { %9987 = vmatprep.subr.bf16.mxu1 %v13078_v44  ;;  %10958 = vpow2.f32 %v8832_v2  ;;  %v12735_v2 = vld [vmem:[#allocation7] ss:$12 sps:$4 sm:$0xff]  }
0x12c5   :  { %10960 = vpow2.f32 %v8833_v56 }
0x12c6   :  { %9984 = vmatmul.mubr.bf16.vlgmr.msra.gmra.mrb[104].mxu1 %v12501_v48  ;;  %v12672_v48 = vld [vmem:[#allocation5 + $0x34] ss:$12 sps:$4 sm:$0xff]  }
0x12c7   :  { %10003 = vmatprep.mubr.msk.bf16.mxu1 %vm11147_vm2, %v13078_v44  ;;  %9988 = vmatpush3.bf16.msra.mxu1 %v10721_v45 }
0x12c8   :  { %9989 = vmatprep.subr.bf16.mxu1 %v13078_v44  ;;  %6698 = vmatprep.subr.bf16.mxu0 %v12672_v48 }
0x12c9   :  { %6699 = vmatpush1.bf16.msra.mxu0 %v12675_v21 }
0x12ca   :  { %6700 = vmatprep.subr.bf16.mxu0 %v12680_v9 }
0x12cb   :  { %9990 = vmatpush3.bf16.msra.mxu1 %v10725_v4 }
0x12cc   :  { %9991 = vmatprep.subr.bf16.mxu1 %v13078_v44 }
0x12cd   :  { %6701 = vmatpush1.bf16.msra.mxu0 %v12683_v18 }
0x12ce   :  { %6702 = vmatprep.subr.bf16.mxu0 %v12687_v15  ;;  %v10959_v53 = vpop.eup %10958 }
0x12cf   :  { %9992 = vmatpush3.bf16.msra.mxu1 %v10729_v41  ;;  %v6515_v59 = vadd.f32 1.0, %v10959_v53  ;;  %v10961_v47 = vpop.eup %10960  ;;  %v12741_v53 = vld [vmem:[#allocation7 + $0x1c] ss:$12 sps:$4 sm:$0xff]  }
0x12d0   :  { %9993 = vmatprep.subr.bf16.mxu1 %v13078_v44  ;;  %v6522_v27 = vadd.f32 1.0, %v10961_v47  ;;  %v12750_v47 = vld [vmem:[#allocation7 + $0x34] ss:$12 sps:$4 sm:$0xff]  }
0x12d1   :  { %6703 = vmatpush1.bf16.msra.mxu0 %v12690_v19  ;;  %10962 = vrcp.f32 %v6515_v59  ;;  %v12746_v59 = vld [vmem:[#allocation7 + $0x18] ss:$12 sps:$4 sm:$0xff]  }
0x12d2   :  { %6704 = vmatprep.subr.bf16.mxu0 %v12693_v43  ;;  %10964 = vrcp.f32 %v6522_v27  ;;  %v12756_v27 = vld [vmem:[#allocation7 + $0x30] ss:$12 sps:$4 sm:$0xff]  }
0x12d3   :  { %9994 = vmatpush3.bf16.msra.mxu1 %v10733_v40 }
0x12d4   :  { %9995 = vmatprep.subr.bf16.mxu1 %v13078_v44 }
0x12d5   :  { %6705 = vmatpush1.bf16.msra.mxu0 %v12696_v54 }
0x12d6   :  { %6706 = vmatprep.subr.bf16.mxu0 %v12700_v30 }
0x12d7   :  { %9996 = vmatpush3.bf16.msra.mxu1 %v10737_v10  ;;  %v13130_v10 = vld [vmem:[#allocation14_spill] sm:$0xff] }
0x12d8   :  { %9997 = vmatprep.subr.bf16.mxu1 %v13078_v44 }
0x12d9   :  { %6707 = vmatpush1.bf16.msra.mxu0 %v12703_v57 }
0x12da   :  { %6708 = vmatprep.subr.bf16.mxu0 %v12707_v36 }
0x12db   :  { %9998 = vmatpush3.bf16.msra.mxu1 %v10741_v58  ;;  %v10963_v4 = vpop.eup %10962 }
0x12dc   :  { %9999 = vmatprep.subr.bf16.mxu1 %v13078_v44 }
0x12dd   :  { %6709 = vmatpush1.bf16.msra.mxu0 %v12710_v22 }
0x12de   :  { %6935 = vmatprep.subr.bf16.mxu0 %v12714_v37 }
0x12df   :  { %10000 = vmatpush3.bf16.msra.mxu1 %v10745_v39  ;;  %v10965_v39 = vpop.eup %10964 }
0x12e0   :  { %10001 = vmatprep.subr.bf16.mxu1 %v13078_v44 }
0x12e3   :  { %10002 = vmatpush3.bf16.msra.mxu1 %v10749_v3  ;;  %v6529_v3 = vsub.f32 1.0, %v10965_v39 }
0x12e4   :  { %10007 = vmatprep.subr.bf16.mxu1 %v13078_v44 }
0x1379   :  { %v6260_v25 = vpop.f32.mrb[100].mxu1 }
0x137a   :  { %v6261_v55 = vadd.f32 %v12488_v33, %v6260_v25  ;;  %v9965_v62 = vpop.f32.mrb[101].mxu1  ;;  %v12728_v33 = vld [vmem:[%s13022_s4] ss:$0 sm:$0xff] }
0x137b   :  { %v6263_v7 = vpop.f32.mrb[102].mxu1  ;;  %v6531_v62 = vmul.f32 %v10965_v39, %v12497_v35  ;;  %v10757_v35 = vld [vmem:[#allocation7 + $0x20] ss:$12 sps:$4 sm:$0xff]  }
0x137c   :  { %6266 = vst [vmem:[%s13031_s13 + $0x28] sm:$0xff] %v6261_v55  ;;  %v9966_v38 = vpop.f32.mrb[103].mxu1  ;;  %v10773_v39 = vld [vmem:[#allocation7 + $0x80] ss:$12 sps:$4 sm:$0xff]  }
0x137d   :  { %v10753_v38 = vld [vmem:[#allocation7 + $0x8] ss:$12 sps:$4 sm:$0xff]  }
0x1399   :  { %v6505_v63 = vpop.f32.mrb[104].mxu1 }
0x139a   :  { %v6525_v24 = vadd.f32 %v12728_v33, %v6505_v63  ;;  %v9985_v45 = vpop.f32.mrb[105].mxu1  ;;  %v10761_v63 = vld [vmem:[#allocation7 + $0x38] ss:$12 sps:$4 sm:$0xff]  }
0x139b   :  { %v6508_v41 = vpop.f32.mrb[106].mxu1  ;;  %v12763_v45 = vld [vmem:[#allocation7 + $0x48] ss:$12 sps:$4 sm:$0xff]  }
0x139c   :  { %v6526_v40 = vmul.f32 %v10963_v4, %v6525_v24  ;;  %v9986_v12 = vpop.f32.mrb[107].mxu1  ;;  %v12760_v24 = vld [vmem:[#allocation7 + $0x4c] ss:$12 sps:$4 sm:$0xff]   ;;  %13131 = vst [vmem:[#allocation34_spill] sm:$0xff] %v12763_v45  ;;  %v10765_v4 = vld [vmem:[#allocation7 + $0x50] ss:$12 sps:$4 sm:$0xff]  }
0x139d   :  { %v12767_v41 = vld [vmem:[#allocation7 + $0x64] ss:$12 sps:$4 sm:$0xff]   ;;  %v10769_v12 = vld [vmem:[#allocation7 + $0x68] ss:$12 sps:$4 sm:$0xff]  }
0x139e   :  { %v6527_v58 = vadd.f32 %v6526_v40, %v13130_v10  ;;  %13132 = vst [vmem:[#allocation35_spill] sm:$0xff] %v12767_v41  ;;  %v12770_v40 = vld [vmem:[#allocation7 + $0x60] ss:$12 sps:$4 sm:$0xff]   ;;  %v12774_v10 = vld [vmem:[#allocation7 + $0x7c] ss:$12 sps:$4 sm:$0xff]  }
0x139f   :  { %13133 = vst [vmem:[#allocation36_spill] sm:$0xff] %v12770_v40  ;;  %13134 = vst [vmem:[#allocation13_spill] sm:$0xff] %v12774_v10 }
0x13a0   :  { %10966 = vtanh.f32 %v6527_v58  ;;  %v12777_v58 = vld [vmem:[#allocation7 + $0x78] ss:$12 sps:$4 sm:$0xff]  }
0x13a1   :  { %13135 = vst [vmem:[#allocation15_spill] sm:$0xff] %v12777_v58 }
0x13aa   :  { %v10967_v25 = vpop.eup %10966 }
0x13ab   :  { %v6530_v55 = vmul.f32 %v10967_v25, %v6529_v3  ;;  %v12781_v3 = vld [vmem:[#allocation7 + $0x94] ss:$12 sps:$4 sm:$0xff]   ;;  %v12784_v25 = vld [vmem:[#allocation7 + $0x90] ss:$12 sps:$4 sm:$0xff]  }
0x13ac   :  { %13136 = vst [vmem:[#allocation16_spill] sm:$0xff] %v12781_v3  ;;  %13137 = vst [vmem:[#allocation17_spill] sm:$0xff] %v12784_v25 }
0x13ad   :  { %v12733_v7 = vadd.f32 %v6531_v62, %v6530_v55  ;;  %v10777_v55 = vld [vmem:[#allocation7 + $0x98] ss:$12 sps:$4 sm:$0xff]  }
0x13ae   :  { %v12788_v62 = vld [vmem:[#allocation7 + $0xac] ss:$12 sps:$4 sm:$0xff]  }
0x13af   :  { %v12739_v56 = vpack.c.bf16 %v12733_v7, %v12733_v7  ;;  %13138 = vst [vmem:[#allocation19_spill] sm:$0xff] %v12788_v62 }
0x13b1   :  { %6727 = vmatmul.mubr.bf16.vlgmr.msra.gmra.mrb[92].mxu0 %v12739_v56  ;;  %10004 = vmatmul.mubr.bf16.vlgmr.msra.gmra.mrb[108].mxu1 %v12739_v56 }
0x13b2   :  { %6936 = vmatpush1.bf16.msra.mxu0 %v12735_v2  ;;  %10008 = vmatpush3.bf16.msra.mxu1 %v10753_v38  ;;  %v12791_v38 = vld [vmem:[#allocation7 + $0xa8] ss:$12 sps:$4 sm:$0xff]  }
0x13b3   :  { %6937 = vmatprep.subr.bf16.mxu0 %v12741_v53  ;;  %10009 = vmatprep.subr.bf16.mxu1 %v13078_v44  ;;  %13139 = vst [vmem:[#allocation20_spill] sm:$0xff] %v12791_v38 }
0x13b4   :  { %6967 = vmatprep.mubr.bf16.mxu0 %v13080_v60  ;;  %10023 = vmatprep.mubr.msk.bf16.mxu1 %vm11147_vm2, %v13078_v44 }
0x13b6   :  { %6938 = vmatpush1.bf16.msra.mxu0 %v12746_v59  ;;  %10010 = vmatpush3.bf16.msra.mxu1 %v10757_v35  ;;  %v10781_v35 = vld [vmem:[#allocation7 + $0xb0] ss:$12 sps:$4 sm:$0xff]  }
0x13b7   :  { %6939 = vmatprep.subr.bf16.mxu0 %v12750_v47  ;;  %10011 = vmatprep.subr.bf16.mxu1 %v13078_v44 }
0x13ba   :  { %6940 = vmatpush1.bf16.msra.mxu0 %v12756_v27  ;;  %10012 = vmatpush3.bf16.msra.mxu1 %v10761_v63  ;;  %v10782_v63 = vld [vmem:[%s13027_s9] sm:$0xff]  }
0x13bb   :  { %6941 = vmatprep.subr.bf16.mxu0 %v12760_v24  ;;  %10013 = vmatprep.subr.bf16.mxu1 %v13078_v44 }
0x13be   :  { %6942 = vmatpush1.bf16.msra.mxu0 %v12763_v45  ;;  %10014 = vmatpush3.bf16.msra.mxu1 %v10765_v4  ;;  %v10783_v4 = vld [vmem:[%s13027_s9 + $0x8] sm:$0xff]  }
0x13bf   :  { %6943 = vmatprep.subr.bf16.mxu0 %v12767_v41  ;;  %10015 = vmatprep.subr.bf16.mxu1 %v13078_v44 }
0x13c2   :  { %6944 = vmatpush1.bf16.msra.mxu0 %v12770_v40  ;;  %10016 = vmatpush3.bf16.msra.mxu1 %v10769_v12  ;;  %v10785_v12 = vld [vmem:[%s13027_s9 + $0x18] sm:$0xff]  }
0x13c3   :  { %6945 = vmatprep.subr.bf16.mxu0 %v12774_v10  ;;  %10017 = vmatprep.subr.bf16.mxu1 %v13078_v44 }
0x13c6   :  { %6946 = vmatpush1.bf16.msra.mxu0 %v12777_v58  ;;  %10018 = vmatpush3.bf16.msra.mxu1 %v10773_v39  ;;  %v10786_v39 = vld [vmem:[%s13027_s9 + $0x20] sm:$0xff]  }
0x13c7   :  { %6947 = vmatprep.subr.bf16.mxu0 %v12781_v3  ;;  %10019 = vmatprep.subr.bf16.mxu1 %v13078_v44 }
0x13ca   :  { %6948 = vmatpush1.bf16.msra.mxu0 %v12784_v25  ;;  %10020 = vmatpush3.bf16.msra.mxu1 %v10777_v55  ;;  %v10787_v55 = vld [vmem:[%s13027_s9 + $0x28] sm:$0xff]  }
0x13cb   :  { %6949 = vmatprep.subr.bf16.mxu0 %v12788_v62  ;;  %10021 = vmatprep.subr.bf16.mxu1 %v13078_v44 }
0x13ce   :  { %6950 = vmatpush1.bf16.msra.mxu0 %v12791_v38  ;;  %10022 = vmatpush3.bf16.msra.mxu1 %v10781_v35  ;;  %v10788_v35 = vld [vmem:[%s13027_s9 + $0x30] sm:$0xff]  }
0x13cf   :  { %10027 = vmatprep.subr.bf16.mxu0 %v13078_v44  ;;  %10047 = vmatprep.subr.bf16.mxu1 %v13078_v44 }
0x13d1   :  { %6968 = vmatmul.mubr.bf16.vlgmr.msra.gmra.mrb[92].mxu0 %v12590_v17  ;;  %10024 = vmatmul.mubr.bf16.vlgmr.msra.gmra.mrb[112].mxu1 %v12590_v17  ;;  %v10784_v17 = vld [vmem:[%s13027_s9 + $0x10] sm:$0xff]  }
0x13d2   :  { %10043 = vmatprep.mubr.msk.bf16.mxu0 %vm11147_vm2, %v13078_v44  ;;  %10063 = vmatprep.mubr.msk.bf16.mxu1 %vm11147_vm2, %v13078_v44 }
0x13d3   :  { %10028 = vmatpush3.bf16.msra.mxu0 %v10782_v63  ;;  %v10789_v63 = vld [vmem:[%s13027_s9 + $0x38] sm:$0xff]  }
0x13d4   :  { %10029 = vmatprep.subr.bf16.mxu0 %v13078_v44 }
0x13d7   :  { %10030 = vmatpush3.bf16.msra.mxu0 %v10783_v4  ;;  %v10790_v4 = vld [vmem:[#allocation8] sm:$0xff]  }
0x13d8   :  { %10031 = vmatprep.subr.bf16.mxu0 %v13078_v44  ;;  %10048 = vmatpush3.bf16.msra.mxu1 %v10790_v4  ;;  %v10795_v4 = vld [vmem:[#allocation8 + $0x28] sm:$0xff]  }
0x13d9   :  { %10049 = vmatprep.subr.bf16.mxu1 %v13078_v44 }
0x13db   :  { %10032 = vmatpush3.bf16.msra.mxu0 %v10784_v17  ;;  %v10791_v17 = vld [vmem:[#allocation8 + $0x8] sm:$0xff]  }
0x13dc   :  { %10033 = vmatprep.subr.bf16.mxu0 %v13078_v44  ;;  %10050 = vmatpush3.bf16.msra.mxu1 %v10791_v17  ;;  %v10796_v17 = vld [vmem:[#allocation8 + $0x30] sm:$0xff]  }
0x13dd   :  { %10051 = vmatprep.subr.bf16.mxu1 %v13078_v44 }
0x13df   :  { %10034 = vmatpush3.bf16.msra.mxu0 %v10785_v12  ;;  %v10792_v12 = vld [vmem:[#allocation8 + $0x10] sm:$0xff]  }
0x13e0   :  { %10035 = vmatprep.subr.bf16.mxu0 %v13078_v44  ;;  %10052 = vmatpush3.bf16.msra.mxu1 %v10792_v12 }
0x13e1   :  { %10053 = vmatprep.subr.bf16.mxu1 %v13078_v44 }
0x13e3   :  { %10036 = vmatpush3.bf16.msra.mxu0 %v10786_v39  ;;  %v10793_v39 = vld [vmem:[#allocation8 + $0x18] sm:$0xff]  }
0x13e4   :  { %10037 = vmatprep.subr.bf16.mxu0 %v13078_v44  ;;  %10054 = vmatpush3.bf16.msra.mxu1 %v10793_v39 }
0x13e5   :  { %10055 = vmatprep.subr.bf16.mxu1 %v13078_v44 }
0x13e7   :  { %10038 = vmatpush3.bf16.msra.mxu0 %v10787_v55 }
0x13e8   :  { %10039 = vmatprep.subr.bf16.mxu0 %v13078_v44 }
0x13eb   :  { %10040 = vmatpush3.bf16.msra.mxu0 %v10788_v35  ;;  %v10794_v35 = vld [vmem:[#allocation8 + $0x20] sm:$0xff]  }
0x13ec   :  { %10041 = vmatprep.subr.bf16.mxu0 %v13078_v44  ;;  %10056 = vmatpush3.bf16.msra.mxu1 %v10794_v35 }
0x13ed   :  { %10057 = vmatprep.subr.bf16.mxu1 %v13078_v44 }
0x13ef   :  { %10042 = vmatpush3.bf16.msra.mxu0 %v10789_v63 }
0x13f0   :  { %7413 = vmatprep.subr.bf16.mxu0 %v12569_v61  ;;  %10058 = vmatpush3.bf16.msra.mxu1 %v10795_v4 }
0x13f1   :  { %10059 = vmatprep.subr.bf16.mxu1 %v13078_v44 }
0x13f4   :  { %10060 = vmatpush3.bf16.msra.mxu1 %v10796_v17 }
0x13f5   :  { %10061 = vmatprep.subr.bf16.mxu1 %v13078_v44 }
0x1484   :  { %v6769_v55 = vpop.f32.mrb[108].mxu1 }
0x1485   :  { %v10005_v38 = vpop.f32.mrb[109].mxu1 }
0x1486   :  { %v6772_v61 = vpop.f32.mrb[110].mxu1 }
0x1487   :  { %v10006_v63 = vpop.f32.mrb[111].mxu1 }
0x14a4   :  { %v6969_v12 = vpop.f32.mrb[92].mxu0  ;;  %v7010_v62 = vpop.f32.mrb[112].mxu1 }
0x14a5   :  { %v10179_v39 = vadd.f32 %v6969_v12, %v11546_v14  ;;  %v6971_v38 = vpop.f32.mrb[93].mxu0  ;;  %v10025_v25 = vpop.f32.mrb[113].mxu1  ;;  %v12848_v12 = vld [vmem:[%s13026_s8] ss:$0 sm:$0xff] }
0x14a6   :  { %v6973_v3 = vpop.f32.mrb[94].mxu0  ;;  %v7013_v61 = vpop.f32.mrb[114].mxu1  ;;  %v10180_v10 = vadd.f32 %v6971_v38, %v11550_v34 }
0x14a7   :  { %v8882_v63 = vmul.f32 -1.442695, %v10179_v39  ;;  %v6974_v35 = vpop.f32.mrb[95].mxu0  ;;  %v10026_v58 = vpop.f32.mrb[115].mxu1  ;;  %v7030_v3 = vadd.f32 %v12848_v12, %v7010_v62 }
0x14a8   :  { %v8883_v4 = vmul.f32 -1.442695, %v10180_v10  ;;  %v6770_v58 = vadd.f32 %v6769_v55, %v11561_v32 }
0x14a9   :  { %10968 = vpow2.f32 %v8882_v63 }
0x14aa   :  { %10970 = vpow2.f32 %v8883_v4 }
0x14b3   :  { %v10969_v40 = vpop.eup %10968 }
0x14b4   :  { %v7020_v17 = vadd.f32 1.0, %v10969_v40  ;;  %v10971_v41 = vpop.eup %10970 }
0x14b5   :  { %v7027_v45 = vadd.f32 1.0, %v10971_v41 }
0x14b6   :  { %10972 = vrcp.f32 %v7020_v17 }
0x14b7   :  { %10974 = vrcp.f32 %v7027_v45  ;;  %v12928_v45 = vld [vmem:[%s13030_s12] ss:$0 sm:$0xff] }
0x14c0   :  { %v10973_v25 = vpop.eup %10972 }
0x14c1   :  { %v7031_v39 = vmul.f32 %v10973_v25, %v7030_v3  ;;  %v10975_v10 = vpop.eup %10974 }
0x14c2   :  { %v7034_v61 = vsub.f32 1.0, %v10975_v10  ;;  %v7036_v41 = vmul.f32 %v10975_v10, %v12584_v16  ;;  %v10797_v16 = vld [vmem:[#allocation8 + $0x38] sm:$0xff]  }
0x14c3   :  { %v7032_v38 = vadd.f32 %v7031_v39, %v6770_v58  ;;  %10062 = vmatpush3.bf16.msra.mxu1 %v10797_v16 }
0x14c4   :  { %10067 = vmatprep.subr.bf16.mxu1 %v13078_v44 }
0x14c5   :  { %10976 = vtanh.f32 %v7032_v38 }
0x14cf   :  { %v10977_v40 = vpop.eup %10976 }
0x14d0   :  { %v7035_v63 = vmul.f32 %v10977_v40, %v7034_v61 }
0x14d2   :  { %v12853_v35 = vadd.f32 %v7036_v41, %v7035_v63 }
0x14d4   :  { %v12857_v4 = vpack.c.bf16 %v12853_v35, %v12853_v35 }
0x14d6   :  { %10044 = vmatmul.mubr.bf16.vlgmr.msra.gmra.mrb[96].mxu0 %v12857_v4 }
0x14d7   :  { %7414 = vmatpush1.bf16.msra.mxu0 %v12586_v49  ;;  %7445 = vmatprep.mubr.bf16.mxu0 %v13080_v60 }
0x14d8   :  { %7415 = vmatprep.subr.bf16.mxu0 %v12592_v52  ;;  %v12899_v52 = vld [vmem:[%s13028_s10] ss:$0 sm:$0xff] }
0x14db   :  { %7416 = vmatpush1.bf16.msra.mxu0 %v12596_v51 }
0x14dc   :  { %7417 = vmatprep.subr.bf16.mxu0 %v12600_v42 }
0x14df   :  { %7418 = vmatpush1.bf16.msra.mxu0 %v12603_v0 }
0x14e0   :  { %7419 = vmatprep.subr.bf16.mxu0 %v12606_v50 }
0x14e3   :  { %7420 = vmatpush1.bf16.msra.mxu0 %v12609_v20 }
0x14e4   :  { %7421 = vmatprep.subr.bf16.mxu0 %v12612_v13  ;;  %v10798_v13 = vld [vmem:[#allocation3 + $0x8] ss:$12 sps:$4 sm:$0xff]  }
0x14e7   :  { %7422 = vmatpush1.bf16.msra.mxu0 %v12615_v26 }
0x14e8   :  { %7423 = vmatprep.subr.bf16.mxu0 %v12618_v46  ;;  %v10799_v46 = vld [vmem:[#allocation3 + $0x20] ss:$12 sps:$4 sm:$0xff]  }
0x14eb   :  { %7424 = vmatpush1.bf16.msra.mxu0 %v12621_v5  ;;  %v10800_v5 = vld [vmem:[#allocation3 + $0x38] ss:$12 sps:$4 sm:$0xff]  }
0x14ec   :  { %7425 = vmatprep.subr.bf16.mxu0 %v12624_v23  ;;  %v10801_v23 = vld [vmem:[#allocation3 + $0x50] ss:$12 sps:$4 sm:$0xff]  }
0x14ef   :  { %7426 = vmatpush1.bf16.msra.mxu0 %v12627_v28  ;;  %v10802_v28 = vld [vmem:[#allocation3 + $0x68] ss:$12 sps:$4 sm:$0xff]  }
0x14f0   :  { %7427 = vmatprep.subr.bf16.mxu0 %v12630_v29  ;;  %v10803_v29 = vld [vmem:[#allocation3 + $0x80] ss:$12 sps:$4 sm:$0xff]  }
0x14f3   :  { %7428 = vmatpush1.bf16.msra.mxu0 %v12633_v6  ;;  %v10804_v6 = vld [vmem:[#allocation3 + $0x98] ss:$12 sps:$4 sm:$0xff]  }
0x14f4   :  { %7677 = vmatprep.subr.bf16.mxu0 %v12662_v8  ;;  %v10805_v8 = vld [vmem:[#allocation3 + $0xb0] ss:$12 sps:$4 sm:$0xff]  }
0x14f6   :  { %7446 = vmatmul.mubr.bf16.vlgmr.msra.gmra.mrb[100].mxu0 %v12739_v56 }
0x14f7   :  { %7678 = vmatpush1.bf16.msra.mxu0 %v12660_v1  ;;  %7709 = vmatprep.mubr.bf16.mxu0 %v13080_v60 }
0x14f8   :  { %7679 = vmatprep.subr.bf16.mxu0 %v12664_v31  ;;  %v13140_v31 = vld [vmem:[#allocation23_spill] sm:$0xff] }
0x14fb   :  { %7680 = vmatpush1.bf16.msra.mxu0 %v12668_v11 }
0x14fc   :  { %7681 = vmatprep.subr.bf16.mxu0 %v12672_v48 }
0x14ff   :  { %7682 = vmatpush1.bf16.msra.mxu0 %v12675_v21  ;;  %v13141_v21 = vld [vmem:[#allocation24_spill] sm:$0xff] }
0x1500   :  { %7683 = vmatprep.subr.bf16.mxu0 %v12680_v9 }
0x1503   :  { %7684 = vmatpush1.bf16.msra.mxu0 %v12683_v18 }
0x1504   :  { %7685 = vmatprep.subr.bf16.mxu0 %v12687_v15 }
0x1507   :  { %7686 = vmatpush1.bf16.msra.mxu0 %v12690_v19  ;;  %v10806_v19 = vld [vmem:[#allocation5 + $0x8] ss:$12 sps:$4 sm:$0xff]  }
0x1508   :  { %7687 = vmatprep.subr.bf16.mxu0 %v12693_v43  ;;  %v10807_v43 = vld [vmem:[#allocation5 + $0x20] ss:$12 sps:$4 sm:$0xff]  }
0x150b   :  { %7688 = vmatpush1.bf16.msra.mxu0 %v12696_v54  ;;  %v10808_v54 = vld [vmem:[#allocation5 + $0x38] ss:$12 sps:$4 sm:$0xff]  }
0x150c   :  { %7689 = vmatprep.subr.bf16.mxu0 %v12700_v30  ;;  %v10809_v30 = vld [vmem:[#allocation5 + $0x50] ss:$12 sps:$4 sm:$0xff]  }
0x150f   :  { %7690 = vmatpush1.bf16.msra.mxu0 %v12703_v57  ;;  %v10810_v57 = vld [vmem:[#allocation5 + $0x68] ss:$12 sps:$4 sm:$0xff]  }
0x1510   :  { %7691 = vmatprep.subr.bf16.mxu0 %v12707_v36  ;;  %v10811_v36 = vld [vmem:[#allocation5 + $0x80] ss:$12 sps:$4 sm:$0xff]  }
0x1513   :  { %7692 = vmatpush1.bf16.msra.mxu0 %v12710_v22  ;;  %v10812_v22 = vld [vmem:[#allocation5 + $0x98] ss:$12 sps:$4 sm:$0xff]  }
0x1514   :  { %7918 = vmatprep.subr.bf16.mxu0 %v12714_v37  ;;  %v10813_v37 = vld [vmem:[#allocation5 + $0xb0] ss:$12 sps:$4 sm:$0xff]  }
0x15a9   :  { %v7137_v49 = vpop.f32.mrb[96].mxu0 }
0x15aa   :  { %v7138_v51 = vadd.f32 %v12899_v52, %v7137_v49  ;;  %v10045_v42 = vpop.f32.mrb[97].mxu0 }
0x15ab   :  { %v7140_v0 = vpop.f32.mrb[98].mxu0 }
0x15ac   :  { %v7143_v50 = vmax.f32 %v7138_v51, 0.0  ;;  %v10046_v20 = vpop.f32.mrb[99].mxu0  ;;  %v13142_v0 = vld [vmem:[#allocation18_spill] sm:$0xff] }
0x15ae   :  { %v7144_v26 = vpack.c.bf16 %v7143_v50, %v7143_v50 }
0x15b0   :  { %10064 = vmatmul.mubr.bf16.vlgmr.msra.gmra.mrb[116].mxu1 %v7144_v26 }
0x15b1   :  { %10068 = vmatpush3.bf16.msra.mxu1 %v10798_v13  ;;  %10083 = vmatprep.mubr.msk.bf16.mxu1 %vm11147_vm2, %v13078_v44 }
0x15b2   :  { %10069 = vmatprep.subr.bf16.mxu1 %v13078_v44 }
0x15b5   :  { %10070 = vmatpush3.bf16.msra.mxu1 %v10799_v46 }
0x15b6   :  { %10071 = vmatprep.subr.bf16.mxu1 %v13078_v44 }
0x15b9   :  { %10072 = vmatpush3.bf16.msra.mxu1 %v10800_v5 }
0x15ba   :  { %10073 = vmatprep.subr.bf16.mxu1 %v13078_v44 }
0x15bd   :  { %10074 = vmatpush3.bf16.msra.mxu1 %v10801_v23 }
0x15be   :  { %10075 = vmatprep.subr.bf16.mxu1 %v13078_v44 }
0x15c1   :  { %10076 = vmatpush3.bf16.msra.mxu1 %v10802_v28  ;;  %v10814_v28 = vld [vmem:[#allocation7 + $0x8] ss:$12 sps:$4 sm:$0xff]  }
0x15c2   :  { %10077 = vmatprep.subr.bf16.mxu1 %v13078_v44 }
0x15c5   :  { %10078 = vmatpush3.bf16.msra.mxu1 %v10803_v29 }
0x15c6   :  { %10079 = vmatprep.subr.bf16.mxu1 %v13078_v44 }
0x15c9   :  { %v7447_v1 = vpop.f32.mrb[100].mxu0  ;;  %10080 = vmatpush3.bf16.msra.mxu1 %v10804_v6  ;;  %v13144_v6 = vld [vmem:[#allocation35_spill] sm:$0xff] }
0x15ca   :  { %v7494_v11 = vadd.f32 %v7447_v1, %v13140_v31  ;;  %v7449_v48 = vpop.f32.mrb[101].mxu0  ;;  %10081 = vmatprep.subr.bf16.mxu1 %v13078_v44  ;;  %v13146_v1 = vld [vmem:[#allocation13_spill] sm:$0xff] }
0x15cb   :  { %v7501_v9 = vadd.f32 %v7449_v48, %v13141_v21  ;;  %v7451_v18 = vpop.f32.mrb[102].mxu0  ;;  %v13149_v31 = vld [vmem:[#allocation17_spill] sm:$0xff]  ;;  %v13150_v48 = vld [vmem:[#allocation19_spill] sm:$0xff]  ;;  %v13151_v21 = vld [vmem:[#allocation20_spill] sm:$0xff] }
0x15cc   :  { %v7452_v15 = vpop.f32.mrb[103].mxu0  ;;  %v8924_v3 = vmul.f32 -1.442695, %v7494_v11  ;;  %v10821_v11 = vld [vmem:[#allocation7 + $0xb0] ss:$12 sps:$4 sm:$0xff]   ;;  %v10823_v18 = vld [vmem:[%s13027_s9 + $0x8] sm:$0xff]  }
0x15cd   :  { %10082 = vmatpush3.bf16.msra.mxu1 %v10805_v8  ;;  %v8925_v58 = vmul.f32 -1.442695, %v7501_v9  ;;  %v13148_v8 = vld [vmem:[#allocation16_spill] sm:$0xff]  ;;  %v10822_v9 = vld [vmem:[%s13027_s9] sm:$0xff]  }
0x15ce   :  { %10087 = vmatprep.subr.bf16.mxu1 %v13078_v44  ;;  %10978 = vpow2.f32 %v8924_v3  ;;  %v10825_v15 = vld [vmem:[%s13027_s9 + $0x18] sm:$0xff]  }
0x15cf   :  { %10980 = vpow2.f32 %v8925_v58 }
0x15d0   :  { %10084 = vmatmul.mubr.bf16.vlgmr.msra.gmra.mrb[120].mxu1 %v12739_v56 }
0x15d1   :  { %10103 = vmatprep.mubr.msk.bf16.mxu1 %vm11147_vm2, %v13078_v44  ;;  %10088 = vmatpush3.bf16.msra.mxu1 %v10806_v19  ;;  %v10826_v19 = vld [vmem:[%s13027_s9 + $0x20] sm:$0xff]  }
0x15d2   :  { %10089 = vmatprep.subr.bf16.mxu1 %v13078_v44 }
0x15d5   :  { %10090 = vmatpush3.bf16.msra.mxu1 %v10807_v43  ;;  %v10827_v43 = vld [vmem:[%s13027_s9 + $0x28] sm:$0xff]  }
0x15d6   :  { %10091 = vmatprep.subr.bf16.mxu1 %v13078_v44 }
0x15d8   :  { %v10979_v39 = vpop.eup %10978 }
0x15d9   :  { %10092 = vmatpush3.bf16.msra.mxu1 %v10808_v54  ;;  %v7498_v38 = vadd.f32 1.0, %v10979_v39  ;;  %v10981_v10 = vpop.eup %10980  ;;  %v10828_v54 = vld [vmem:[%s13027_s9 + $0x30] sm:$0xff]  }
0x15da   :  { %10093 = vmatprep.subr.bf16.mxu1 %v13078_v44  ;;  %v7505_v61 = vadd.f32 1.0, %v10981_v10 }
0x15db   :  { %10982 = vrcp.f32 %v7498_v38 }
0x15dc   :  { %10984 = vrcp.f32 %v7505_v61 }
0x15dd   :  { %10094 = vmatpush3.bf16.msra.mxu1 %v10809_v30  ;;  %v10829_v30 = vld [vmem:[%s13027_s9 + $0x38] sm:$0xff]  }
0x15de   :  { %10095 = vmatprep.subr.bf16.mxu1 %v13078_v44 }
0x15e1   :  { %10096 = vmatpush3.bf16.msra.mxu1 %v10810_v57  ;;  %v10830_v57 = vld [vmem:[#allocation8] sm:$0xff]  }
0x15e2   :  { %10097 = vmatprep.subr.bf16.mxu1 %v13078_v44 }
0x15e5   :  { %10098 = vmatpush3.bf16.msra.mxu1 %v10811_v36  ;;  %v10983_v16 = vpop.eup %10982  ;;  %v10831_v36 = vld [vmem:[#allocation8 + $0x8] sm:$0xff]  }
0x15e6   :  { %10099 = vmatprep.subr.bf16.mxu1 %v13078_v44  ;;  %v10985_v20 = vpop.eup %10984 }
0x15e7   :  { %v7512_v13 = vsub.f32 1.0, %v10985_v20  ;;  %v7514_v5 = vmul.f32 %v10985_v20, %v12733_v7  ;;  %v10816_v7 = vld [vmem:[#allocation7 + $0x38] ss:$12 sps:$4 sm:$0xff]  }
0x15e9   :  { %10100 = vmatpush3.bf16.msra.mxu1 %v10812_v22  ;;  %v10832_v22 = vld [vmem:[#allocation8 + $0x10] sm:$0xff]  }
0x15ea   :  { %10101 = vmatprep.subr.bf16.mxu1 %v13078_v44 }
0x15ed   :  { %10102 = vmatpush3.bf16.msra.mxu1 %v10813_v37  ;;  %v10833_v37 = vld [vmem:[#allocation8 + $0x18] sm:$0xff]  }
0x15ee   :  { %10107 = vmatprep.subr.bf16.mxu1 %v13078_v44 }
0x1683   :  { %v7243_v56 = vpop.f32.mrb[116].mxu1 }
0x1684   :  { %v7244_v62 = vadd.f32 %v12928_v45, %v7243_v56  ;;  %v10065_v55 = vpop.f32.mrb[117].mxu1  ;;  %v10834_v56 = vld [vmem:[#allocation8 + $0x20] sm:$0xff]  }
0x1685   :  { %v7246_v17 = vpop.f32.mrb[118].mxu1 }
0x1686   :  { %7249 = vst [vmem:[%s13031_s13 + $0x30] sm:$0xff] %v7244_v62  ;;  %v10066_v25 = vpop.f32.mrb[119].mxu1  ;;  %v10835_v62 = vld [vmem:[#allocation8 + $0x28] sm:$0xff]  }
0x16a3   :  { %v7488_v40 = vpop.f32.mrb[120].mxu1 }
0x16a4   :  { %v7508_v63 = vadd.f32 %v12728_v33, %v7488_v40  ;;  %v10085_v41 = vpop.f32.mrb[121].mxu1  ;;  %v10815_v33 = vld [vmem:[#allocation7 + $0x20] ss:$12 sps:$4 sm:$0xff]  }
0x16a5   :  { %v7491_v49 = vpop.f32.mrb[122].mxu1 }
0x16a6   :  { %v7509_v51 = vmul.f32 %v10983_v16, %v7508_v63  ;;  %v10086_v42 = vpop.f32.mrb[123].mxu1 }
0x16a8   :  { %v7510_v50 = vadd.f32 %v7509_v51, %v13142_v0 }
0x16aa   :  { %10986 = vtanh.f32 %v7510_v50 }
0x16b4   :  { %v10987_v26 = vpop.eup %10986 }
0x16b5   :  { %v7513_v46 = vmul.f32 %v10987_v26, %v7512_v13 }
0x16b7   :  { %v7515_v23 = vadd.f32 %v7514_v5, %v7513_v46 }
0x16b9   :  { %v7516_v29 = vpack.c.bf16 %v7515_v23, %v7515_v23 }
0x16bb   :  { %7710 = vmatmul.mubr.bf16.vlgmr.msra.gmra.mrb[104].mxu0 %v7516_v29  ;;  %10104 = vmatmul.mubr.bf16.vlgmr.msra.gmra.mrb[124].mxu1 %v7516_v29 }
0x16bc   :  { %7919 = vmatpush1.bf16.msra.mxu0 %v12735_v2  ;;  %10108 = vmatpush3.bf16.msra.mxu1 %v10814_v28  ;;  %v10817_v2 = vld [vmem:[#allocation7 + $0x50] ss:$12 sps:$4 sm:$0xff]  }
0x16bd   :  { %7920 = vmatprep.subr.bf16.mxu0 %v12741_v53  ;;  %10109 = vmatprep.subr.bf16.mxu1 %v13078_v44  ;;  %v10818_v53 = vld [vmem:[#allocation7 + $0x68] ss:$12 sps:$4 sm:$0xff]  }
0x16be   :  { %7950 = vmatprep.mubr.bf16.mxu0 %v13080_v60  ;;  %10123 = vmatprep.mubr.msk.bf16.mxu1 %vm11147_vm2, %v13078_v44  ;;  %v13143_v60 = vld [vmem:[#allocation34_spill] sm:$0xff] }
0x16c0   :  { %7921 = vmatpush1.bf16.msra.mxu0 %v12746_v59  ;;  %10110 = vmatpush3.bf16.msra.mxu1 %v10815_v33  ;;  %v13145_v59 = vld [vmem:[#allocation36_spill] sm:$0xff] }
0x16c1   :  { %7922 = vmatprep.subr.bf16.mxu0 %v12750_v47  ;;  %10111 = vmatprep.subr.bf16.mxu1 %v13078_v44  ;;  %v10819_v47 = vld [vmem:[#allocation7 + $0x80] ss:$12 sps:$4 sm:$0xff]  }
0x16c4   :  { %7923 = vmatpush1.bf16.msra.mxu0 %v12756_v27  ;;  %10112 = vmatpush3.bf16.msra.mxu1 %v10816_v7  ;;  %v13147_v27 = vld [vmem:[#allocation15_spill] sm:$0xff] }
0x16c5   :  { %7924 = vmatprep.subr.bf16.mxu0 %v12760_v24  ;;  %10113 = vmatprep.subr.bf16.mxu1 %v13078_v44  ;;  %v10820_v24 = vld [vmem:[#allocation7 + $0x98] ss:$12 sps:$4 sm:$0xff]  }
0x16c8   :  { %7925 = vmatpush1.bf16.msra.mxu0 %v13143_v60  ;;  %10114 = vmatpush3.bf16.msra.mxu1 %v10817_v2 }
0x16c9   :  { %7926 = vmatprep.subr.bf16.mxu0 %v13144_v6  ;;  %10115 = vmatprep.subr.bf16.mxu1 %v13078_v44 }
0x16cc   :  { %7927 = vmatpush1.bf16.msra.mxu0 %v13145_v59  ;;  %10116 = vmatpush3.bf16.msra.mxu1 %v10818_v53  ;;  %v10836_v53 = vld [vmem:[#allocation8 + $0x30] sm:$0xff]  }
0x16cd   :  { %7928 = vmatprep.subr.bf16.mxu0 %v13146_v1  ;;  %10117 = vmatprep.subr.bf16.mxu1 %v13078_v44 }
0x16d0   :  { %7929 = vmatpush1.bf16.msra.mxu0 %v13147_v27  ;;  %10118 = vmatpush3.bf16.msra.mxu1 %v10819_v47 }
0x16d1   :  { %7930 = vmatprep.subr.bf16.mxu0 %v13148_v8  ;;  %10119 = vmatprep.subr.bf16.mxu1 %v13078_v44 }
0x16d4   :  { %7931 = vmatpush1.bf16.msra.mxu0 %v13149_v31  ;;  %10120 = vmatpush3.bf16.msra.mxu1 %v10820_v24 }
0x16d5   :  { %7932 = vmatprep.subr.bf16.mxu0 %v13150_v48  ;;  %10121 = vmatprep.subr.bf16.mxu1 %v13078_v44 }
0x16d8   :  { %7933 = vmatpush1.bf16.msra.mxu0 %v13151_v21  ;;  %10122 = vmatpush3.bf16.msra.mxu1 %v10821_v11 }
0x16d9   :  { %10127 = vmatprep.subr.bf16.mxu0 %v13078_v44  ;;  %10147 = vmatprep.subr.bf16.mxu1 %v13078_v44 }
0x16db   :  { %7951 = vmatmul.mubr.bf16.vlgmr.msra.gmra.mrb[104].mxu0 %v12857_v4  ;;  %10124 = vmatmul.mubr.bf16.vlgmr.msra.gmra.mrb[128].mxu1 %v12857_v4  ;;  %v10824_v4 = vld [vmem:[%s13027_s9 + $0x10] sm:$0xff]  }
0x16dc   :  { %10143 = vmatprep.mubr.msk.bf16.mxu0 %vm11147_vm2, %v13078_v44  ;;  %10163 = vmatprep.mubr.msk.bf16.mxu1 %vm11147_vm2, %v13078_v44 }
0x16dd   :  { %10128 = vmatpush3.bf16.msra.mxu0 %v10822_v9  ;;  %10148 = vmatpush3.bf16.msra.mxu1 %v10830_v57 }
0x16de   :  { %10129 = vmatprep.subr.bf16.mxu0 %v13078_v44  ;;  %10149 = vmatprep.subr.bf16.mxu1 %v13078_v44 }
0x16e1   :  { %10130 = vmatpush3.bf16.msra.mxu0 %v10823_v18  ;;  %10150 = vmatpush3.bf16.msra.mxu1 %v10831_v36 }
0x16e2   :  { %10131 = vmatprep.subr.bf16.mxu0 %v13078_v44  ;;  %10151 = vmatprep.subr.bf16.mxu1 %v13078_v44 }
0x16e5   :  { %10132 = vmatpush3.bf16.msra.mxu0 %v10824_v4  ;;  %10152 = vmatpush3.bf16.msra.mxu1 %v10832_v22 }
0x16e6   :  { %10133 = vmatprep.subr.bf16.mxu0 %v13078_v44  ;;  %10153 = vmatprep.subr.bf16.mxu1 %v13078_v44 }
0x16e9   :  { %10134 = vmatpush3.bf16.msra.mxu0 %v10825_v15  ;;  %10154 = vmatpush3.bf16.msra.mxu1 %v10833_v37 }
0x16ea   :  { %10135 = vmatprep.subr.bf16.mxu0 %v13078_v44  ;;  %10155 = vmatprep.subr.bf16.mxu1 %v13078_v44 }
0x16ed   :  { %10136 = vmatpush3.bf16.msra.mxu0 %v10826_v19  ;;  %10156 = vmatpush3.bf16.msra.mxu1 %v10834_v56 }
0x16ee   :  { %10137 = vmatprep.subr.bf16.mxu0 %v13078_v44  ;;  %10157 = vmatprep.subr.bf16.mxu1 %v13078_v44 }
0x16f1   :  { %10138 = vmatpush3.bf16.msra.mxu0 %v10827_v43  ;;  %10158 = vmatpush3.bf16.msra.mxu1 %v10835_v62 }
0x16f2   :  { %10139 = vmatprep.subr.bf16.mxu0 %v13078_v44  ;;  %10159 = vmatprep.subr.bf16.mxu1 %v13078_v44 }
0x16f5   :  { %10140 = vmatpush3.bf16.msra.mxu0 %v10828_v54  ;;  %10160 = vmatpush3.bf16.msra.mxu1 %v10836_v53 }
0x16f6   :  { %10141 = vmatprep.subr.bf16.mxu0 %v13078_v44  ;;  %10161 = vmatprep.subr.bf16.mxu1 %v13078_v44 }
0x16f9   :  { %10142 = vmatpush3.bf16.msra.mxu0 %v10829_v30 }
0x178e   :  { %v7752_v55 = vpop.f32.mrb[124].mxu1 }
0x178f   :  { %v10105_v17 = vpop.f32.mrb[125].mxu1  ;;  %v7753_v46 = vadd.f32 %v7752_v55, %v11561_v32 }
0x1790   :  { %v7755_v3 = vpop.f32.mrb[126].mxu1 }
0x1791   :  { %v10106_v25 = vpop.f32.mrb[127].mxu1 }
0x17ae   :  { %v7952_v58 = vpop.f32.mrb[104].mxu0  ;;  %v7993_v39 = vpop.f32.mrb[128].mxu1 }
0x17af   :  { %v10181_v38 = vadd.f32 %v7952_v58, %v11546_v14  ;;  %v7954_v10 = vpop.f32.mrb[105].mxu0  ;;  %v10125_v61 = vpop.f32.mrb[129].mxu1  ;;  %v8013_v26 = vadd.f32 %v12848_v12, %v7993_v39  ;;  %v10837_v12 = vld [vmem:[#allocation8 + $0x38] sm:$0xff]  }
0x17b0   :  { %v7956_v40 = vpop.f32.mrb[106].mxu0  ;;  %v7996_v63 = vpop.f32.mrb[130].mxu1  ;;  %v10182_v51 = vadd.f32 %v7954_v10, %v11550_v34  ;;  %10162 = vmatpush3.bf16.msra.mxu1 %v10837_v12 }
0x17b1   :  { %v8974_v41 = vmul.f32 -1.442695, %v10181_v38  ;;  %v7957_v16 = vpop.f32.mrb[107].mxu0  ;;  %v10126_v49 = vpop.f32.mrb[131].mxu1 }
0x17b2   :  { %v8975_v42 = vmul.f32 -1.442695, %v10182_v51 }
0x17b3   :  { %10988 = vpow2.f32 %v8974_v41 }
0x17b4   :  { %10990 = vpow2.f32 %v8975_v42 }
0x17bd   :  { %v10989_v0 = vpop.eup %10988 }
0x17be   :  { %v8003_v50 = vadd.f32 1.0, %v10989_v0  ;;  %v10991_v20 = vpop.eup %10990 }
0x17bf   :  { %v8010_v13 = vadd.f32 1.0, %v10991_v20 }
0x17c0   :  { %10992 = vrcp.f32 %v8003_v50 }
0x17c1   :  { %10994 = vrcp.f32 %v8010_v13 }
0x17ca   :  { %v10993_v14 = vpop.eup %10992 }
0x17cb   :  { %v8014_v5 = vmul.f32 %v10993_v14, %v8013_v26  ;;  %v10995_v28 = vpop.eup %10994 }
0x17cc   :  { %v8017_v29 = vsub.f32 1.0, %v10995_v28  ;;  %v8019_v7 = vmul.f32 %v10995_v28, %v12853_v35 }
0x17cd   :  { %v8015_v23 = vadd.f32 %v8014_v5, %v7753_v46 }
0x17cf   :  { %10996 = vtanh.f32 %v8015_v23 }
0x17d9   :  { %v10997_v34 = vpop.eup %10996 }
0x17da   :  { %v8018_v33 = vmul.f32 %v10997_v34, %v8017_v29 }
0x17dc   :  { %v8020_v2 = vadd.f32 %v8019_v7, %v8018_v33 }
0x17de   :  { %v8021_v60 = vpack.c.bf16 %v8020_v2, %v8020_v2 }
0x17e0   :  { %10144 = vmatmul.mubr.bf16.vlgmr.msra.gmra.mrb[108].mxu0 %v8021_v60 }
0x18b3   :  { %v8120_v32 = vpop.f32.mrb[108].mxu0 }
0x18b4   :  { %v8121_v6 = vadd.f32 %v12899_v52, %v8120_v32  ;;  %v10145_v59 = vpop.f32.mrb[109].mxu0 }
0x18b5   :  { %v8123_v47 = vpop.f32.mrb[110].mxu0 }
0x18b6   :  { %v8126_v1 = vmax.f32 %v8121_v6, 0.0  ;;  %v10146_v27 = vpop.f32.mrb[111].mxu0 }
0x18b8   :  { %v8127_v24 = vpack.c.bf16 %v8126_v1, %v8126_v1 }
0x18ba   :  { %10164 = vmatmul.mubr.bf16.vlgmr.msra.gmra.mrb[132].mxu1 %v8127_v24 }
0x198d   :  { %v8226_v8 = vpop.f32.mrb[132].mxu1 }
0x198e   :  { %v8227_v35 = vadd.f32 %v12928_v45, %v8226_v8  ;;  %v10165_v31 = vpop.f32.mrb[133].mxu1 }
0x198f   :  { %v8229_v11 = vpop.f32.mrb[134].mxu1 }
0x1990   :  { %8232 = vst [vmem:[%s13031_s13 + $0x38] sm:$0xff] %v8227_v35  ;;  %v10166_v44 = vpop.f32.mrb[135].mxu1 }
0x1991   :  { %8237 = vsyncpa [#allocation4], 1 }
0x1992   :  { %8238 = vsyncpa [#allocation6], 1 }
0x1993   :  { %8239 = vsyncpa [#allocation9], 1 }

</bundles_post_ra>
